<compile_context>
chip_gen: v7x
topology: tpu7x:2x2x1
jax: 0.10.0
libtpu: 0.0.40
codegen_flags: <defaults>
</compile_context>

<pallas_src>
import math
from functools import partial

import numpy as np
import jax
import jax.numpy as jnp
from jax.experimental import pallas as pl
from jax.experimental.pallas import tpu as pltpu

# ---- static module config (matches CoordinateMLP(l=4, in_dim=2, out_dim=3)) ----
L = 4
IN_DIM = 2
OUT_DIM = 3
ENC_DIM = IN_DIM * 2 * L  # 16
HIDDEN = (256, 128, 64)
# PositionalEncoding.freq_bands = 2**arange(l) * pi
FREQ_BANDS = tuple((2.0 ** i) * math.pi for i in range(L))

# Encoding feature order (matches torch: for freq -> [sin(f*x), cos(f*x)], cat(-1) on (N,2)):
#   j = 4*i + k :  freq f_i ;  k in {0,1}: sin(f_i*x_k) ;  k in {2,3}: cos(f_i*x_{k-2})
_FA = np.zeros((ENC_DIM, 1), np.float32)     # coefficient of x0
_FB = np.zeros((ENC_DIM, 1), np.float32)     # coefficient of x1
_PHASE = np.zeros((ENC_DIM, 1), np.float32)  # 0 for sin, pi/2 for cos
for _i, _f in enumerate(FREQ_BANDS):
    for _k in range(4):
        _j = 4 * _i + _k
        if _k % 2 == 0:
            _FA[_j, 0] = _f
        else:
            _FB[_j, 0] = _f
        _PHASE[_j, 0] = 0.0 if _k < 2 else (np.pi / 2.0)


def coordinate_mlp_kernel(x_ref, fa_ref, fb_ref, ph_ref,
                          w1_ref, b1_ref,
                          w2_ref, b2_ref,
                          w3_ref, b3_ref,
                          w4_ref, b4_ref,
                          o_ref, *, bf16_act):
    # x tile: (IN_DIM, TILE_N) -- N on the lane axis.
    x = x_ref[...]
    x0 = x[0:1, :]                                           # (1, TILE_N)
    x1 = x[1:2, :]                                           # (1, TILE_N)

    # Positional encoding: single EUP sin over a (16, TILE_N) lane-dense slab.
    enc = jnp.sin(fa_ref[...] * x0 + fb_ref[...] * x1 + ph_ref[...])  # (ENC_DIM, TILE_N)

    def hidden(h, w_ref, b_ref):
        # MXU matmul: bf16 inputs, f32 accumulation.
        y = jnp.dot(w_ref[...], h, preferred_element_type=jnp.float32)
        if bf16_act:
            # v6e/v7x: one downcast, then bias-add + ReLU on the bf16 VALU.
            y = y.astype(jnp.bfloat16) + b_ref[...].astype(jnp.bfloat16)
            return jnp.maximum(y, 0.0)
        # v5e (no bf16 VALU): f32 elementwise, single cast for the next matmul.
        return jnp.maximum(y + b_ref[...], 0.0).astype(jnp.bfloat16)

    h = enc.astype(jnp.bfloat16)
    h = hidden(h, w1_ref, b1_ref)                            # (256, TILE_N)
    h = hidden(h, w2_ref, b2_ref)                            # (128, TILE_N)
    h = hidden(h, w3_ref, b3_ref)                            # (64, TILE_N)
    y = jnp.dot(w4_ref[...], h, preferred_element_type=jnp.float32) + b4_ref[...]
    o_ref[...] = jax.nn.sigmoid(y).astype(o_ref.dtype)       # (OUT_DIM, TILE_N)


def _round_up(v, m):
    return ((v + m - 1) // m) * m


def _pick_tile_n(n, *, target=4096, align=512, min_steps=2):
    """Biggest 512-aligned tile <= target that still leaves >= min_steps grid steps
    (so v7x's two TensorCores both get work); never below one aligned tile."""
    tile = min(target, _round_up(max(n // min_steps, 1), align))
    return max(align, tile)


def _bf16_elementwise_ok():
    """bf16 VALU exists on v6e/v7x; v5e (and older) lack it -> keep f32 elementwise."""
    try:
        kind = jax.devices()[0].device_kind.lower()
    except Exception:
        return False
    return any(t in kind for t in ("v6", "v7", "7x"))


def _vmem_limit_bytes(tile_n, params):
    """Raise the scoped-VMEM ceiling enough for large tiles, clamped well under
    v7x's 64 MiB physical VMEM per TensorCore (review items 2-4)."""
    # weights (single-buffered) + lane-padded (out,1)->(out,128) bias blocks
    w_bytes = sum(int(w.size) * 2 + int(b.shape[0]) * 128 * 4 for w, b in params)
    io_bytes = 2 * 2 * tile_n * (IN_DIM + OUT_DIM) * 4       # double-buffered x/out tiles
    act_bytes = tile_n * sum(d * 6 for d in (ENC_DIM,) + HIDDEN)  # f32 + bf16 temps
    need = w_bytes + io_bytes + act_bytes
    return int(min(48 << 20, max(32 << 20, 2 * need)))


def _resident_spec(shape):
    """Full-block, constant index_map, single-buffered: VMEM-resident across all grid
    steps, no per-step re-DMA, no wasted second buffer."""
    return pl.BlockSpec(shape, lambda *_: (0,) * len(shape),
                        pipeline_mode=pl.Buffered(1))


def coordinate_mlp(x, params, *, tile_n=None):
    """x: (N, IN_DIM) float32.
    params: list of (W:(out,in) bf16, b:(out,1) f32) per layer (PyTorch weight layout)."""
    n = x.shape[0]
    if tile_n is None:
        tile_n = _pick_tile_n(n)
    n_pad = pl.cdiv(n, tile_n) * tile_n

    # Feature-major layout: coordinates on sublanes, pixels on lanes.
    x_t = x.T                                                # (IN_DIM, N)
    if n_pad != n:
        x_t = jnp.pad(x_t, ((0, 0), (0, n_pad - n)))

    fa = jnp.asarray(_FA)
    fb = jnp.asarray(_FB)
    ph = jnp.asarray(_PHASE)

    flat = [x_t, fa, fb, ph]
    in_specs = [pl.BlockSpec((IN_DIM, tile_n), lambda i: (0, i)),
                _resident_spec(fa.shape),
                _resident_spec(fb.shape),
                _resident_spec(ph.shape)]
    for w, b in params:
        flat += [w, b]
        in_specs += [_resident_spec(w.shape), _resident_spec(b.shape)]

    dims = (ENC_DIM,) + HIDDEN + (OUT_DIM,)
    flops = 2 * n_pad * sum(a * b for a, b in zip(dims[:-1], dims[1:]))
    transcendentals = n_pad * (ENC_DIM + 2 * OUT_DIM)        # sin + (exp, recip) of sigmoid
    bytes_accessed = (n_pad * 4 * (IN_DIM + OUT_DIM)
                      + sum(int(w.size) * 2 + int(b.size) * 4 for w, b in params))

    kernel = partial(coordinate_mlp_kernel, bf16_act=_bf16_elementwise_ok())

    out_t = pl.pallas_call(
        kernel,
        out_shape=jax.ShapeDtypeStruct((OUT_DIM, n_pad), jnp.float32),
        grid=(n_pad // tile_n,),
        in_specs=in_specs,
        out_specs=pl.BlockSpec((OUT_DIM, tile_n), lambda i: (0, i)),
        compiler_params=pltpu.CompilerParams(
            dimension_semantics=("parallel",),
            vmem_limit_bytes=_vmem_limit_bytes(tile_n, params)),
        cost_estimate=pl.CostEstimate(
            flops=flops,
            transcendentals=transcendentals,
            bytes_accessed=bytes_accessed),
    )(*flat)

    return out_t[:, :n].T                                    # (N, OUT_DIM)


def init_params(key):
    """PyTorch-style init U(-1/sqrt(fan_in), 1/sqrt(fan_in)).
    Weights in (out, in) layout, stored bf16 (MXU-native); biases (out, 1) f32."""
    dims = (ENC_DIM,) + HIDDEN + (OUT_DIM,)
    params = []
    for fan_in, fan_out in zip(dims[:-1], dims[1:]):
        key, kw, kb = jax.random.split(key, 3)
        bound = 1.0 / math.sqrt(fan_in)
        w = jax.random.uniform(kw, (fan_out, fan_in), jnp.float32, -bound, bound)
        b = jax.random.uniform(kb, (fan_out, 1), jnp.float32, -bound, bound)
        params.append((w.astype(jnp.bfloat16), b))
    return params


def reference_forward(x, params):
    """Pure-JAX f32 reference mirroring the PyTorch module (same bf16 weights, upcast)."""
    feats = []
    for f in FREQ_BANDS:
        feats.append(jnp.sin(f * x))
        feats.append(jnp.cos(f * x))
    h = jnp.concatenate(feats, axis=-1)                      # (N, ENC_DIM)
    for i, (w, b) in enumerate(params):
        h = h @ w.astype(jnp.float32).T + b.reshape(1, -1)
        if i < len(params) - 1:
            h = jnp.maximum(h, 0.0)
    return jax.nn.sigmoid(h)


if __name__ == "__main__":
    key = jax.random.PRNGKey(0)
    key, kx = jax.random.split(key)

    N = 2048  # pixel coordinates (small; tiling scales to full images, e.g. 512*512)
    x = jax.random.uniform(kx, (N, IN_DIM), jnp.float32)     # normalized coords in [0, 1)

    params = init_params(key)

    out = coordinate_mlp(x, params)                          # auto tile: 1024 rows, 2 steps
    out = jax.block_until_ready(out)

    ref = reference_forward(x, params)
    assert out.shape == (N, OUT_DIM)
    # bf16 matmul inputs (f32 accumulation) -> relaxed tolerance vs the f32 reference.
    err = float(jnp.max(jnp.abs(out - ref)))
    assert err < 2e-2, f"mismatch vs JAX reference: max abs err = {err}"

    print("KERNEL_OK")
</pallas_src>

<mosaic_0001>
module attributes {stable_mosaic.version = 11 : i64} {
  func.func @coordinate_mlp_kernel(%arg0: i32, %arg1: memref<2x1024xf32, #tpu.memory_space<vmem>>, %arg2: memref<16x1xf32, #tpu.memory_space<vmem>>, %arg3: memref<16x1xf32, #tpu.memory_space<vmem>>, %arg4: memref<16x1xf32, #tpu.memory_space<vmem>>, %arg5: memref<256x16xbf16, #tpu.memory_space<vmem>>, %arg6: memref<256x1xf32, #tpu.memory_space<vmem>>, %arg7: memref<128x256xbf16, #tpu.memory_space<vmem>>, %arg8: memref<128x1xf32, #tpu.memory_space<vmem>>, %arg9: memref<64x128xbf16, #tpu.memory_space<vmem>>, %arg10: memref<64x1xf32, #tpu.memory_space<vmem>>, %arg11: memref<3x64xbf16, #tpu.memory_space<vmem>>, %arg12: memref<3x1xf32, #tpu.memory_space<vmem>>, %arg13: memref<3x1024xf32, #tpu.memory_space<vmem>>) attributes {dimension_semantics = [#tpu.dimension_semantics<parallel>], iteration_bounds = array<i64: 2>, scalar_prefetch = 0 : i64, scratch_operands = 0 : i64, tpu.core_type = #tpu.core_type<tc>, window_params = [{transform_indices = @transform_0, window_bounds = array<i64: 2, 1024>}, {pipeline_mode = #tpu.pipeline_mode<synchronous>, transform_indices = @transform_1, window_bounds = array<i64: 16, 1>}, {pipeline_mode = #tpu.pipeline_mode<synchronous>, transform_indices = @transform_2, window_bounds = array<i64: 16, 1>}, {pipeline_mode = #tpu.pipeline_mode<synchronous>, transform_indices = @transform_3, window_bounds = array<i64: 16, 1>}, {pipeline_mode = #tpu.pipeline_mode<synchronous>, transform_indices = @transform_4, window_bounds = array<i64: 256, 16>}, {pipeline_mode = #tpu.pipeline_mode<synchronous>, transform_indices = @transform_5, window_bounds = array<i64: 256, 1>}, {pipeline_mode = #tpu.pipeline_mode<synchronous>, transform_indices = @transform_6, window_bounds = array<i64: 128, 256>}, {pipeline_mode = #tpu.pipeline_mode<synchronous>, transform_indices = @transform_7, window_bounds = array<i64: 128, 1>}, {pipeline_mode = #tpu.pipeline_mode<synchronous>, transform_indices = @transform_8, window_bounds = array<i64: 64, 128>}, {pipeline_mode = #tpu.pipeline_mode<synchronous>, transform_indices = @transform_9, window_bounds = array<i64: 64, 1>}, {pipeline_mode = #tpu.pipeline_mode<synchronous>, transform_indices = @transform_10, window_bounds = array<i64: 3, 64>}, {pipeline_mode = #tpu.pipeline_mode<synchronous>, transform_indices = @transform_11, window_bounds = array<i64: 3, 1>}, {transform_indices = @transform_12, window_bounds = array<i64: 3, 1024>}]} {
    %c0 = arith.constant 0 : index
    %c0_0 = arith.constant 0 : index
    %0 = vector.load %arg1[%c0, %c0_0] : memref<2x1024xf32, #tpu.memory_space<vmem>>, vector<2x1024xf32>
    %1 = vector.extract_strided_slice %0 {offsets = [0, 0], sizes = [1, 1024], strides = [1, 1]} : vector<2x1024xf32> to vector<1x1024xf32>
    %2 = vector.extract_strided_slice %0 {offsets = [1, 0], sizes = [1, 1024], strides = [1, 1]} : vector<2x1024xf32> to vector<1x1024xf32>
    %c0_1 = arith.constant 0 : index
    %c0_2 = arith.constant 0 : index
    %3 = vector.load %arg2[%c0_1, %c0_2] : memref<16x1xf32, #tpu.memory_space<vmem>>, vector<16x1xf32>
    %4 = vector.broadcast %3 : vector<16x1xf32> to vector<16x1024xf32>
    %5 = vector.broadcast %1 : vector<1x1024xf32> to vector<16x1024xf32>
    %6 = arith.mulf %4, %5 : vector<16x1024xf32>
    %c0_3 = arith.constant 0 : index
    %c0_4 = arith.constant 0 : index
    %7 = vector.load %arg3[%c0_3, %c0_4] : memref<16x1xf32, #tpu.memory_space<vmem>>, vector<16x1xf32>
    %8 = vector.broadcast %7 : vector<16x1xf32> to vector<16x1024xf32>
    %9 = vector.broadcast %2 : vector<1x1024xf32> to vector<16x1024xf32>
    %10 = arith.mulf %8, %9 : vector<16x1024xf32>
    %11 = arith.addf %6, %10 : vector<16x1024xf32>
    %c0_5 = arith.constant 0 : index
    %c0_6 = arith.constant 0 : index
    %12 = vector.load %arg4[%c0_5, %c0_6] : memref<16x1xf32, #tpu.memory_space<vmem>>, vector<16x1xf32>
    %13 = vector.broadcast %12 : vector<16x1xf32> to vector<16x1024xf32>
    %14 = arith.addf %11, %13 : vector<16x1024xf32>
    %15 = math.sin %14 : vector<16x1024xf32>
    %16 = arith.truncf %15 : vector<16x1024xf32> to vector<16x1024xbf16>
    %c0_7 = arith.constant 0 : index
    %c0_8 = arith.constant 0 : index
    %17 = vector.load %arg5[%c0_7, %c0_8] : memref<256x16xbf16, #tpu.memory_space<vmem>>, vector<256x16xbf16>
    %cst = arith.constant dense<0.000000e+00> : vector<256x1024xf32>
    %18 = tpu.matmul %17, %16, %cst {dimension_numbers = #tpu.dot_dimension_numbers<[1], [0], [0], [1], [0, 0, 1, 1], [], []>} : vector<256x16xbf16>, vector<16x1024xbf16>, vector<256x1024xf32> -> vector<256x1024xf32>
    %c0_9 = arith.constant 0 : index
    %c0_10 = arith.constant 0 : index
    %19 = vector.load %arg6[%c0_9, %c0_10] : memref<256x1xf32, #tpu.memory_space<vmem>>, vector<256x1xf32>
    %20 = vector.broadcast %19 : vector<256x1xf32> to vector<256x1024xf32>
    %21 = arith.addf %18, %20 : vector<256x1024xf32>
    %cst_11 = arith.constant 0.000000e+00 : f32
    %22 = vector.broadcast %cst_11 : f32 to vector<256x1024xf32>
    %23 = arith.maximumf %21, %22 : vector<256x1024xf32>
    %24 = arith.truncf %23 : vector<256x1024xf32> to vector<256x1024xbf16>
    %c0_12 = arith.constant 0 : index
    %c0_13 = arith.constant 0 : index
    %25 = vector.load %arg7[%c0_12, %c0_13] : memref<128x256xbf16, #tpu.memory_space<vmem>>, vector<128x256xbf16>
    %cst_14 = arith.constant dense<0.000000e+00> : vector<128x1024xf32>
    %26 = tpu.matmul %25, %24, %cst_14 {dimension_numbers = #tpu.dot_dimension_numbers<[1], [0], [0], [1], [0, 0, 1, 1], [], []>} : vector<128x256xbf16>, vector<256x1024xbf16>, vector<128x1024xf32> -> vector<128x1024xf32>
    %c0_15 = arith.constant 0 : index
    %c0_16 = arith.constant 0 : index
    %27 = vector.load %arg8[%c0_15, %c0_16] : memref<128x1xf32, #tpu.memory_space<vmem>>, vector<128x1xf32>
    %28 = vector.broadcast %27 : vector<128x1xf32> to vector<128x1024xf32>
    %29 = arith.addf %26, %28 : vector<128x1024xf32>
    %cst_17 = arith.constant 0.000000e+00 : f32
    %30 = vector.broadcast %cst_17 : f32 to vector<128x1024xf32>
    %31 = arith.maximumf %29, %30 : vector<128x1024xf32>
    %32 = arith.truncf %31 : vector<128x1024xf32> to vector<128x1024xbf16>
    %c0_18 = arith.constant 0 : index
    %c0_19 = arith.constant 0 : index
    %33 = vector.load %arg9[%c0_18, %c0_19] : memref<64x128xbf16, #tpu.memory_space<vmem>>, vector<64x128xbf16>
    %cst_20 = arith.constant dense<0.000000e+00> : vector<64x1024xf32>
    %34 = tpu.matmul %33, %32, %cst_20 {dimension_numbers = #tpu.dot_dimension_numbers<[1], [0], [0], [1], [0, 0, 1, 1], [], []>} : vector<64x128xbf16>, vector<128x1024xbf16>, vector<64x1024xf32> -> vector<64x1024xf32>
    %c0_21 = arith.constant 0 : index
    %c0_22 = arith.constant 0 : index
    %35 = vector.load %arg10[%c0_21, %c0_22] : memref<64x1xf32, #tpu.memory_space<vmem>>, vector<64x1xf32>
    %36 = vector.broadcast %35 : vector<64x1xf32> to vector<64x1024xf32>
    %37 = arith.addf %34, %36 : vector<64x1024xf32>
    %cst_23 = arith.constant 0.000000e+00 : f32
    %38 = vector.broadcast %cst_23 : f32 to vector<64x1024xf32>
    %39 = arith.maximumf %37, %38 : vector<64x1024xf32>
    %40 = arith.truncf %39 : vector<64x1024xf32> to vector<64x1024xbf16>
    %c0_24 = arith.constant 0 : index
    %c0_25 = arith.constant 0 : index
    %41 = vector.load %arg11[%c0_24, %c0_25] : memref<3x64xbf16, #tpu.memory_space<vmem>>, vector<3x64xbf16>
    %cst_26 = arith.constant dense<0.000000e+00> : vector<3x1024xf32>
    %42 = tpu.matmul %41, %40, %cst_26 {dimension_numbers = #tpu.dot_dimension_numbers<[1], [0], [0], [1], [0, 0, 1, 1], [], []>} : vector<3x64xbf16>, vector<64x1024xbf16>, vector<3x1024xf32> -> vector<3x1024xf32>
    %c0_27 = arith.constant 0 : index
    %c0_28 = arith.constant 0 : index
    %43 = vector.load %arg12[%c0_27, %c0_28] : memref<3x1xf32, #tpu.memory_space<vmem>>, vector<3x1xf32>
    %44 = vector.broadcast %43 : vector<3x1xf32> to vector<3x1024xf32>
    %45 = arith.addf %42, %44 : vector<3x1024xf32>
    %46 = arith.negf %45 : vector<3x1024xf32>
    %47 = math.exp %46 : vector<3x1024xf32>
    %cst_29 = arith.constant 1.000000e+00 : f32
    %48 = vector.broadcast %cst_29 : f32 to vector<3x1024xf32>
    %49 = arith.addf %48, %47 : vector<3x1024xf32>
    %50 = arith.divf %48, %49 : vector<3x1024xf32>
    %c0_30 = arith.constant 0 : index
    %c0_31 = arith.constant 0 : index
    %51 = vector.load %arg13[%c0_30, %c0_31] : memref<3x1024xf32, #tpu.memory_space<vmem>>, vector<3x1024xf32>
    tpu.vector_store %arg13[%c0_30, %c0_31], %50 {strides = array<i32>} : memref<3x1024xf32, #tpu.memory_space<vmem>>, vector<3x1024xf32>,
    return
  }
  func.func @transform_0(%arg0: i32) -> (i32, i32) {
    %c0_i32 = arith.constant 0 : i32
    %c0_i32_0 = arith.constant 0 : i32
    return %c0_i32, %arg0 : i32, i32
  }
  func.func @transform_1(%arg0: i32) -> (i32, i32) {
    %c0_i32 = arith.constant 0 : i32
    %c0_i32_0 = arith.constant 0 : i32
    %c0_i32_1 = arith.constant 0 : i32
    return %c0_i32, %c0_i32_0 : i32, i32
  }
  func.func @transform_2(%arg0: i32) -> (i32, i32) {
    %c0_i32 = arith.constant 0 : i32
    %c0_i32_0 = arith.constant 0 : i32
    %c0_i32_1 = arith.constant 0 : i32
    return %c0_i32, %c0_i32_0 : i32, i32
  }
  func.func @transform_3(%arg0: i32) -> (i32, i32) {
    %c0_i32 = arith.constant 0 : i32
    %c0_i32_0 = arith.constant 0 : i32
    %c0_i32_1 = arith.constant 0 : i32
    return %c0_i32, %c0_i32_0 : i32, i32
  }
  func.func @transform_4(%arg0: i32) -> (i32, i32) {
    %c0_i32 = arith.constant 0 : i32
    %c0_i32_0 = arith.constant 0 : i32
    %c0_i32_1 = arith.constant 0 : i32
    return %c0_i32, %c0_i32_0 : i32, i32
  }
  func.func @transform_5(%arg0: i32) -> (i32, i32) {
    %c0_i32 = arith.constant 0 : i32
    %c0_i32_0 = arith.constant 0 : i32
    %c0_i32_1 = arith.constant 0 : i32
    return %c0_i32, %c0_i32_0 : i32, i32
  }
  func.func @transform_6(%arg0: i32) -> (i32, i32) {
    %c0_i32 = arith.constant 0 : i32
    %c0_i32_0 = arith.constant 0 : i32
    %c0_i32_1 = arith.constant 0 : i32
    return %c0_i32, %c0_i32_0 : i32, i32
  }
  func.func @transform_7(%arg0: i32) -> (i32, i32) {
    %c0_i32 = arith.constant 0 : i32
    %c0_i32_0 = arith.constant 0 : i32
    %c0_i32_1 = arith.constant 0 : i32
    return %c0_i32, %c0_i32_0 : i32, i32
  }
  func.func @transform_8(%arg0: i32) -> (i32, i32) {
    %c0_i32 = arith.constant 0 : i32
    %c0_i32_0 = arith.constant 0 : i32
    %c0_i32_1 = arith.constant 0 : i32
    return %c0_i32, %c0_i32_0 : i32, i32
  }
  func.func @transform_9(%arg0: i32) -> (i32, i32) {
    %c0_i32 = arith.constant 0 : i32
    %c0_i32_0 = arith.constant 0 : i32
    %c0_i32_1 = arith.constant 0 : i32
    return %c0_i32, %c0_i32_0 : i32, i32
  }
  func.func @transform_10(%arg0: i32) -> (i32, i32) {
    %c0_i32 = arith.constant 0 : i32
    %c0_i32_0 = arith.constant 0 : i32
    %c0_i32_1 = arith.constant 0 : i32
    return %c0_i32, %c0_i32_0 : i32, i32
  }
  func.func @transform_11(%arg0: i32) -> (i32, i32) {
    %c0_i32 = arith.constant 0 : i32
    %c0_i32_0 = arith.constant 0 : i32
    %c0_i32_1 = arith.constant 0 : i32
    return %c0_i32, %c0_i32_0 : i32, i32
  }
  func.func @transform_12(%arg0: i32) -> (i32, i32) {
    %c0_i32 = arith.constant 0 : i32
    %c0_i32_0 = arith.constant 0 : i32
    return %c0_i32, %arg0 : i32, i32
  }
}

</mosaic_0001>

<bundles_post_ra>
// kernel: tpu_custom_call.1
= control target key start
LH: loop header
LB: loop body
LE: loop exit
PB: predicated region body
PF: predicated region fallthrough
CT: control target
= control target key end

     0   :  { %s9089_s0 = inlined_call_operand.vmem [shape: f32[2,2048], index: 0, kind: input, shape index: {}]   ;;  %s9090_s1 = inlined_call_operand.vmem [shape: f32[16,1], index: 1, kind: input, shape index: {}]   ;;  %s9091_s2 = inlined_call_operand.vmem [shape: f32[16,1], index: 2, kind: input, shape index: {}]   ;;  %s9092_s3 = inlined_call_operand.vmem [shape: f32[16,1], index: 3, kind: input, shape index: {}]   ;;  %s9093_s4 = inlined_call_operand.vmem [shape: bf16[256,16], index: 4, kind: input, shape index: {}]   ;;  %s9094_s5 = inlined_call_operand.vmem [shape: f32[256,1], index: 5, kind: input, shape index: {}]   ;;  %s9095_s6 = inlined_call_operand.vmem [shape: bf16[128,256], index: 6, kind: input, shape index: {}]   ;;  %s9096_s7 = inlined_call_operand.vmem [shape: f32[128,1], index: 7, kind: input, shape index: {}]   ;;  %s9097_s8 = inlined_call_operand.vmem [shape: bf16[64,128], index: 8, kind: input, shape index: {}]   ;;  %s9098_s9 = inlined_call_operand.vmem [shape: f32[64,1], index: 9, kind: input, shape index: {}]   ;;  %s9099_s10 = inlined_call_operand.vmem [shape: bf16[3,64], index: 10, kind: input, shape index: {}]   ;;  %s9100_s11 = inlined_call_operand.vmem [shape: f32[3,1], index: 11, kind: input, shape index: {}]   ;;  %s9101_s12 = inlined_call_operand.hbm [shape: f32[3,2048], index: 12, kind: output, shape index: {}]  }
   0x1   :  { %9119 = sst [smem:[#allocation5_spill]] %s9090_s1 }
   0x2   :  { %9120 = sst [smem:[#allocation6_spill]] %s9091_s2 }
   0x3   :  { %17 = vsyncpa [#allocation3], 0 }
   0x4   :  { %19 = vsyncpa [#allocation3 + $0x1], 0  ;;  %s6050_s21 = smov 0   ;;  %s6052_s22 = smov 0  }
   0x5   :  { %s6054_s23 = smov 0   ;;  %s6056_s24 = smov 0  }
   0x6 LB: > { %s6071_s25 = sadd.s32 4294967295, %s5975_s24   ;;  %s5466_s26 = sadd.s32 4294967294, %s5975_s24   ;;  %s5975_s24 = sphi %s6056_s24, %s9171_s24   ;;  %s5971_s23 = sphi %s6054_s23, %s9170_s23   ;;  %s5967_s22 = sphi %s6052_s22, %s9169_s22   ;;  %s5963_s21 = sphi %s6050_s21, %s9168_s21  }
   0x7   : > { %s6075_s27 = sadd.s32 1, %s5975_s24   ;;  %s289_s28 = sadd.s32 1, %s5971_s23 }
   0x8   : > { %s286_s29 = ssub.s32 %s5975_s24, %s6075_s27  ;;  %p299_p0 = scmp.ne.s32.totalorder %s5971_s23, %s5967_s22 }
   0x9   : > { %p287_p1 = scmp.eq.s32.totalorder %s286_s29, 0  ;;  %p300_p2 = scmp.eq.s32.totalorder %s6071_s25, 1 }
   0xa   : > { %p305_p3 = scmp.ne.s32.totalorder %s5967_s22, %s5963_s21  ;;  %p306_p4 = scmp.eq.s32.totalorder %s5466_s26, 1 }
   0xb   : > { %s6086_s30 = scalar_select %p287_p1, %s5971_s23, %s289_s28  }
   0xc   : > { %p6088_p5 = por %p300_p2, %p299_p0  ;;  %p6092_p6 = por %p306_p4, %p305_p3 }
   0xd   : > { %p5469_p7 = scmp.ge.s32.totalorder %s5975_s24, 1  ;;  %p366_p8 = scmp.lt.s32.totalorder %s5975_s24, 3 }
   0xf   : > { %p367_p9 = pnand %p5469_p7, %p366_p8 }
  0x10   : > { %s9123_s2 = sld [smem:[#allocation6_spill]] (!%p367_p9)  ;;  %s9124_s1 = sld [smem:[#allocation5_spill]] (!%p367_p9)  ;;  %v9102_v2 = vmov (!%p367_p9), 0   ;;  %v637_v5 = vld [vmem:[%s9092_s3 + $0x8] sm:$0xff] (!%p367_p9)  ;;  %v636_v6 = vld [vmem:[%s9092_s3] sm:$0xff] (!%p367_p9)  ;;  %v432_v7 = vlaneseq (!%p367_p9)  ;;  %v2371_v11 = vld [vmem:[%s9094_s5 + $0x18] sm:$0xff] (!%p367_p9) }
  0x11   : > { %370 = sbr.rel (%p367_p9) target bundleno = 1739 (0x6cb), region = 68  ;;  %5766 = vset.pattern.permute.xlu1 (!%p367_p9), %v9102_v2  ;;  %5765 = vset.pattern.permute.xlu0 (!%p367_p9), %v9102_v2  ;;  %s5471_s29 = sshll.u32 (!%p367_p9), %s6071_s25, 3  ;;  %v2369_v8 = vld [vmem:[%s9094_s5 + $0x8] sm:$0xff] (!%p367_p9)  ;;  %v2368_v9 = vld [vmem:[%s9094_s5] sm:$0xff] (!%p367_p9)  ;;  %v2370_v12 = vld [vmem:[%s9094_s5 + $0x10] sm:$0xff] (!%p367_p9) }
  0x12   : > { %2721 = vmatprep.mubr.bf16.mxu0 (!%p367_p9), %v9102_v2  ;;  %2914 = vmatprep.mubr.bf16.mxu1 (!%p367_p9), %v9102_v2  ;;  %p409_p10 = scmp.lt.s32.totalorder (!%p367_p9), %s5471_s29, 15  ;;  %v6127_v10 = vshrl.u32 (!%p367_p9), %v432_v7, 7  ;;  %v2373_v15 = vld [vmem:[%s9094_s5 + $0x28] sm:$0xff] (!%p367_p9)  ;;  %v2372_v16 = vld [vmem:[%s9094_s5 + $0x20] sm:$0xff] (!%p367_p9)  ;;  %v2375_v21 = vld [vmem:[%s9094_s5 + $0x38] sm:$0xff] (!%p367_p9)  ;;  %s405_s17 = sand.u32 (!%p367_p9), 1, %s5967_s22  }
  0x13   : > { %v2374_v22 = vld [vmem:[%s9094_s5 + $0x30] sm:$0xff] (!%p367_p9)  ;;  %v2377_v38 = vld [vmem:[%s9094_s5 + $0x48] sm:$0xff] (!%p367_p9)  ;;  %v2376_v39 = vld [vmem:[%s9094_s5 + $0x40] sm:$0xff] (!%p367_p9)  ;;  %s5654_s18 = sshll.u32 (!%p367_p9), %s6071_s25, 9  ;;  %s5393_s15 = scalar_lea.sflag (!%p367_p9), [#allocation3], %s405_s17 }
  0x14   : > { %v6136_v13 = vsub.s32 (!%p367_p9), 1, %v6127_v10  ;;  %v542_v14 = vsub.s32 (!%p367_p9), 5, %v6127_v10  ;;  %v538_v17 = vsub.s32 (!%p367_p9), 3, %v6127_v10  ;;  %v546_v18 = vsub.s32 (!%p367_p9), 7, %v6127_v10  ;;  %v2379_v53 = vld [vmem:[%s9094_s5 + $0x58] sm:$0xff] (!%p367_p9)  ;;  %v2378_v54 = vld [vmem:[%s9094_s5 + $0x50] sm:$0xff] (!%p367_p9)  ;;  %s9044_s28 = scalar_lea.hbm (!%p367_p9), %s9101_s12, %s5654_s18 }
  0x15   : > { %v6151_v19 = vsub.s32 (!%p367_p9), 0, %v6127_v10  ;;  %v442_v20 = vsub.s32 (!%p367_p9), 4, %v6127_v10  ;;  %v438_v25 = vsub.s32 (!%p367_p9), 2, %v6127_v10  ;;  %v446_v26 = vsub.s32 (!%p367_p9), 6, %v6127_v10  ;;  %v2381_v55 = vld [vmem:[%s9094_s5 + $0x68] sm:$0xff] (!%p367_p9)  ;;  %v2380_v56 = vld [vmem:[%s9094_s5 + $0x60] sm:$0xff] (!%p367_p9) }
  0x16   : > { %v520_v0 = vld [vmem:[%s9123_s2] sm:$0xff] (!%p367_p9)  ;;  %v521_v3 = vld [vmem:[%s9123_s2 + $0x8] sm:$0xff] (!%p367_p9)  ;;  %v2383_v57 = vld [vmem:[%s9094_s5 + $0x78] sm:$0xff] (!%p367_p9)  ;;  %s5984_s25 = smov (!%p367_p9), [#allocation2]  }
  0x17   : > { %v418_v1 = vld [vmem:[%s9124_s1] sm:$0xff] (!%p367_p9)  ;;  %524 = vperm.xlu1 (!%p367_p9), %5766, %v520_v0   ;;  %v419_v4 = vld [vmem:[%s9124_s1 + $0x8] sm:$0xff] (!%p367_p9)  ;;  %v2382_v58 = vld [vmem:[%s9094_s5 + $0x70] sm:$0xff] (!%p367_p9) }
  0x18   : > { %422 = vperm.xlu0 %5765, %v418_v1   ;;  %s9173_s29 = smov (!%p409_p10, %s5471_s29), 15  ;;  %v2385_v59 = vld [vmem:[%s9094_s5 + $0x88] sm:$0xff]  ;;  %v2384_v60 = vld [vmem:[%s9094_s5 + $0x80] sm:$0xff]  ;;  %v2387_v61 = vld [vmem:[%s9094_s5 + $0x98] sm:$0xff] }
  0x19   : > { %s5472_s1 = sshll.u32 %s9173_s29, 1  ;;  %v2386_v62 = vld [vmem:[%s9094_s5 + $0x90] sm:$0xff]  ;;  %v2389_v63 = vld [vmem:[%s9094_s5 + $0xa8] sm:$0xff]  ;;  %v2388_v0 = vld [vmem:[%s9094_s5 + $0xa0] sm:$0xff]  ;;  %s5917_s29 = sshll.u32 %s5984_s25, 4  ;;  %s5918_s29 = int_to_ptr.vmem [resolvable:$false] %s5917_s29 }
  0x1a   : > { %s412_s26 = scalar_lea.vmem %s9089_s0, %s5472_s1  ;;  %v2391_v1 = vld [vmem:[%s9094_s5 + $0xb8] sm:$0xff]  ;;  %v2394_v7 = vld [vmem:[%s9094_s5 + $0xd0] sm:$0xff]  ;;  %s5470_s1 = sshll.u32 %s405_s17, 5 }
  0x1b   : > { %529 = vperm.xlu1 %5766, %v521_v3   ;;  %v6160_v23 = vld [vmem:[%s412_s26] sm:$0xff]  ;;  %v417_v24 = vld [vmem:[%s412_s26 + $0x8] sm:$0xff]  ;;  %v2390_v3 = vld [vmem:[%s9094_s5 + $0xb0] sm:$0xff]  ;;  %s9034_s2 = scalar_lea.vmem [#allocation2], %s5470_s1  ;;  %s5919_s1 = scalar_lea.vmem %s5918_s29, 1024 }
  0x1c   : > { %427 = vperm.xlu0 %5765, %v419_v4   ;;  %v535_v27 = vrot.slane %v6160_v23, %v6136_v13  ;;  %v543_v28 = vrot.slane %v6160_v23, %v542_v14  ;;  %v551_v29 = vrot.slane %v417_v24, %v6136_v13  ;;  %v555_v30 = vrot.slane %v417_v24, %v538_v17  ;;  %v2393_v4 = vld [vmem:[%s9094_s5 + $0xc8] sm:$0xff]  ;;  %s5407_s19 = sshll.u32 %s9034_s2, 4  ;;  %s9046_s19 = int_to_ptr.vmem [resolvable:$true] %s5407_s19 }
  0x1d   : > { %v559_v31 = vrot.slane %v417_v24, %v542_v14  ;;  %v563_v32 = vrot.slane %v417_v24, %v546_v18  ;;  %v435_v33 = vrot.slane %v6160_v23, %v6151_v19  ;;  %v443_v37 = vrot.slane %v6160_v23, %v442_v20  ;;  %v3862_v14 = vld [vmem:[%s9096_s7 + $0x8] sm:$0xff]  ;;  %s5913_s16 = scalar_lea.vmem %s9046_s19, 512  ;;  %p5920_p0 = scmp.lt.s32.totalorder %s9046_s19, %s5918_s29 }
  0x1e   : > { %v6175_v34 = vrot.slane %v535_v27, %v6136_v13  ;;  %v6178_v35 = vrot.slane %v543_v28, %v6136_v13  ;;  %v6181_v36 = vrot.slane %v551_v29, %v6136_v13  ;;  %v6191_v40 = vrot.slane %v555_v30, %v6136_v13  ;;  %v3867_v27 = vld [vmem:[%s9096_s7 + $0x30] sm:$0xff]  ;;  %v3870_v28 = vld [vmem:[%s9096_s7 + $0x48] sm:$0xff]  ;;  %v3869_v29 = vld [vmem:[%s9096_s7 + $0x40] sm:$0xff]  ;;  %p5914_p11 = scmp.ne.s32.totalorder %s9046_s19, %s5913_s16  ;;  %p5921_p1 = scmp.lt.s32.totalorder %s5919_s1, %s5913_s16 }
  0x1f   : > { %645 = vperm.xlu1 %5766, %v637_v5   ;;  %v6194_v41 = vrot.slane %v559_v31, %v6136_v13  ;;  %v6197_v42 = vrot.slane %v563_v32, %v6136_v13  ;;  %v451_v43 = vrot.slane %v417_v24, %v6151_v19  ;;  %v455_v44 = vrot.slane %v417_v24, %v438_v25  ;;  %v2392_v5 = vld [vmem:[%s9094_s5 + $0xc0] sm:$0xff]  ;;  %v3872_v30 = vld [vmem:[%s9096_s7 + $0x58] sm:$0xff]  ;;  %v3871_v31 = vld [vmem:[%s9096_s7 + $0x50] sm:$0xff] }
  0x20   : > { %640 = vperm.xlu0 %5765, %v636_v6   ;;  %v459_v45 = vrot.slane %v417_v24, %v442_v20  ;;  %v463_v46 = vrot.slane %v417_v24, %v446_v26  ;;  %v6205_v47 = vrot.slane %v435_v33, %v6151_v19  ;;  %v6208_v48 = vrot.slane %v443_v37, %v6151_v19  ;;  %v2395_v6 = vld [vmem:[%s9094_s5 + $0xd8] sm:$0xff]  ;;  %v3863_v20 = vld [vmem:[%s9096_s7 + $0x10] sm:$0xff]  ;;  %v3874_v32 = vld [vmem:[%s9096_s7 + $0x68] sm:$0xff]  ;;  %p5915_p12 = pnand %p5914_p11, %p6088_p5  ;;  %p5922_p2 = por %p5921_p1, %p5920_p0 }
  0x21   : > { %v6211_v49 = vrot.slane %v451_v43, %v6151_v19  ;;  %v6214_v50 = vrot.slane %v455_v44, %v6151_v19  ;;  %v3868_v24 = vld [vmem:[%s9096_s7 + $0x38] sm:$0xff]  ;;  %v3873_v33 = vld [vmem:[%s9096_s7 + $0x60] sm:$0xff] }
  0x22   : > { %v6217_v51 = vrot.slane %v459_v45, %v6151_v19  ;;  %v6220_v52 = vrot.slane %v463_v46, %v6151_v19  ;;  %v3876_v37 = vld [vmem:[%s9096_s7 + $0x78] sm:$0xff]  ;;  %v4689_v43 = vld [vmem:[%s9098_s9] sm:$0xff]  ;;  %v4691_v45 = vld [vmem:[%s9098_s9 + $0x10] sm:$0xff]  ;;  %p5916_p13 = pneg %p5915_p12 }
  0x23   : > { %2407 = vperm.xlu1 %5766, %v2369_v8   ;;  %v2397_v8 = vld [vmem:[%s9094_s5 + $0xe8] sm:$0xff]  ;;  %v4692_v44 = vld [vmem:[%s9098_s9 + $0x18] sm:$0xff] }
  0x24   : > { %2402 = vperm.xlu0 %5765, %v2368_v9   ;;  %v2396_v9 = vld [vmem:[%s9094_s5 + $0xe0] sm:$0xff]  ;;  %v4694_v46 = vld [vmem:[%s9098_s9 + $0x28] sm:$0xff]  ;;  %p5923_p3 = pnand %p5922_p2, %p5916_p13 }
  0x27   : > { %2417 = vperm.xlu1 %5766, %v2371_v11   ;;  %v2399_v11 = vld [vmem:[%s9094_s5 + $0xf8] sm:$0xff] }
  0x28   : > { %2412 = vperm.xlu0 %5765, %v2370_v12   ;;  %v2398_v12 = vld [vmem:[%s9094_s5 + $0xf0] sm:$0xff] }
  0x2b   : > { %2427 = vperm.xlu1 %5766, %v2373_v15   ;;  %v3861_v15 = vld [vmem:[%s9096_s7] sm:$0xff] }
  0x2c   : > { %2422 = vperm.xlu0 %5765, %v2372_v16   ;;  %v3864_v16 = vld [vmem:[%s9096_s7 + $0x18] sm:$0xff] }
  0x2f   : > { %2437 = vperm.xlu1 %5766, %v2375_v21   ;;  %v3866_v21 = vld [vmem:[%s9096_s7 + $0x28] sm:$0xff] }
  0x30   : > { %2432 = vperm.xlu0 %5765, %v2374_v22   ;;  %v3865_v22 = vld [vmem:[%s9096_s7 + $0x20] sm:$0xff] }
  0x33   : > { %2447 = vperm.xlu1 %5766, %v2377_v38   ;;  %v3875_v38 = vld [vmem:[%s9096_s7 + $0x70] sm:$0xff] }
  0x34   : > { %2442 = vperm.xlu0 %5765, %v2376_v39   ;;  %v4690_v39 = vld [vmem:[%s9098_s9 + $0x8] sm:$0xff] }
  0x37   : > { %2457 = vperm.xlu1 %5766, %v2379_v53   ;;  %v4693_v53 = vld [vmem:[%s9098_s9 + $0x20] sm:$0xff] }
  0x38   : > { %2452 = vperm.xlu0 %5765, %v2378_v54   ;;  %v4696_v54 = vld [vmem:[%s9098_s9 + $0x38] sm:$0xff] }
  0x3b   : > { %2467 = vperm.xlu1 %5766, %v2381_v55   ;;  %v4695_v55 = vld [vmem:[%s9098_s9 + $0x30] sm:$0xff] }
  0x3c   : > { %2462 = vperm.xlu0 %5765, %v2380_v56   ;;  %v5150_v56 = vld [vmem:[%s9100_s11] sm:$0x7] }
  0x3f   : > { %2477 = vperm.xlu1 %5766, %v2383_v57   ;;  %v439_v57 = vrot.slane %v6160_v23, %v438_v25 }
  0x40   : > { %2472 = vperm.xlu0 %5765, %v2382_v58   ;;  %v539_v58 = vrot.slane %v6160_v23, %v538_v17 }
  0x43   : > { %2487 = vperm.xlu1 %5766, %v2385_v59  }
  0x44   : > { %2482 = vperm.xlu0 %5765, %v2384_v60  }
  0x47   : > { %2497 = vperm.xlu1 %5766, %v2387_v61   ;;  %v479_v61 = vrot.slane %v439_v57, %v6151_v19 }
  0x48   : > { %2492 = vperm.xlu0 %5765, %v2386_v62   ;;  %v579_v62 = vrot.slane %v539_v58, %v6136_v13 }
  0x4b   : > { %2507 = vperm.xlu1 %5766, %v2389_v63  }
  0x4c   : > { %2502 = vperm.xlu0 %5765, %v2388_v0  }
  0x4f   : > { %2517 = vperm.xlu1 %5766, %v2391_v1  }
  0x50   : > { %2512 = vperm.xlu0 %5765, %v2390_v3  }
  0x53   : > { %2527 = vperm.xlu1 %5766, %v2393_v4  }
  0x54   : > { %2522 = vperm.xlu0 %5765, %v2392_v5  }
  0x57   : > { %2537 = vperm.xlu1 %5766, %v2395_v6  }
  0x58   : > { %2532 = vperm.xlu0 %5765, %v2394_v7  }
  0x5b   : > { %2547 = vperm.xlu1 %5766, %v2397_v8  }
  0x5c   : > { %2542 = vperm.xlu0 %5765, %v2396_v9  }
  0x5f   : > { %2557 = vperm.xlu1 %5766, %v2399_v11  }
  0x60   : > { %2552 = vperm.xlu0 %5765, %v2398_v12  }
  0x63   : > { %3884 = vperm.xlu1 %5766, %v3862_v14  }
  0x64   : > { %3879 = vperm.xlu0 %5765, %v3861_v15  }
  0x67   : > { %3894 = vperm.xlu1 %5766, %v3864_v16  }
  0x68   : > { %3889 = vperm.xlu0 %5765, %v3863_v20  }
  0x6b   : > { %3904 = vperm.xlu1 %5766, %v3866_v21  }
  0x6c   : > { %3899 = vperm.xlu0 %5765, %v3865_v22  }
  0x6f   : > { %3914 = vperm.xlu1 %5766, %v3868_v24  }
  0x70   : > { %3909 = vperm.xlu0 %5765, %v3867_v27  }
  0x73   : > { %3924 = vperm.xlu1 %5766, %v3870_v28  }
  0x74   : > { %3919 = vperm.xlu0 %5765, %v3869_v29  }
  0x77   : > { %3934 = vperm.xlu1 %5766, %v3872_v30  }
  0x78   : > { %3929 = vperm.xlu0 %5765, %v3871_v31  }
  0x7b   : > { %3944 = vperm.xlu1 %5766, %v3874_v32  }
  0x7c   : > { %3939 = vperm.xlu0 %5765, %v3873_v33   ;;  %v547_v33 = vrot.slane %v6160_v23, %v546_v18 }
  0x7f   : > { %3954 = vperm.xlu1 %5766, %v3876_v37  }
  0x80   : > { %3949 = vperm.xlu0 %5765, %v3875_v38  }
  0x83   : > { %4704 = vperm.xlu1 %5766, %v4690_v39  }
  0x84   : > { %4699 = vperm.xlu0 %5765, %v4689_v43  }
  0x87   : > { %4714 = vperm.xlu1 %5766, %v4692_v44  }
  0x88   : > { %4709 = vperm.xlu0 %5765, %v4691_v45   ;;  %v6475_v45 = vrot.slane %v547_v33, %v6136_v13 }
  0x8b   : > { %4724 = vperm.xlu1 %5766, %v4694_v46  }
  0x8c   : > { %4719 = vperm.xlu0 %5765, %v4693_v53  }
  0x8f   : > { %4734 = vperm.xlu1 %5766, %v4696_v54  }
  0x90   : > { %4729 = vperm.xlu0 %5765, %v4695_v55  }
  0x94   : > { %5153 = vperm.xlu0 %5765, %v5150_v56  }
  0x96   : > { %v525_v59 = vpop.permute.xlu1 %524 }
  0x97   : > { %v423_v60 = vpop.permute.xlu0 %422  ;;  %v6372_v63 = vmul.f32 %v6175_v34, %v525_v59  ;;  %v6375_v0 = vmul.f32 %v6178_v35, %v525_v59  ;;  %v608_v1 = vmul.f32 %v6181_v36, %v525_v59  ;;  %v6379_v25 = vmul.f32 %v6191_v40, %v525_v59 }
  0x98   : > { %v610_v17 = vmul.f32 %v6194_v41, %v525_v59  ;;  %v6383_v3 = vmul.f32 %v6197_v42, %v525_v59  ;;  %v6386_v4 = vmul.f32 %v6205_v47, %v423_v60  ;;  %v6389_v5 = vmul.f32 %v6208_v48, %v423_v60 }
  0x99   : > { %v508_v6 = vmul.f32 %v6211_v49, %v423_v60  ;;  %v6393_v7 = vmul.f32 %v6214_v50, %v423_v60  ;;  %v510_v8 = vmul.f32 %v6217_v51, %v423_v60  ;;  %v6397_v9 = vmul.f32 %v6220_v52, %v423_v60 }
  0x9a   : > { %v6399_v11 = vpop.permute.xlu1 %529  ;;  %v505_v14 = vmul.f32 %v479_v61, %v423_v60  ;;  %v605_v15 = vmul.f32 %v579_v62, %v525_v59  ;;  %v607_v53 = vmul.f32 %v6475_v45, %v525_v59 }
  0x9b   : > { %v6401_v12 = vpop.permute.xlu0 %427  ;;  %v6405_v16 = vmul.f32 %v6175_v34, %v6399_v11  ;;  %v6409_v20 = vmul.f32 %v6178_v35, %v6399_v11  ;;  %v616_v21 = vmul.f32 %v6181_v36, %v6399_v11  ;;  %v6415_v22 = vmul.f32 %v6191_v40, %v6399_v11 }
  0x9c   : > { %v618_v24 = vmul.f32 %v6194_v41, %v6399_v11  ;;  %v6421_v27 = vmul.f32 %v6197_v42, %v6399_v11  ;;  %v6425_v34 = vmul.f32 %v6205_v47, %v6401_v12  ;;  %v6429_v35 = vmul.f32 %v6208_v48, %v6401_v12 }
  0x9d   : > { %v516_v36 = vmul.f32 %v6211_v49, %v6401_v12  ;;  %v6435_v40 = vmul.f32 %v6214_v50, %v6401_v12  ;;  %v518_v41 = vmul.f32 %v6217_v51, %v6401_v12  ;;  %v6441_v42 = vmul.f32 %v6220_v52, %v6401_v12 }
  0x9e   : > { %v6445_v28 = vadd.f32 %v608_v1, %v508_v6  ;;  %v6447_v48 = vadd.f32 %v610_v17, %v510_v8  ;;  %v513_v29 = vmul.f32 %v479_v61, %v6401_v12  ;;  %v613_v49 = vmul.f32 %v579_v62, %v6399_v11  ;;  %v6464_v37 = vpop.permute.xlu1 %645 }
  0x9f   : > { %v6443_v47 = vpop.permute.xlu0 %640  ;;  %v6451_v30 = vadd.f32 %v616_v21, %v516_v36  ;;  %v6453_v50 = vadd.f32 %v618_v24, %v518_v41  ;;  %v621_v31 = vadd.f32 %v605_v15, %v505_v14  ;;  %v447_v52 = vrot.slane %v6160_v23, %v446_v26 }
  0xa0   : > { %v629_v51 = vadd.f32 %v613_v49, %v513_v29  ;;  %v5978_v6 = vmov 683565275   ;;  %v9116_v21 = vmov 2475754826   ;;  %v9114_v36 = vmov 2131351028  }
  0xa1   : > { %v6456_v32 = vadd.f32 %v6443_v47, %v621_v31  ;;  %v6472_v44 = vrot.slane %v447_v52, %v6151_v19  ;;  %v9111_v29 = vmov 2102212464   ;;  %v9106_v31 = vmov 920167782  }
  0xa2   : > { %v6468_v39 = vadd.f32 %v6464_v37, %v629_v51 }
  0xa3   : > { %v771_v38 = vand.u32 2139095040, %v6456_v32  ;;  %v9105_v43 = vand.u32 2147483647, %v6456_v32  ;;  %v507_v23 = vmul.f32 %v6472_v44, %v423_v60  ;;  %vm770_vm13 = vcmp.lt.s32.totalorder %v6456_v32, 0 }
  0xa4   : > { %v9104_v18 = vand.u32 2147483647, %v6468_v39  ;;  %v1603_v55 = vand.u32 2139095040, %v6468_v39  ;;  %vm1602_vm15 = vcmp.lt.s32.totalorder %v6468_v39, 0 }
  0xa5   : > { %v772_v26 = vshrl.u32 %v771_v38, 23  ;;  %v775_v10 = vand.u32 8388607, %v9105_v43  ;;  %v623_v13 = vadd.f32 %v607_v53, %v507_v23 }
  0xa6   : > { %v6485_v19 = vand.u32 8388607, %v9104_v18  ;;  %v1604_v57 = vshrl.u32 %v1603_v55, 23 }
  0xa7   : > { %v5477_v46 = vadd.s32 4294967169, %v772_v26  ;;  %v776_v56 = vor.u32 8388608, %v775_v10  ;;  %v6488_v61 = vadd.f32 %v6443_v47, %v623_v13  ;;  %v9109_v10 = vmov 1326507024  }
  0xa8   : > { %v1608_v59 = vor.u32 8388608, %v6485_v19  ;;  %v5509_v14 = vadd.s32 4294967169, %v1604_v57 }
  0xa9   : > { %v778_v54 = vadd.s32 1, %v5477_v46  ;;  %v6490_v60 = vshll.u32 %v776_v56, 8  ;;  %v979_v15 = vand.u32 2139095040, %v6488_v61 }
  0xaa   : > { %v1610_v56 = vadd.s32 1, %v5509_v14 }
  0xab   : > { %vm779_vm0 = vcmp.gt.s32.totalorder %v778_v54, 0 }
  0xac   : > { %v780_v58 = vsel %vm779_vm0, %v778_v54, 0  ;;  %vm1611_vm5 = vcmp.gt.s32.totalorder %v1610_v56, 0 }
  0xad   : > { %v781_v62 = vshrl.u32 %v780_v58, 5  ;;  %v782_v1 = vand.u32 31, %v780_v58 }
  0xaf   : > { %v783_v17 = vsub.s32 32, %v782_v1  ;;  %v785_v8 = vshll.u32 %v5978_v6, %v782_v1  ;;  %v788_v24 = vshll.u32 %v9116_v21, %v782_v1  ;;  %v791_v41 = vshll.u32 %v9114_v36, %v782_v1 }
  0xb0   : > { %v794_v49 = vshll.u32 %v9111_v29, %v782_v1  ;;  %v797_v51 = vshll.u32 %v9106_v31, %v782_v1  ;;  %vm800_vm1 = vcmp.lt.s32.totalorder %v781_v62, 1  ;;  %vm801_vm2 = vcmp.lt.s32.totalorder %v781_v62, 2 }
  0xb1   : > { %v786_v52 = vshrl.u32 %v9116_v21, %v783_v17  ;;  %v789_v33 = vshrl.u32 %v9114_v36, %v783_v17  ;;  %v792_v38 = vshrl.u32 %v9111_v29, %v783_v17  ;;  %v784_v26 = vshrl.u32 %v5978_v6, %v783_v17 }
  0xb2   : > { %v795_v46 = vshrl.u32 %v9106_v31, %v783_v17  ;;  %v798_v23 = vshrl.u32 %v9109_v10, %v783_v17  ;;  %vm802_vm3 = vcmp.lt.s32.totalorder %v781_v62, 3  ;;  %vm803_vm4 = vcmp.lt.s32.totalorder %v781_v62, 4 }
  0xb3   : > { %v787_v53 = vor.u32 %v786_v52, %v785_v8  ;;  %v790_v54 = vor.u32 %v789_v33, %v788_v24  ;;  %v793_v55 = vor.u32 %v792_v38, %v791_v41  ;;  %v1612_v24 = vsel %vm1611_vm5, %v1610_v56, 0 }
  0xb4   : > { %v796_v19 = vor.u32 %v795_v46, %v794_v49  ;;  %v799_v13 = vor.u32 %v798_v23, %v797_v51  ;;  %v980_v41 = vshrl.u32 %v979_v15, 23  ;;  %v6511_v52 = vshrl.u32 %v1612_v24, 5 }
  0xb5   : > { %v804_v57 = vsel %vm800_vm1, %v784_v26, %v787_v53  ;;  %v805_v58 = vsel %vm803_vm4, %v793_v55, 2102212464  ;;  %v808_v1 = vsel %vm800_vm1, %v787_v53, %v790_v54  ;;  %v812_v2 = vsel %vm800_vm1, %v790_v54, %v793_v55 }
  0xb6   : > { %v806_v18 = vsel %vm802_vm3, %v790_v54, %v805_v58  ;;  %v809_v43 = vsel %vm803_vm4, %v796_v19, 920167782  ;;  %v813_v31 = vsel %vm803_vm4, %v799_v13, 1326507024  ;;  %v515_v15 = vmul.f32 %v6472_v44, %v6401_v12 }
  0xb7   : > { %v810_v17 = vsel %vm802_vm3, %v793_v55, %v809_v43  ;;  %v814_v8 = vsel %vm802_vm3, %v796_v19, %v813_v31  ;;  %v807_v14 = vsel %vm801_vm2, %v804_v57, %v806_v18  ;;  %v1614_v43 = vand.u32 31, %v1612_v24 }
  0xb8   : > { %v811_v49 = vsel %vm801_vm2, %v808_v1, %v810_v17  ;;  %v815_v51 = vsel %vm801_vm2, %v812_v2, %v814_v8  ;;  %v823_v18 = vmul.u32 %v6490_v60, %v807_v14  ;;  %v6525_v31 = vshll.u32 %v1608_v59, 8 }
  0xb9   : > { %v6514_v33 = vmul.u32.u64.low %v6490_v60, %v815_v51  ;;  %v6515_v38 = vmul.u32.u64.high %v6490_v60, %v815_v51, %v6514_v33  ;;  %v6518_v26 = vmul.u32.u64.low %v6490_v60, %v811_v49  ;;  %v6519_v46 = vmul.u32.u64.high %v6490_v60, %v811_v49, %v6518_v26 }
  0xba   : > { %v615_v2 = vmul.f32 %v6475_v45, %v6399_v11  ;;  %v9108_v62 = vand.u32 2147483647, %v6488_v61  ;;  %v1615_v23 = vsub.s32 32, %v1614_v43  ;;  %v1617_v53 = vshll.u32 %v5978_v6, %v1614_v43 }
  0xbb   : > { %vm1632_vm6 = vcmp.lt.s32.totalorder %v6511_v52, 1  ;;  %v5485_v54 = vadd.s32 4294967169, %v980_v41  ;;  %vm825_vm7 = vc.u32 %v6515_v38, %v6518_v26  ;;  %v826_v12 = vadd.s32 1, %v6519_v46 }
  0xbc   : > { %v1620_v44 = vshll.u32 %v9116_v21, %v1614_v43  ;;  %v1623_v60 = vshll.u32 %v9114_v36, %v1614_v43  ;;  %v1618_v59 = vshrl.u32 %v9116_v21, %v1615_v23  ;;  %v1621_v11 = vshrl.u32 %v9114_v36, %v1615_v23 }
  0xbd   : > { %v1624_v45 = vshrl.u32 %v9111_v29, %v1615_v23  ;;  %v1626_v55 = vshll.u32 %v9111_v29, %v1614_v43  ;;  %v827_v56 = vsel %vm825_vm7, %v826_v12, %v6519_v46  ;;  %v9125_v19 = vmov 920167782  }
  0xbe   : > { %v1627_v13 = vshrl.u32 %v9125_v19, %v1615_v23  ;;  %v1629_v57 = vshll.u32 %v9125_v19, %v1614_v43  ;;  %v1630_v58 = vshrl.u32 %v9109_v10, %v1615_v23  ;;  %v828_v1 = vadd.s32 %v827_v56, %v823_v18 }
  0xbf   : > { %v1619_v17 = vor.u32 %v1618_v59, %v1617_v53  ;;  %v1622_v8 = vor.u32 %v1621_v11, %v1620_v44  ;;  %v1625_v24 = vor.u32 %v1624_v45, %v1623_v60  ;;  %vm1633_vm8 = vcmp.lt.s32.totalorder %v6511_v52, 2 }
  0xc0   : > { %v1628_v41 = vor.u32 %v1627_v13, %v1626_v55  ;;  %v1631_v14 = vor.u32 %v1630_v58, %v1629_v57  ;;  %v986_v49 = vadd.s32 1, %v5485_v54  ;;  %v829_v51 = vadd.s32 536870912, %v828_v1 }
  0xc1   : > { %vm1634_vm9 = vcmp.lt.s32.totalorder %v6511_v52, 3  ;;  %vm1635_vm10 = vcmp.lt.s32.totalorder %v6511_v52, 4  ;;  %v1640_v33 = vsel %vm1632_vm6, %v1619_v17, %v1622_v8  ;;  %v1616_v46 = vshrl.u32 %v5978_v6, %v1615_v23 }
  0xc2   : > { %v1641_v43 = vsel %vm1635_vm10, %v1628_v41, 920167782  ;;  %v1644_v18 = vsel %vm1632_vm6, %v1622_v8, %v1625_v24  ;;  %v1645_v53 = vsel %vm1635_vm10, %v1631_v14, 1326507024  ;;  %v830_v12 = vshrl.u32 %v829_v51, 30 }
  0xc3   : > { %v1637_v44 = vsel %vm1635_vm10, %v1625_v24, 2102212464  ;;  %v1642_v54 = vsel %vm1634_vm9, %v1625_v24, %v1641_v43  ;;  %v1646_v60 = vsel %vm1634_vm9, %v1628_v41, %v1645_v53  ;;  %v983_v23 = vand.u32 8388607, %v9108_v62 }
  0xc4   : > { %v1643_v59 = vsel %vm1633_vm8, %v1640_v33, %v1642_v54  ;;  %v1647_v11 = vsel %vm1633_vm8, %v1644_v18, %v1646_v60  ;;  %vm987_vm11 = vcmp.gt.s32.totalorder %v986_v49, 0  ;;  %v831_v45 = vshll.u32 %v830_v12, 30 }
  0xc5   : > { %v1636_v55 = vsel %vm1632_vm6, %v1616_v46, %v1619_v17  ;;  %v6566_v56 = vmul.u32.u64.low %v6525_v31, %v1647_v11  ;;  %v6567_v13 = vmul.u32.u64.high %v6525_v31, %v1647_v11, %v6566_v56  ;;  %v1638_v57 = vsel %vm1634_vm9, %v1622_v8, %v1637_v44 }
  0xc6   : > { %v6572_v58 = vmul.u32.u64.low %v6525_v31, %v1643_v59  ;;  %v6573_v24 = vmul.u32.u64.high %v6525_v31, %v1643_v59, %v6572_v58  ;;  %v988_v41 = vsel %vm987_vm11, %v986_v49, 0  ;;  %v832_v14 = vsub.s32 %v828_v1, %v831_v45 }
  0xc7   : > { %v990_v51 = vand.u32 31, %v988_v41  ;;  %v631_v33 = vadd.f32 %v615_v2, %v515_v15  ;;  %v1639_v17 = vsel %vm1633_vm8, %v1636_v55, %v1638_v57  ;;  %v984_v18 = vor.u32 8388608, %v983_v23 }
  0xc8   : > { %v834_v43 = vsub.s32 0, %v832_v14  ;;  %vm1657_vm12 = vc.u32 %v6567_v13, %v6572_v58  ;;  %v1658_v46 = vadd.s32 1, %v6573_v24  ;;  %v1655_v44 = vmul.u32 %v6525_v31, %v1639_v17 }
  0xc9   : > { %v991_v8 = vsub.s32 32, %v990_v51  ;;  %v6585_v15 = vadd.f32 %v6464_v37, %v631_v33  ;;  %v824_v52 = vadd.s32 %v6518_v26, %v6515_v38  ;;  %v854_v49 = vsub.s32 4, %v830_v12 }
  0xca   : > { %v5478_v53 = vmin.u32 %v834_v43, %v832_v14  ;;  %v1659_v1 = vsel %vm1657_vm12, %v1658_v46, %v6573_v24  ;;  %v993_v59 = vshll.u32 %v5978_v6, %v990_v51  ;;  %v6592_v23 = vshll.u32 %v984_v18, 8 }
  0xcb   : > { %v994_v54 = vshrl.u32 %v9116_v21, %v991_v8  ;;  %v1660_v60 = vadd.s32 %v1659_v1, %v1655_v44  ;;  %v997_v11 = vshrl.u32 %v9114_v36, %v991_v8  ;;  %v1000_v45 = vshrl.u32 %v9111_v29, %v991_v8 }
  0xcc   : > { %v836_v2 = vclz %v5478_v53  ;;  %v1002_v55 = vshll.u32 %v9111_v29, %v990_v51  ;;  %v1003_v56 = vshrl.u32 %v9125_v19, %v991_v8  ;;  %v6597_v38 = vshrl.u32 %v988_v41, 5 }
  0xcd   : > { %v1661_v57 = vadd.s32 536870912, %v1660_v60  ;;  %v996_v26 = vshll.u32 %v9116_v21, %v990_v51  ;;  %v1006_v24 = vshrl.u32 %v9109_v10, %v991_v8  ;;  %v995_v33 = vor.u32 %v994_v54, %v993_v59 }
  0xce   : > { %v5479_v31 = vadd.s32 4294967294, %v836_v2  ;;  %v999_v43 = vshll.u32 %v9114_v36, %v990_v51  ;;  %v1004_v17 = vor.u32 %v1003_v56, %v1002_v55  ;;  %v1005_v44 = vshll.u32 %v9125_v19, %v990_v51 }
  0xcf   : > { %v1662_v18 = vshrl.u32 %v1661_v57, 30  ;;  %v998_v53 = vor.u32 %v997_v11, %v996_v26  ;;  %v6605_v41 = vsel %vm770_vm13, %v854_v49, %v830_v12  ;;  %vm1008_vm0 = vcmp.lt.s32.totalorder %v6597_v38, 1 }
  0xd0   : > { %vm5480_vm14 = vcmp.lt.s32.totalorder %v5479_v31, 0  ;;  %v1001_v62 = vor.u32 %v1000_v45, %v999_v43  ;;  %v1007_v29 = vor.u32 %v1006_v24, %v1005_v44  ;;  %vm1011_vm1 = vcmp.lt.s32.totalorder %v6597_v38, 4 }
  0xd1   : > { %v839_v46 = vsel %vm5480_vm14, 0, %v5479_v31  ;;  %v1663_v10 = vshll.u32 %v1662_v18, 30  ;;  %v9126_v54 = vand.u32 2147483647, %v6456_v32  ;;  %v1017_v12 = vsel %vm1011_vm1, %v1004_v17, 920167782 }
  0xd2   : > { %v840_v1 = vsub.s32 32, %v839_v46  ;;  %v844_v2 = vsub.s32 4294967266, %v839_v46  ;;  %v841_v51 = vshll.u32 %v832_v14, %v839_v46  ;;  %vm1010_vm3 = vcmp.lt.s32.totalorder %v6597_v38, 3 }
  0xd3   : > { %vm6612_vm2 = vcmp.le.f32.partialorder %v9126_v54, 0.7853982  ;;  %v6618_v49 = vsub.s32 %v1660_v60, %v1663_v10  ;;  %v1016_v45 = vsel %vm1008_vm0, %v995_v33, %v998_v53  ;;  %v1811_v55 = vand.u32 2139095040, %v6585_v15 }
  0xd4   : > { %v842_v11 = vshrl.u32 %v824_v52, %v840_v1  ;;  %v845_v31 = vadd.s32 127, %v844_v2  ;;  %v9129_v26 = vand.u32 2147483647, %v6468_v39  ;;  %v1018_v52 = vsel %vm1010_vm3, %v1001_v62, %v1017_v12 }
  0xd5   : > { %v1020_v10 = vsel %vm1008_vm0, %v998_v53, %v1001_v62  ;;  %v1666_v60 = vsub.s32 0, %v6618_v49  ;;  %v1686_v24 = vsub.s32 4, %v1662_v18  ;;  %v992_v43 = vshrl.u32 %v5978_v6, %v991_v8 }
  0xd6   : > { %v843_v56 = vor.u32 %v842_v11, %v841_v51  ;;  %v846_v57 = vshll.u32 %v845_v31, 23  ;;  %vm6626_vm4 = vcmp.le.f32.partialorder %v9129_v26, 0.7853982  ;;  %v1021_v46 = vsel %vm1011_vm1, %v1007_v29, 1326507024 }
  0xd7   : > { %vm1009_vm5 = vcmp.lt.s32.totalorder %v6597_v38, 2  ;;  %v1013_v1 = vsel %vm1011_vm1, %v1001_v62, 2102212464  ;;  %v1022_v2 = vsel %vm1010_vm3, %v1004_v17, %v1021_v46  ;;  %v5510_v54 = vmin.u32 %v1666_v60, %v6618_v49 }
  0xd8   : > { %v847_v44 = vor.u32 4788187, %v846_v57  ;;  %v1019_v51 = vsel %vm1009_vm5, %v1016_v45, %v1018_v52  ;;  %v1023_v8 = vsel %vm1009_vm5, %v1020_v10, %v1022_v2  ;;  %v1812_v11 = vshrl.u32 %v1811_v55, 23 }
  0xd9   : > { %v850_v29 = vcvt.s32.f32 %v843_v56  ;;  %v6649_v12 = vmul.u32.u64.low %v6592_v23, %v1023_v8  ;;  %v6650_v57 = vmul.u32.u64.high %v6592_v23, %v1023_v8, %v6649_v12  ;;  %v1668_v26 = vclz %v5510_v54 }
  0xda   : > { %v848_v31 = vand.u32 2147483647, %v847_v44  ;;  %v1687_v62 = vsel %vm1602_vm15, %v1686_v24, %v1662_v18  ;;  %v1012_v17 = vsel %vm1008_vm0, %v992_v43, %v995_v33  ;;  %v1014_v45 = vsel %vm1010_vm3, %v998_v53, %v1013_v1 }
  0xdb   : > { %v6659_v10 = vmul.u32.u64.low %v6592_v23, %v1019_v51  ;;  %v6660_v55 = vmul.u32.u64.high %v6592_v23, %v1019_v51, %v6659_v10  ;;  %v5517_v56 = vadd.s32 4294967169, %v1812_v11  ;;  %v857_v60 = vsel %vm6612_vm2, 0, %v6605_v41 }
  0xdc   : > { %v851_v52 = vmul.f32 %v850_v29, %v848_v31  ;;  %v5511_v46 = vadd.s32 4294967294, %v1668_v26  ;;  %v9113_v44 = vand.u32 2147483647, %v6585_v15  ;;  %v620_v18 = vadd.f32 %v6372_v63, %v6386_v4 }
  0xdd   : > { %v1656_v53 = vadd.s32 %v6572_v58, %v6567_v13  ;;  %v1015_v24 = vsel %vm1009_vm5, %v1012_v17, %v1014_v45  ;;  %v1818_v43 = vadd.s32 1, %v5517_v56  ;;  %v1689_v1 = vsel %vm6626_vm4, 0, %v1687_v62 }
  0xde   : > { %v852_v33 = vxor.u32 2147483648, %v851_v52  ;;  %vm5512_vm6 = vcmp.lt.s32.totalorder %v5511_v46, 0  ;;  %vm1033_vm7 = vc.u32 %v6650_v57, %v6659_v10  ;;  %v6677_v41 = vadd.f32 %v6405_v16, %v6425_v34 }
  0xdf   : > { %v1671_v4 = vsel %vm5512_vm6, 0, %v5511_v46  ;;  %v1034_v13 = vadd.s32 1, %v6660_v55  ;;  %vm1819_vm8 = vcmp.gt.s32.totalorder %v1818_v43, 0  ;;  %v1031_v54 = vmul.u32 %v6592_v23, %v1015_v24 }
  0xe0   : > { %v853_v63 = vsel %vm770_vm13, %v852_v33, %v851_v52  ;;  %v1672_v38 = vsub.s32 32, %v1671_v4  ;;  %v1676_v2 = vsub.s32 4294967266, %v1671_v4  ;;  %v1815_v16 = vand.u32 8388607, %v9113_v44 }
  0xe1   : > { %v856_v58 = vsel %vm6612_vm2, %v6456_v32, %v853_v63  ;;  %v1035_v51 = vsel %vm1033_vm7, %v1034_v13, %v6660_v55  ;;  %v1820_v34 = vsel %vm1819_vm8, %v1818_v43, 0  ;;  %v1673_v8 = vshll.u32 %v6618_v49, %v1671_v4 }
  0xe2   : > { %v1674_v11 = vshrl.u32 %v1656_v53, %v1672_v38  ;;  %v1677_v31 = vadd.s32 127, %v1676_v2  ;;  %v1036_v29 = vadd.s32 %v1035_v51, %v1031_v54  ;;  %5811 = vcosq.f32 %v856_v58 }
  0xe3   : > { %v861_v12 = vadd.s32 3, %v857_v60  ;;  %v1693_v26 = vadd.s32 3, %v1689_v1  ;;  %v1822_v59 = vand.u32 31, %v1820_v34  ;;  %5813 = vsinq.f32 %v856_v58 }
  0xe4   : > { %v1675_v62 = vor.u32 %v1674_v11, %v1673_v8  ;;  %v1678_v17 = vshll.u32 %v1677_v31, 23  ;;  %v1037_v45 = vadd.s32 536870912, %v1036_v29  ;;  %v1816_v23 = vor.u32 8388608, %v1815_v16 }
  0xe5   : > { %v1823_v52 = vsub.s32 32, %v1822_v59  ;;  %v6692_v46 = vand.u32 3, %v861_v12  ;;  %v6694_v33 = vand.u32 3, %v1693_v26  ;;  %v6697_v49 = vadd.f32 %v6443_v47, %v620_v18 }
  0xe6   : > { %v1679_v55 = vor.u32 4788187, %v1678_v17  ;;  %v6690_v56 = vshrl.u32 %v1037_v45, 30  ;;  %v1682_v60 = vcvt.s32.f32 %v1675_v62  ;;  %v6700_v24 = vadd.s32 %v6659_v10, %v6650_v57 }
  0xe7   : > { %v6703_v1 = vshrl.u32 %v1820_v34, 5  ;;  %v1826_v63 = vshrl.u32 %v9116_v21, %v1823_v52  ;;  %v9132_v4 = vmov 2102212464   ;;  %v6707_v58 = vshll.u32 %v1816_v23, 8 }
  0xe8   : > { %v1680_v53 = vand.u32 2147483647, %v1679_v55  ;;  %v1039_v43 = vshll.u32 %v6690_v56, 30  ;;  %v1832_v13 = vshrl.u32 %v9132_v4, %v1823_v52  ;;  %v1829_v18 = vshrl.u32 %v9114_v36, %v1823_v52 }
  0xe9   : > { %v1835_v54 = vshrl.u32 %v9125_v19, %v1823_v52  ;;  %v1825_v57 = vshll.u32 %v5978_v6, %v1822_v59  ;;  %v1831_v10 = vshll.u32 %v9114_v36, %v1822_v59  ;;  %v9133_v51 = vmov 1326507024  }
  0xea   : > { %v1683_v38 = vmul.f32 %v1682_v60, %v1680_v53  ;;  %v6709_v2 = vsub.s32 %v1036_v29, %v1039_v43  ;;  %v1838_v16 = vshrl.u32 %v9133_v51, %v1823_v52  ;;  %v667_v34 = vand.u32 2139095040, %v6697_v49 }
  0xeb   : > { %v1828_v31 = vshll.u32 %v9116_v21, %v1822_v59  ;;  %v1834_v29 = vshll.u32 %v9132_v4, %v1822_v59  ;;  %vm864_vm9 = vcmp.eq.s32.totalorder %v6692_v46, 0  ;;  %vm867_vm10 = vcmp.eq.s32.totalorder %v6692_v46, 2 }
  0xec   : > { %v1684_v8 = vxor.u32 2147483648, %v1683_v38  ;;  %v1042_v11 = vsub.s32 0, %v6709_v2  ;;  %v5812_v12 = vpop.eup %5811  ;;  %v1824_v26 = vshrl.u32 %v5978_v6, %v1823_v52  ;;  %v1827_v62 = vor.u32 %v1826_v63, %v1825_v57 }
  0xed   : > { %v1833_v17 = vor.u32 %v1832_v13, %v1831_v10  ;;  %v1837_v45 = vshll.u32 %v9125_v19, %v1822_v59  ;;  %v5814_v23 = vpop.eup %5813  ;;  %v1830_v60 = vor.u32 %v1829_v18, %v1828_v31  ;;  %v1836_v43 = vor.u32 %v1835_v54, %v1834_v29 }
  0xee   : > { %v1685_v55 = vsel %vm1602_vm15, %v1684_v8, %v1683_v38  ;;  %v5486_v53 = vmin.u32 %v1042_v11, %v6709_v2  ;;  %v1062_v36 = vsub.s32 4, %v6690_v56  ;;  %vm1840_vm11 = vcmp.lt.s32.totalorder %v6703_v1, 1 }
  0xef   : > { %v1688_v44 = vsel %vm6626_vm4, %v6468_v39, %v1685_v55  ;;  %v1839_v21 = vor.u32 %v1838_v16, %v1837_v45  ;;  %vm863_vm12 = vcmp.lt.s32.totalorder %v6692_v46, 2  ;;  %vm1841_vm13 = vcmp.lt.s32.totalorder %v6703_v1, 2 }
  0xf0   : > { %5815 = vcosq.f32 %v1688_v44  ;;  %v1044_v59 = vclz %v5486_v53  ;;  %vm1843_vm14 = vcmp.lt.s32.totalorder %v6703_v1, 4  ;;  %v865_v52 = vxor.u32 2147483648, %v5814_v23 }
  0xf1   : > { %v868_v63 = vxor.u32 2147483648, %v5812_v12  ;;  %5817 = vsinq.f32 %v1688_v44  ;;  %vm978_vm15 = vcmp.lt.s32.totalorder %v6488_v61, 0  ;;  %v1845_v14 = vsel %vm1843_vm14, %v1833_v17, 2102212464 }
  0xf2   : > { %v5487_v13 = vadd.s32 4294967294, %v1044_v59  ;;  %vm1842_vm0 = vcmp.lt.s32.totalorder %v6703_v1, 3  ;;  %v1848_v38 = vsel %vm1840_vm11, %v1827_v62, %v1830_v60  ;;  %v1849_v18 = vsel %vm1843_vm14, %v1836_v43, 920167782 }
  0xf3   : > { %vm860_vm1 = vweird.f32 %v6456_v32  ;;  %v1844_v54 = vsel %vm1840_vm11, %v1824_v26, %v1827_v62  ;;  %v1850_v57 = vsel %vm1842_vm0, %v1833_v17, %v1849_v18  ;;  %v1852_v10 = vsel %vm1840_vm11, %v1830_v60, %v1833_v17 }
  0xf4   : > { %v1853_v44 = vsel %vm1843_vm14, %v1839_v21, 1326507024  ;;  %vm5488_vm2 = vcmp.lt.s32.totalorder %v5487_v13, 0  ;;  %v1846_v16 = vsel %vm1842_vm0, %v1830_v60, %v1845_v14  ;;  %v1851_v8 = vsel %vm1841_vm13, %v1848_v38, %v1850_v57 }
  0xf5   : > { %v1854_v11 = vsel %vm1842_vm0, %v1836_v43, %v1853_v44  ;;  %vm1696_vm3 = vcmp.eq.s32.totalorder %v6694_v33, 0  ;;  %v1047_v31 = vsel %vm5488_vm2, 0, %v5487_v13  ;;  %v866_v21 = vsel %vm864_vm9, %v5812_v12, %v865_v52 }
  0xf6   : > { %v1855_v29 = vsel %vm1841_vm13, %v1852_v10, %v1854_v11  ;;  %v6750_v45 = vmul.u32.u64.low %v6707_v58, %v1851_v8  ;;  %v6751_v26 = vmul.u32.u64.high %v6707_v58, %v1851_v8, %v6750_v45  ;;  %v869_v62 = vsel %vm867_vm10, %v868_v63, %v5814_v23 }
  0xf7   : > { %vm1695_vm4 = vcmp.lt.s32.totalorder %v6694_v33, 2  ;;  %v1048_v17 = vsub.s32 32, %v1047_v31  ;;  %v1052_v55 = vsub.s32 4294967266, %v1047_v31  ;;  %vm1692_vm5 = vweird.f32 %v6468_v39 }
  0xf8   : > { %vm1699_vm6 = vcmp.eq.s32.totalorder %v6694_v33, 2  ;;  %v6762_v53 = vmul.u32.u64.low %v6707_v58, %v1855_v29  ;;  %v6763_v60 = vmul.u32.u64.high %v6707_v58, %v1855_v29, %v6762_v53  ;;  %v668_v43 = vshrl.u32 %v667_v34, 23 }
  0xf9   : > { %v1049_v59 = vshll.u32 %v6709_v2, %v1047_v31  ;;  %v1050_v12 = vshrl.u32 %v6700_v24, %v1048_v17  ;;  %v1053_v52 = vadd.s32 127, %v1052_v55  ;;  %v1847_v23 = vsel %vm1841_vm13, %v1844_v54, %v1846_v16 }
  0xfa   : > { %v870_v63 = vsel %vm863_vm12, %v866_v21, %v869_v62  ;;  %v1866_v14 = vadd.s32 1, %v6751_v26  ;;  %v9118_v13 = vand.u32 2147483647, %v6697_v49  ;;  %v5473_v38 = vadd.s32 4294967169, %v668_v43  ;;  %v5816_v18 = vpop.eup %5815 }
  0xfb   : > { %v1051_v57 = vor.u32 %v1050_v12, %v1049_v59  ;;  %v1054_v10 = vshll.u32 %v1053_v52, 23  ;;  %v1063_v2 = vsel %vm978_vm15, %v1062_v36, %v6690_v56  ;;  %v6778_v24 = vadd.f32 %v6464_v37, %v6677_v41  ;;  %v5818_v1 = vpop.eup %5817 }
  0xfc   : > { %v1700_v34 = vxor.u32 2147483648, %v5816_v18  ;;  %v1863_v46 = vmul.u32 %v6707_v58, %v1847_v23  ;;  %vm1865_vm7 = vc.u32 %v6763_v60, %v6750_v45  ;;  %v674_v54 = vadd.s32 1, %v5473_v38 }
  0xfd   : > { %v871_v44 = vsel %vm860_vm1, nan, %v870_v63  ;;  %v1697_v16 = vxor.u32 2147483648, %v5818_v1  ;;  %v1055_v8 = vor.u32 4788187, %v1054_v10  ;;  %v1867_v11 = vsel %vm1865_vm7, %v1866_v14, %v6751_v26 }
  0xfe   : > { %v1701_v36 = vsel %vm1699_vm6, %v1700_v34, %v5818_v1  ;;  %v1868_v41 = vadd.s32 %v1867_v11, %v1863_v46  ;;  %v671_v56 = vand.u32 8388607, %v9118_v13  ;;  %vm675_vm8 = vcmp.gt.s32.totalorder %v674_v54, 0 }
  0xff   : > { %v1698_v58 = vsel %vm1696_vm3, %v5816_v18, %v1697_v16  ;;  %v1056_v31 = vand.u32 2147483647, %v1055_v8  ;;  %v1058_v29 = vcvt.s32.f32 %v1051_v57  ;;  %v676_v21 = vsel %vm675_vm8, %v674_v54, 0 }
 0x100   : > { %v1702_v32 = vsel %vm1695_vm4, %v1698_v58, %v1701_v36  ;;  %v1869_v62 = vadd.s32 536870912, %v1868_v41  ;;  %v678_v17 = vand.u32 31, %v676_v21  ;;  %v1499_v26 = vand.u32 2139095040, %v6778_v24 }
 0x101   : > { %v6797_v55 = vadd.f32 %v6443_v47, %v6445_v28  ;;  %v6801_v53 = vadd.f32 %v6443_v47, %v6447_v48  ;;  %v1703_v43 = vsel %vm1692_vm5, nan, %v1702_v32  ;;  %v1059_v59 = vmul.f32 %v1058_v29, %v1056_v31 }
 0x102   : > { %v2329_v12 = vpack.c.bf16 %v1703_v43, %v871_v44  ;;  %v9134_v33 = vand.u32 2147483647, %v6488_v61  ;;  %v6811_v23 = vshrl.u32 %v1869_v62, 30  ;;  %v679_v63 = vsub.s32 32, %v678_v17 }
 0x103   : > { %v6815_v28 = vadd.f32 %v6464_v37, %v6451_v30  ;;  %v6819_v48 = vadd.f32 %v6464_v37, %v6453_v50  ;;  %v1060_v39 = vxor.u32 2147483648, %v1059_v59  ;;  %v672_v18 = vor.u32 8388608, %v671_v56 }
 0x104   : > { %vm6807_vm9 = vcmp.le.f32.partialorder %v9134_v33, 0.7853982  ;;  %2689 = vmatprep.subr.bf16.mxu0 %v2329_v12  ;;  %v1871_v38 = vshll.u32 %v6811_v23, 30  ;;  %v9137_v57 = vmov 2475754826   ;;  %v1500_v1 = vshrl.u32 %v1499_v26, 23 }
 0x105   : > { %v1065_v14 = vsel %vm6807_vm9, 0, %v1063_v2  ;;  %v682_v10 = vshrl.u32 %v9137_v57, %v679_v63  ;;  %v681_v34 = vshll.u32 %v5978_v6, %v678_v17  ;;  %v9138_v46 = vmov 2131351028  }
 0x106   : > { %v685_v30 = vshrl.u32 %v9138_v46, %v679_v63  ;;  %v688_v54 = vshrl.u32 %v9132_v4, %v679_v63  ;;  %v691_v50 = vshrl.u32 %v9125_v19, %v679_v63  ;;  %v1061_v44 = vsel %vm978_vm15, %v1060_v39, %v1059_v59 }
 0x107   : > { %v6831_v16 = vsub.s32 %v1868_v41, %v1871_v38  ;;  %v684_v2 = vshll.u32 %v9137_v57, %v678_v17  ;;  %v687_v8 = vshll.u32 %v9138_v46, %v678_v17  ;;  %v1069_v11 = vadd.s32 3, %v1065_v14 }
 0x108   : > { %v677_v36 = vshrl.u32 %v676_v21, 5  ;;  %v690_v56 = vshll.u32 %v9132_v4, %v678_v17  ;;  %v1496_v58 = vand.u32 2147483647, %v6778_v24  ;;  %v683_v29 = vor.u32 %v682_v10, %v681_v34 }
 0x109   : > { %v1874_v31 = vsub.s32 0, %v6831_v16  ;;  %v686_v32 = vor.u32 %v685_v30, %v684_v2  ;;  %v689_v62 = vor.u32 %v688_v54, %v687_v8  ;;  %v1064_v41 = vsel %vm6807_vm9, %v6488_v61, %v1061_v44 }
 0x10a   : > { %vm1810_vm10 = vcmp.lt.s32.totalorder %v6585_v15, 0  ;;  %v692_v26 = vor.u32 %v691_v50, %v690_v56  ;;  %v693_v43 = vshll.u32 %v9125_v19, %v678_v17  ;;  %v694_v21 = vshrl.u32 %v9133_v51, %v679_v63 }
 0x10b   : > { %v5518_v59 = vmin.u32 %v1874_v31, %v6831_v16  ;;  %v1894_v12 = vsub.s32 4, %v6811_v23  ;;  %v712_v33 = vshll.u32 %v672_v18, 8  ;;  %v5505_v39 = vadd.s32 4294967169, %v1500_v1 }
 0x10c   : > { %v680_v14 = vshrl.u32 %v5978_v6, %v679_v63  ;;  %v695_v38 = vor.u32 %v694_v21, %v693_v43  ;;  %vm696_vm11 = vcmp.lt.s32.totalorder %v677_v36, 1  ;;  %vm699_vm12 = vcmp.lt.s32.totalorder %v677_v36, 4 }
 0x10d   : > { %5819 = vcosq.f32 %v1064_v41  ;;  %v9139_v52 = vand.u32 2147483647, %v6585_v15  ;;  %v1876_v17 = vclz %v5518_v59  ;;  %v701_v34 = vsel %vm699_vm12, %v689_v62, 2102212464 }
 0x10e   : > { %v704_v30 = vsel %vm696_vm11, %v683_v29, %v686_v32  ;;  %vm698_vm14 = vcmp.lt.s32.totalorder %v677_v36, 3  ;;  %v705_v54 = vsel %vm699_vm12, %v692_v26, 920167782  ;;  %v708_v50 = vsel %vm696_vm11, %v686_v32, %v689_v62 }
 0x10f   : > { %vm6849_vm13 = vcmp.le.f32.partialorder %v9139_v52, 0.7853982  ;;  %v709_v18 = vsel %vm699_vm12, %v695_v38, 1326507024  ;;  %v5519_v1 = vadd.s32 4294967294, %v1876_v17  ;;  %vm697_vm15 = vcmp.lt.s32.totalorder %v677_v36, 2 }
 0x110   : > { %v706_v63 = vsel %vm698_vm14, %v689_v62, %v705_v54  ;;  %v710_v44 = vsel %vm698_vm14, %v692_v26, %v709_v18  ;;  %v700_v2 = vsel %vm696_vm11, %v680_v14, %v683_v29  ;;  %v702_v8 = vsel %vm698_vm14, %v686_v32, %v701_v34 }
 0x111   : > { %v707_v56 = vsel %vm697_vm15, %v704_v30, %v706_v63  ;;  %v711_v31 = vsel %vm697_vm15, %v708_v50, %v710_v44  ;;  %vm5520_vm0 = vcmp.lt.s32.totalorder %v5519_v1, 0  ;;  %v1506_v59 = vadd.s32 1, %v5505_v39 }
 0x112   : > { %v6855_v43 = vmul.u32.u64.low %v712_v33, %v711_v31  ;;  %v6856_v21 = vmul.u32.u64.high %v712_v33, %v711_v31, %v6855_v43  ;;  %v1864_v52 = vadd.s32 %v6750_v45, %v6763_v60  ;;  %v1879_v13 = vsel %vm5520_vm0, 0, %v5519_v1 }
 0x113   : > { %v6860_v38 = vmul.u32.u64.low %v712_v33, %v707_v56  ;;  %v6861_v17 = vmul.u32.u64.high %v712_v33, %v707_v56, %v6860_v38  ;;  %5821 = vsinq.f32 %v1064_v41  ;;  %v1880_v29 = vsub.s32 32, %v1879_v13 }
 0x114   : > { %v1884_v32 = vsub.s32 4294967266, %v1879_v13  ;;  %v1895_v62 = vsel %vm1810_vm10, %v1894_v12, %v6811_v23  ;;  %v6867_v26 = vand.u32 3, %v1069_v11  ;;  %v703_v14 = vsel %vm697_vm15, %v700_v2, %v702_v8 }
 0x115   : > { %vm1507_vm1 = vcmp.gt.s32.totalorder %v1506_v59, 0  ;;  %v6872_v45 = vadd.f32 %v6375_v0, %v6389_v5  ;;  %v1881_v60 = vshll.u32 %v6831_v16, %v1879_v13  ;;  %v1882_v39 = vshrl.u32 %v1864_v52, %v1880_v29 }
 0x116   : > { %v1885_v34 = vadd.s32 127, %v1884_v32  ;;  %v1503_v41 = vand.u32 8388607, %v1496_v58  ;;  %v1897_v30 = vsel %vm6849_vm13, 0, %v1895_v62  ;;  %vm721_vm2 = vc.u32 %v6856_v21, %v6860_v38 }
 0x117   : > { %v722_v23 = vadd.s32 1, %v6861_v17  ;;  %v1508_v11 = vsel %vm1507_vm1, %v1506_v59, 0  ;;  %v6882_v36 = vpop.eup %5819  ;;  %v1083_v0 = vand.u32 2139095040, %v6797_v55  ;;  %v1883_v5 = vor.u32 %v1882_v39, %v1881_v60 }
 0x118   : > { %v1886_v13 = vshll.u32 %v1885_v34, 23  ;;  %v719_v16 = vmul.u32 %v712_v33, %v703_v14  ;;  %vm1075_vm3 = vcmp.eq.s32.totalorder %v6867_v26, 2  ;;  %v1510_v54 = vand.u32 31, %v1508_v11 }
 0x119   : > { %v723_v12 = vsel %vm721_vm2, %v722_v23, %v6861_v17  ;;  %v6889_v50 = vadd.f32 %v6409_v20, %v6429_v35  ;;  %v1901_v1 = vadd.s32 3, %v1897_v30  ;;  %v1504_v44 = vor.u32 8388608, %v1503_v41 }
 0x11a   : > { %v1887_v18 = vor.u32 4788187, %v1886_v13  ;;  %v724_v63 = vadd.s32 %v723_v12, %v719_v16  ;;  %v1076_v2 = vxor.u32 2147483648, %v6882_v36  ;;  %v1890_v8 = vcvt.s32.f32 %v1883_v5 }
 0x11b   : > { %v6892_v56 = vshrl.u32 %v1508_v11, 5  ;;  %v1511_v31 = vsub.s32 32, %v1510_v54  ;;  %v1513_v59 = vshll.u32 %v5978_v6, %v1510_v54  ;;  %v1516_v52 = vshll.u32 %v9137_v57, %v1510_v54 }
 0x11c   : > { %v1888_v33 = vand.u32 2147483647, %v1887_v18  ;;  %v725_v43 = vadd.s32 536870912, %v724_v63  ;;  %v1519_v35 = vshll.u32 %v9138_v46, %v1510_v54  ;;  %vm1072_vm4 = vcmp.eq.s32.totalorder %v6867_v26, 0 }
 0x11d   : > { %v1514_v17 = vshrl.u32 %v9137_v57, %v1511_v31  ;;  %v1517_v20 = vshrl.u32 %v9138_v46, %v1511_v31  ;;  %v1520_v29 = vshrl.u32 %v9132_v4, %v1511_v31  ;;  %v5822_v32 = vpop.eup %5821  ;;  %v1523_v60 = vshrl.u32 %v9125_v19, %v1511_v31 }
 0x11e   : > { %v1891_v62 = vmul.f32 %v1890_v8, %v1888_v33  ;;  %v6901_v14 = vshrl.u32 %v725_v43, 30  ;;  %v1526_v39 = vshrl.u32 %v9133_v51, %v1511_v31  ;;  %v6905_v34 = vand.u32 3, %v1901_v1 }
 0x11f   : > { %v1515_v41 = vor.u32 %v1514_v17, %v1513_v59  ;;  %v1522_v30 = vshll.u32 %v9132_v4, %v1510_v54  ;;  %v1525_v23 = vshll.u32 %v9125_v19, %v1510_v54  ;;  %v1518_v13 = vor.u32 %v1517_v20, %v1516_v52 }
 0x120   : > { %v1892_v11 = vxor.u32 2147483648, %v1891_v62  ;;  %v727_v5 = vshll.u32 %v6901_v14, 30  ;;  %v1521_v16 = vor.u32 %v1520_v29, %v1519_v35  ;;  %v1073_v12 = vxor.u32 2147483648, %v5822_v32 }
 0x121   : > { %v1524_v18 = vor.u32 %v1523_v60, %v1522_v30  ;;  %v1527_v8 = vor.u32 %v1526_v39, %v1525_v23  ;;  %v6910_v33 = vshll.u32 %v1504_v44, 8  ;;  %v1077_v43 = vsel %vm1075_vm3, %v1076_v2, %v5822_v32 }
 0x122   : > { %v1893_v1 = vsel %vm1810_vm10, %v1892_v11, %v1891_v62  ;;  %v6916_v59 = vsub.s32 %v724_v63, %v727_v5  ;;  %vm1528_vm5 = vcmp.lt.s32.totalorder %v6892_v56, 1  ;;  %vm1071_vm6 = vcmp.lt.s32.totalorder %v6867_v26, 2 }
 0x123   : > { %v1896_v54 = vsel %vm6849_vm13, %v6585_v15, %v1893_v1  ;;  %vm666_vm7 = vcmp.lt.s32.totalorder %v6697_v49, 0  ;;  %v1512_v44 = vshrl.u32 %v5978_v6, %v1511_v31  ;;  %vm1530_vm8 = vcmp.lt.s32.totalorder %v6892_v56, 3 }
 0x124   : > { %vm1531_vm9 = vcmp.lt.s32.totalorder %v6892_v56, 4  ;;  %5823 = vcosq.f32 %v1896_v54  ;;  %v730_v63 = vsub.s32 0, %v6916_v59  ;;  %v1536_v52 = vsel %vm1528_vm5, %v1515_v41, %v1518_v13 }
 0x125   : > { %v1533_v2 = vsel %vm1531_vm9, %v1521_v16, 2102212464  ;;  %5825 = vsinq.f32 %v1896_v54  ;;  %v1537_v17 = vsel %vm1531_vm9, %v1524_v18, 920167782  ;;  %v1540_v10 = vsel %vm1528_vm5, %v1518_v13, %v1521_v16 }
 0x126   : > { %v1541_v20 = vsel %vm1531_vm9, %v1527_v8, 1326507024  ;;  %v5474_v35 = vmin.u32 %v730_v63, %v6916_v59  ;;  %vm1529_vm10 = vcmp.lt.s32.totalorder %v6892_v56, 2  ;;  %v1538_v31 = vsel %vm1530_vm8, %v1521_v16, %v1537_v17 }
 0x127   : > { %v1542_v29 = vsel %vm1530_vm8, %v1524_v18, %v1541_v20  ;;  %v1074_v32 = vsel %vm1072_vm4, %v6882_v36, %v1073_v12  ;;  %v1539_v62 = vsel %vm1529_vm10, %v1536_v52, %v1538_v31  ;;  %v6947_v39 = vadd.f32 %v6443_v47, %v6872_v45 }
 0x128   : > { %v1543_v60 = vsel %vm1529_vm10, %v1540_v10, %v1542_v29  ;;  %vm1068_vm11 = vweird.f32 %v6488_v61  ;;  %v732_v30 = vclz %v5474_v35  ;;  %v750_v23 = vsub.s32 4, %v6901_v14 }
 0x129   : > { %v1532_v11 = vsel %vm1528_vm5, %v1512_v44, %v1515_v41  ;;  %v1534_v36 = vsel %vm1530_vm8, %v1518_v13, %v1533_v2  ;;  %v6956_v5 = vmul.u32.u64.low %v6910_v33, %v1543_v60  ;;  %v6957_v16 = vmul.u32.u64.high %v6910_v33, %v1543_v60, %v6956_v5 }
 0x12a   : > { %v6960_v12 = vmul.u32.u64.low %v6910_v33, %v1539_v62  ;;  %v6961_v18 = vmul.u32.u64.high %v6910_v33, %v1539_v62, %v6960_v12  ;;  %vm1903_vm12 = vcmp.lt.s32.totalorder %v6905_v34, 2  ;;  %vm1904_vm13 = vcmp.eq.s32.totalorder %v6905_v34, 0 }
 0x12b   : > { %vm1907_vm14 = vcmp.eq.s32.totalorder %v6905_v34, 2  ;;  %v9142_v45 = vand.u32 2147483647, %v6697_v49  ;;  %v5475_v13 = vadd.s32 4294967294, %v732_v30  ;;  %v1535_v8 = vsel %vm1529_vm10, %v1532_v11, %v1534_v36 }
 0x12c   : > { %v875_v1 = vand.u32 2139095040, %v6947_v39  ;;  %v6978_v54 = vadd.f32 %v6379_v25, %v6393_v7  ;;  %v6982_v44 = vadd.f32 %v6415_v22, %v6435_v40  ;;  %v1078_v63 = vsel %vm1071_vm6, %v1074_v32, %v1077_v43 }
 0x12d   : > { %vm6969_vm15 = vcmp.le.f32.partialorder %v9142_v45, 0.7853982  ;;  %v720_v2 = vadd.s32 %v6860_v38, %v6856_v21  ;;  %vm5476_vm0 = vcmp.lt.s32.totalorder %v5475_v13, 0  ;;  %v751_v56 = vsel %vm666_vm7, %v750_v23, %v6901_v14 }
 0x12e   : > { %v735_v52 = vsel %vm5476_vm0, 0, %v5475_v13  ;;  %vm1553_vm1 = vc.u32 %v6957_v16, %v6960_v12  ;;  %v1554_v25 = vadd.s32 1, %v6961_v18  ;;  %v872_v7 = vand.u32 2147483647, %v6947_v39  ;;  %v5824_v22 = vpop.eup %5823 }
 0x12f   : > { %v736_v40 = vsub.s32 32, %v735_v52  ;;  %v740_v26 = vsub.s32 4294967266, %v735_v52  ;;  %v1551_v43 = vmul.u32 %v6910_v33, %v1535_v8  ;;  %v876_v17 = vshrl.u32 %v875_v1, 23  ;;  %v5826_v21 = vpop.eup %5825 }
 0x130   : > { %v1908_v38 = vxor.u32 2147483648, %v5824_v22  ;;  %v737_v10 = vshll.u32 %v6916_v59, %v735_v52  ;;  %v1555_v14 = vsel %vm1553_vm1, %v1554_v25, %v6961_v18  ;;  %v7000_v20 = vadd.f32 %v6464_v37, %v6889_v50 }
 0x131   : > { %v1905_v35 = vxor.u32 2147483648, %v5826_v21  ;;  %v738_v31 = vshrl.u32 %v720_v2, %v736_v40  ;;  %v741_v29 = vadd.s32 127, %v740_v26  ;;  %v1556_v32 = vadd.s32 %v1555_v14, %v1551_v43 }
 0x132   : > { %v1079_v62 = vsel %vm1068_vm11, nan, %v1078_v63  ;;  %v1909_v33 = vsel %vm1907_vm14, %v1908_v38, %v5826_v21  ;;  %v5481_v60 = vadd.s32 4294967169, %v876_v17  ;;  %v879_v59 = vand.u32 8388607, %v872_v7 }
 0x133   : > { %v1906_v30 = vsel %vm1904_vm13, %v5824_v22, %v1905_v35  ;;  %v739_v23 = vor.u32 %v738_v31, %v737_v10  ;;  %v742_v50 = vshll.u32 %v741_v29, 23  ;;  %v1557_v11 = vadd.s32 536870912, %v1556_v32 }
 0x134   : > { %vm1900_vm2 = vweird.f32 %v6585_v15  ;;  %v1910_v36 = vsel %vm1903_vm12, %v1906_v30, %v1909_v33  ;;  %v753_v61 = vsel %vm6969_vm15, 0, %v751_v56  ;;  %v882_v5 = vadd.s32 1, %v5481_v60 }
 0x135   : > { %v1911_v18 = vsel %vm1900_vm2, nan, %v1910_v36  ;;  %v743_v45 = vor.u32 4788187, %v742_v50  ;;  %v1558_v13 = vshrl.u32 %v1557_v11, 30  ;;  %v1707_v8 = vand.u32 2139095040, %v7000_v20 }
 0x136   : > { %v2331_v1 = vpack.c.bf16 %v1911_v18, %v1079_v62  ;;  %v880_v63 = vor.u32 8388608, %v879_v59  ;;  %vm883_vm3 = vcmp.gt.s32.totalorder %v882_v5, 0  ;;  %v1704_v2 = vand.u32 2147483647, %v7000_v20 }
 0x137   : > { %v744_v52 = vand.u32 2147483647, %v743_v45  ;;  %v746_v25 = vcvt.s32.f32 %v739_v23  ;;  %v1559_v15 = vshll.u32 %v1558_v13, 30  ;;  %v884_v22 = vsel %vm883_vm3, %v882_v5, 0 }
 0x138   : > { %v1915_v34 = vand.u32 2139095040, %v6815_v28  ;;  %v2123_v40 = vand.u32 2139095040, %v6819_v48  ;;  %v1291_v56 = vand.u32 2139095040, %v6801_v53  ;;  %2882 = vmatprep.subr.bf16.mxu1 %v2331_v1  ;;  %v886_v26 = vand.u32 31, %v884_v22 }
 0x139   : > { %v747_v43 = vmul.f32 %v746_v25, %v744_v52  ;;  %vm1498_vm4 = vcmp.lt.s32.totalorder %v6778_v24, 0  ;;  %v1560_v17 = vsub.s32 %v1556_v32, %v1559_v15  ;;  %v1708_v21 = vshrl.u32 %v1707_v8, 23 }
 0x13a   : > { %v7021_v38 = vadd.s32 3, %v753_v61  ;;  %v1552_v10 = vadd.s32 %v6960_v12, %v6957_v16  ;;  %v1582_v14 = vsub.s32 4, %v1558_v13  ;;  %v887_v35 = vsub.s32 32, %v886_v26 }
 0x13b   : > { %v748_v31 = vxor.u32 2147483648, %v747_v43  ;;  %v1562_v29 = vsub.s32 0, %v1560_v17  ;;  %v7025_v62 = vshll.u32 %v880_v63, 8  ;;  %v7029_v33 = vand.u32 8388607, %v1704_v2 }
 0x13c   : > { %v885_v60 = vshrl.u32 %v884_v22, 5  ;;  %v890_v59 = vshrl.u32 %v9137_v57, %v887_v35  ;;  %v893_v32 = vshrl.u32 %v9138_v46, %v887_v35  ;;  %v896_v30 = vshrl.u32 %v9132_v4, %v887_v35 }
 0x13d   : > { %v749_v16 = vsel %vm666_vm7, %v748_v31, %v747_v43  ;;  %v5506_v12 = vmin.u32 %v1562_v29, %v1560_v17  ;;  %v895_v23 = vshll.u32 %v9138_v46, %v886_v26  ;;  %v5513_v50 = vadd.s32 4294967169, %v1708_v21 }
 0x13e   : > { %v752_v11 = vsel %vm6969_vm15, %v6697_v49, %v749_v16  ;;  %v7042_v36 = vsel %vm1498_vm4, %v1582_v14, %v1558_v13  ;;  %v889_v61 = vshll.u32 %v5978_v6, %v886_v26  ;;  %v892_v5 = vshll.u32 %v9137_v57, %v886_v26 }
 0x13f   : > { %v1564_v18 = vclz %v5506_v12  ;;  %v888_v45 = vshrl.u32 %v5978_v6, %v887_v35  ;;  %v897_v8 = vor.u32 %v896_v30, %v895_v23  ;;  %v898_v1 = vshll.u32 %v9132_v4, %v886_v26 }
 0x140   : > { %5827 = vcosq.f32 %v752_v11  ;;  %v891_v63 = vor.u32 %v890_v59, %v889_v61  ;;  %v894_v52 = vor.u32 %v893_v32, %v892_v5  ;;  %v899_v41 = vshrl.u32 %v9125_v19, %v887_v35 }
 0x141   : > { %5829 = vsinq.f32 %v752_v11  ;;  %v5507_v25 = vadd.s32 4294967294, %v1564_v18  ;;  %v901_v13 = vshll.u32 %v9125_v19, %v886_v26  ;;  %v902_v15 = vshrl.u32 %v9133_v51, %v887_v35 }
 0x142   : > { %v900_v22 = vor.u32 %v899_v41, %v898_v1  ;;  %vm904_vm5 = vcmp.lt.s32.totalorder %v885_v60, 1  ;;  %vm905_vm6 = vcmp.lt.s32.totalorder %v885_v60, 2  ;;  %vm907_vm7 = vcmp.lt.s32.totalorder %v885_v60, 4 }
 0x143   : > { %vm5508_vm8 = vcmp.lt.s32.totalorder %v5507_v25, 0  ;;  %v903_v43 = vor.u32 %v902_v15, %v901_v13  ;;  %vm906_vm9 = vcmp.lt.s32.totalorder %v885_v60, 3  ;;  %v909_v21 = vsel %vm907_vm7, %v897_v8, 2102212464 }
 0x144   : > { %v1567_v14 = vsel %vm5508_vm8, 0, %v5507_v25  ;;  %v908_v31 = vsel %vm904_vm5, %v888_v45, %v891_v63  ;;  %v912_v29 = vsel %vm904_vm5, %v891_v63, %v894_v52  ;;  %v913_v59 = vsel %vm907_vm7, %v900_v22, 920167782 }
 0x145   : > { %v1568_v32 = vsub.s32 32, %v1567_v14  ;;  %v1572_v30 = vsub.s32 4294967266, %v1567_v14  ;;  %v910_v16 = vsel %vm906_vm9, %v894_v52, %v909_v21  ;;  %v916_v12 = vsel %vm904_vm5, %v894_v52, %v897_v8 }
 0x146   : > { %v1569_v26 = vshll.u32 %v1560_v17, %v1567_v14  ;;  %v914_v35 = vsel %vm906_vm9, %v897_v8, %v913_v59  ;;  %v917_v23 = vsel %vm907_vm7, %v903_v43, 1326507024  ;;  %v1714_v11 = vadd.s32 1, %v5513_v50 }
 0x147   : > { %v1570_v61 = vshrl.u32 %v1552_v10, %v1568_v32  ;;  %v1573_v5 = vadd.s32 127, %v1572_v30  ;;  %v915_v18 = vsel %vm905_vm6, %v912_v29, %v914_v35  ;;  %v918_v1 = vsel %vm906_vm9, %v900_v22, %v917_v23 }
 0x148   : > { %v919_v45 = vsel %vm905_vm6, %v916_v12, %v918_v1  ;;  %v7057_v63 = vmul.u32.u64.low %v7025_v62, %v915_v18  ;;  %v7058_v41 = vmul.u32.u64.high %v7025_v62, %v915_v18, %v7057_v63  ;;  %vm1715_vm10 = vcmp.gt.s32.totalorder %v1714_v11, 0 }
 0x149   : > { %v1571_v52 = vor.u32 %v1570_v61, %v1569_v26  ;;  %v1574_v17 = vshll.u32 %v1573_v5, 23  ;;  %v7062_v8 = vmul.u32.u64.low %v7025_v62, %v919_v45  ;;  %v7063_v25 = vmul.u32.u64.high %v7025_v62, %v919_v45, %v7062_v8 }
 0x14a   : > { %v7065_v10 = vpop.eup %5827  ;;  %v1084_v50 = vshrl.u32 %v1083_v0, 23  ;;  %v911_v13 = vsel %vm905_vm6, %v908_v31, %v910_v16  ;;  %v1712_v15 = vor.u32 8388608, %v7029_v33  ;;  %v1716_v22 = vsel %vm1715_vm10, %v1714_v11, 0 }
 0x14b   : > { %v7071_v43 = vpop.eup %5829  ;;  %v7075_v21 = vshrl.u32 %v1291_v56, 23  ;;  %v7078_v14 = vand.u32 3, %v7021_v38  ;;  %vm7082_vm11 = vcmp.le.f32.partialorder %v1496_v58, 0.7853982  ;;  %v1575_v0 = vor.u32 4788187, %v1574_v17 }
 0x14c   : > { %v7088_v33 = vshrl.u32 %v1915_v34, 23  ;;  %v1585_v60 = vsel %vm7082_vm11, 0, %v7042_v36  ;;  %v930_v56 = vadd.s32 1, %v7058_v41  ;;  %v1718_v31 = vand.u32 31, %v1716_v22 }
 0x14d   : > { %v1576_v38 = vand.u32 2147483647, %v1575_v0  ;;  %v1578_v59 = vcvt.s32.f32 %v1571_v52  ;;  %v927_v32 = vmul.u32 %v7025_v62, %v911_v13  ;;  %vm929_vm12 = vc.u32 %v7063_v25, %v7057_v63 }
 0x14e   : > { %v7097_v58 = vadd.s32 4294967169, %v1084_v50  ;;  %v931_v30 = vsel %vm929_vm12, %v930_v56, %v7058_v41  ;;  %v1719_v34 = vsub.s32 32, %v1718_v31  ;;  %v7100_v16 = vshll.u32 %v1712_v15, 8 }
 0x14f   : > { %vm763_vm13 = vcmp.eq.s32.totalorder %v7078_v14, 2  ;;  %v764_v36 = vxor.u32 2147483648, %v7065_v10  ;;  %v1579_v12 = vmul.f32 %v1578_v59, %v1576_v38  ;;  %v1589_v26 = vadd.s32 3, %v1585_v60 }
 0x150   : > { %v932_v35 = vadd.s32 %v931_v30, %v927_v32  ;;  %v7104_v23 = vshrl.u32 %v1716_v22, 5  ;;  %v1721_v62 = vshll.u32 %v5978_v6, %v1718_v31  ;;  %v1722_v11 = vshrl.u32 %v9137_v57, %v1719_v34 }
 0x151   : > { %v1725_v61 = vshrl.u32 %v9138_v46, %v1719_v34  ;;  %vm760_vm14 = vcmp.eq.s32.totalorder %v7078_v14, 0  ;;  %v1580_v5 = vxor.u32 2147483648, %v1579_v12  ;;  %v1724_v1 = vshll.u32 %v9137_v57, %v1718_v31 }
 0x152   : > { %v933_v18 = vadd.s32 536870912, %v932_v35  ;;  %v1728_v45 = vshrl.u32 %v9132_v4, %v1719_v34  ;;  %vm874_vm15 = vcmp.lt.s32.totalorder %v6947_v39, 0  ;;  %v1723_v41 = vor.u32 %v1722_v11, %v1721_v62 }
 0x153   : > { %v1727_v52 = vshll.u32 %v9138_v46, %v1718_v31  ;;  %v1730_v17 = vshll.u32 %v9132_v4, %v1718_v31  ;;  %v1731_v8 = vshrl.u32 %v9125_v19, %v1719_v34  ;;  %v1581_v50 = vsel %vm1498_vm4, %v1580_v5, %v1579_v12 }
 0x154   : > { %v934_v13 = vshrl.u32 %v933_v18, 30  ;;  %v1726_v15 = vor.u32 %v1725_v61, %v1724_v1  ;;  %v1734_v22 = vshrl.u32 %v9133_v51, %v1719_v34  ;;  %vm759_vm0 = vcmp.lt.s32.totalorder %v7078_v14, 2 }
 0x155   : > { %v1584_v0 = vsel %vm7082_vm11, %v6778_v24, %v1581_v50  ;;  %v1732_v60 = vor.u32 %v1731_v8, %v1730_v17  ;;  %v1733_v56 = vshll.u32 %v9125_v19, %v1718_v31  ;;  %v7126_v38 = vadd.f32 %v6443_v47, %v6978_v54 }
 0x156   : > { %5831 = vcosq.f32 %v1584_v0  ;;  %v7128_v59 = vand.u32 3, %v1589_v26  ;;  %vm7132_vm1 = vcmp.le.f32.partialorder %v872_v7, 0.7853982  ;;  %v935_v30 = vshll.u32 %v934_v13, 30 }
 0x157   : > { %v1729_v12 = vor.u32 %v1728_v45, %v1727_v52  ;;  %v761_v29 = vxor.u32 2147483648, %v7071_v43  ;;  %5833 = vsinq.f32 %v1584_v0  ;;  %v1735_v62 = vor.u32 %v1734_v22, %v1733_v56 }
 0x158   : > { %vm1736_vm2 = vcmp.lt.s32.totalorder %v7104_v23, 1  ;;  %v7138_v31 = vsub.s32 %v932_v35, %v935_v30  ;;  %v958_v54 = vsub.s32 4, %v934_v13  ;;  %vm1739_vm3 = vcmp.lt.s32.totalorder %v7104_v23, 4 }
 0x159   : > { %v1744_v26 = vsel %vm1736_vm2, %v1723_v41, %v1726_v15  ;;  %vm756_vm4 = vweird.f32 %v6697_v49  ;;  %v765_v7 = vsel %vm763_vm13, %v764_v36, %v7071_v43  ;;  %vm1738_vm5 = vcmp.lt.s32.totalorder %v7104_v23, 3 }
 0x15a   : > { %v1745_v11 = vsel %vm1739_vm3, %v1732_v60, 920167782  ;;  %v1184_v61 = vand.u32 2147483647, %v7126_v38  ;;  %v938_v35 = vsub.s32 0, %v7138_v31  ;;  %vm1737_vm6 = vcmp.lt.s32.totalorder %v7104_v23, 2 }
 0x15b   : > { %v1746_v5 = vsel %vm1738_vm5, %v1729_v12, %v1745_v11  ;;  %v1748_v18 = vsel %vm1736_vm2, %v1726_v15, %v1729_v12  ;;  %v762_v1 = vsel %vm760_vm14, %v7065_v10, %v761_v29  ;;  %vm1592_vm7 = vcmp.eq.s32.totalorder %v7128_v59, 0 }
 0x15c   : > { %v1741_v43 = vsel %vm1739_vm3, %v1729_v12, 2102212464  ;;  %v1747_v36 = vsel %vm1737_vm6, %v1744_v26, %v1746_v5  ;;  %v1749_v45 = vsel %vm1739_vm3, %v1735_v62, 1326507024  ;;  %vm1591_vm8 = vcmp.lt.s32.totalorder %v7128_v59, 2 }
 0x15d   : > { %v5482_v52 = vmin.u32 %v938_v35, %v7138_v31  ;;  %v959_v17 = vsel %vm874_vm15, %v958_v54, %v934_v13  ;;  %v1720_v8 = vshrl.u32 %v5978_v6, %v1719_v34  ;;  %v1750_v50 = vsel %vm1738_vm5, %v1732_v60, %v1749_v45 }
 0x15e   : > { %vm1588_vm9 = vweird.f32 %v6778_v24  ;;  %v1751_v10 = vsel %vm1737_vm6, %v1748_v18, %v1750_v50  ;;  %v7172_v22 = vmul.u32.u64.low %v7100_v16, %v1747_v36  ;;  %v7173_v0 = vmul.u32.u64.high %v7100_v16, %v1747_v36, %v7172_v22 }
 0x15f   : > { %v1187_v56 = vand.u32 2139095040, %v7126_v38  ;;  %v766_v30 = vsel %vm759_vm0, %v762_v1, %v765_v7  ;;  %v940_v13 = vclz %v5482_v52  ;;  %v1740_v34 = vsel %vm1736_vm2, %v1720_v8, %v1723_v41 }
 0x160   : > { %v1742_v60 = vsel %vm1738_vm5, %v1726_v15, %v1741_v43  ;;  %v961_v12 = vsel %vm7132_vm1, 0, %v959_v17  ;;  %v7185_v29 = vmul.u32.u64.low %v7100_v16, %v1751_v10  ;;  %v7186_v62 = vmul.u32.u64.high %v7100_v16, %v1751_v10, %v7185_v29  ;;  %v5832_v26 = vpop.eup %5831 }
 0x161   : > { %v1188_v54 = vshrl.u32 %v1187_v56, 23  ;;  %vm1595_vm10 = vcmp.eq.s32.totalorder %v7128_v59, 2  ;;  %v928_v14 = vadd.s32 %v7057_v63, %v7063_v25  ;;  %v5483_v7 = vadd.s32 4294967294, %v940_v13  ;;  %v5834_v15 = vpop.eup %5833 }
 0x162   : > { %v7193_v41 = vadd.f32 %v6464_v37, %v6982_v44  ;;  %v1596_v11 = vxor.u32 2147483648, %v5832_v26  ;;  %v1743_v35 = vsel %vm1737_vm6, %v1740_v34, %v1742_v60  ;;  %v1762_v5 = vadd.s32 1, %v7173_v0 }
 0x163   : > { %v5493_v18 = vadd.s32 4294967169, %v1188_v54  ;;  %v767_v1 = vsel %vm756_vm4, nan, %v766_v30  ;;  %v1593_v43 = vxor.u32 2147483648, %v5834_v15  ;;  %vm5484_vm11 = vcmp.lt.s32.totalorder %v5483_v7, 0 }
 0x164   : > { %v965_v36 = vadd.s32 3, %v961_v12  ;;  %v1597_v63 = vsel %vm1595_vm10, %v1596_v11, %v5834_v15  ;;  %v943_v25 = vsel %vm5484_vm11, 0, %v5483_v7  ;;  %vm1761_vm12 = vc.u32 %v7186_v62, %v7172_v22 }
 0x165   : > { %v1191_v44 = vand.u32 8388607, %v1184_v61  ;;  %v1594_v23 = vsel %vm1592_vm7, %v5832_v26, %v1593_v43  ;;  %v944_v45 = vsub.s32 32, %v943_v25  ;;  %v948_v52 = vsub.s32 4294967266, %v943_v25 }
 0x166   : > { %v1759_v17 = vmul.u32 %v7100_v16, %v1743_v35  ;;  %v1598_v49 = vsel %vm1591_vm8, %v1594_v23, %v1597_v63  ;;  %v945_v8 = vshll.u32 %v7138_v31, %v943_v25  ;;  %v1763_v50 = vsel %vm1761_vm12, %v1762_v5, %v7173_v0 }
 0x167   : > { %v1194_v10 = vadd.s32 1, %v5493_v18  ;;  %v1599_v56 = vsel %vm1588_vm9, nan, %v1598_v49  ;;  %v946_v30 = vshrl.u32 %v928_v14, %v944_v45  ;;  %v949_v13 = vadd.s32 127, %v948_v52 }
 0x168   : > { %v1764_v34 = vadd.s32 %v1763_v50, %v1759_v17  ;;  %v2328_v60 = vpack.c.bf16 %v1599_v56, %v767_v1  ;;  %v1192_v12 = vor.u32 8388608, %v1191_v44  ;;  %v2019_v29 = vand.u32 2139095040, %v7193_v41 }
 0x169   : > { %vm1195_vm13 = vcmp.gt.s32.totalorder %v1194_v10, 0  ;;  %v947_v16 = vor.u32 %v946_v30, %v945_v8  ;;  %v950_v54 = vshll.u32 %v949_v13, 23  ;;  %v7214_v31 = vadd.s32 4294967169, %v7088_v33 }
 0x16a   : > { %v1765_v59 = vadd.s32 536870912, %v1764_v34  ;;  %v1196_v26 = vsel %vm1195_vm13, %v1194_v10, 0  ;;  %v7218_v0 = vshrl.u32 %v2123_v40, 23  ;;  %2690 = vmatpush1.bf16.msra.mxu0 %v2328_v60  ;;  %v2016_v14 = vand.u32 2147483647, %v7193_v41 }
 0x16b   : > { %v1198_v24 = vand.u32 31, %v1196_v26  ;;  %v7222_v7 = vadd.s32 1, %v7097_v58  ;;  %v951_v15 = vor.u32 4788187, %v950_v54  ;;  %vm1706_vm14 = vcmp.lt.s32.totalorder %v7000_v20, 0 }
 0x16c   : > { %v1766_v11 = vshrl.u32 %v1765_v59, 30  ;;  %v7225_v35 = vand.u32 3, %v965_v36  ;;  %v7228_v33 = vadd.s32 %v7172_v22, %v7186_v62  ;;  %v7230_v18 = vshll.u32 %v1192_v12, 8 }
 0x16d   : > { %v1199_v5 = vsub.s32 32, %v1198_v24  ;;  %v952_v40 = vand.u32 2147483647, %v951_v15  ;;  %v954_v1 = vcvt.s32.f32 %v947_v16  ;;  %v2020_v63 = vshrl.u32 %v2019_v29, 23 }
 0x16e   : > { %v1767_v43 = vshll.u32 %v1766_v11, 30  ;;  %v7237_v36 = vand.u32 8388607, %v2016_v14  ;;  %v1201_v62 = vshll.u32 %v5978_v6, %v1198_v24  ;;  %v1790_v52 = vsub.s32 4, %v1766_v11 }
 0x16f   : > { %v1202_v25 = vshrl.u32 %v9137_v57, %v1199_v5  ;;  %v1205_v58 = vshrl.u32 %v9138_v46, %v1199_v5  ;;  %v1208_v44 = vshrl.u32 %v9132_v4, %v1199_v5  ;;  %v955_v23 = vmul.f32 %v954_v1, %v952_v40 }
 0x170   : > { %v7239_v22 = vsub.s32 %v1764_v34, %v1767_v43  ;;  %v1211_v45 = vshrl.u32 %v9125_v19, %v1199_v5  ;;  %v1197_v17 = vshrl.u32 %v1196_v26, 5  ;;  %v1204_v49 = vshll.u32 %v9137_v57, %v1198_v24 }
 0x171   : > { %v1207_v8 = vshll.u32 %v9138_v46, %v1198_v24  ;;  %v956_v50 = vxor.u32 2147483648, %v955_v23  ;;  %v1203_v56 = vor.u32 %v1202_v25, %v1201_v62  ;;  %v1210_v30 = vshll.u32 %v9132_v4, %v1198_v24 }
 0x172   : > { %v1770_v10 = vsub.s32 0, %v7239_v22  ;;  %vm7249_vm0 = vcmp.le.f32.partialorder %v1704_v2, 0.7853982  ;;  %v1206_v34 = vor.u32 %v1205_v58, %v1204_v49  ;;  %v1213_v12 = vshll.u32 %v9125_v19, %v1198_v24 }
 0x173   : > { %v1209_v60 = vor.u32 %v1208_v44, %v1207_v8  ;;  %v1214_v29 = vshrl.u32 %v9133_v51, %v1199_v5  ;;  %v957_v16 = vsel %vm874_vm15, %v956_v50, %v955_v23  ;;  %v1212_v59 = vor.u32 %v1211_v45, %v1210_v30 }
 0x174   : > { %v5514_v54 = vmin.u32 %v1770_v10, %v7239_v22  ;;  %v5525_v26 = vadd.s32 4294967169, %v2020_v63  ;;  %v960_v2 = vsel %vm7132_vm1, %v6947_v39, %v957_v16  ;;  %v1791_v15 = vsel %vm1706_vm14, %v1790_v52, %v1766_v11 }
 0x175   : > { %v1200_v40 = vshrl.u32 %v5978_v6, %v1199_v5  ;;  %v1215_v1 = vor.u32 %v1214_v29, %v1213_v12  ;;  %vm1216_vm2 = vcmp.lt.s32.totalorder %v1197_v17, 1  ;;  %vm1217_vm3 = vcmp.lt.s32.totalorder %v1197_v17, 2 }
 0x176   : > { %v1772_v24 = vclz %v5514_v54  ;;  %vm1219_vm4 = vcmp.lt.s32.totalorder %v1197_v17, 4  ;;  %vm1091_vm15 = vcmp.gt.s32.totalorder %v7222_v7, 0  ;;  %5835 = vcosq.f32 %v960_v2 }
 0x177   : > { %vm1218_vm5 = vcmp.lt.s32.totalorder %v1197_v17, 3  ;;  %v1221_v43 = vsel %vm1219_vm4, %v1209_v60, 2102212464  ;;  %v1224_v63 = vsel %vm1216_vm2, %v1203_v56, %v1206_v34  ;;  %v1220_v58 = vsel %vm1216_vm2, %v1200_v40, %v1203_v56 }
 0x178   : > { %v5515_v25 = vadd.s32 4294967294, %v1772_v24  ;;  %v1225_v32 = vsel %vm1219_vm4, %v1212_v59, 920167782  ;;  %v1228_v44 = vsel %vm1216_vm2, %v1206_v34, %v1209_v60  ;;  %5837 = vsinq.f32 %v960_v2 }
 0x179   : > { %v1226_v23 = vsel %vm1218_vm5, %v1209_v60, %v1225_v32  ;;  %v1229_v11 = vsel %vm1219_vm4, %v1215_v1, 1326507024  ;;  %v2026_v62 = vadd.s32 1, %v5525_v26  ;;  %v1222_v5 = vsel %vm1218_vm5, %v1206_v34, %v1221_v43 }
 0x17a   : > { %vm5516_vm1 = vcmp.lt.s32.totalorder %v5515_v25, 0  ;;  %v1227_v45 = vsel %vm1217_vm3, %v1224_v63, %v1226_v23  ;;  %v1230_v52 = vsel %vm1218_vm5, %v1212_v59, %v1229_v11  ;;  %v1793_v60 = vsel %vm7249_vm0, 0, %v1791_v15 }
 0x17b   : > { %v1775_v49 = vsel %vm5516_vm1, 0, %v5515_v25  ;;  %v1231_v8 = vsel %vm1217_vm3, %v1228_v44, %v1230_v52  ;;  %v7268_v50 = vmul.u32.u64.low %v7230_v18, %v1227_v45  ;;  %v7269_v10 = vmul.u32.u64.high %v7230_v18, %v1227_v45, %v7268_v50 }
 0x17c   : > { %v1776_v56 = vsub.s32 32, %v1775_v49  ;;  %v1780_v30 = vsub.s32 4294967266, %v1775_v49  ;;  %vm2027_vm6 = vcmp.gt.s32.totalorder %v2026_v62, 0  ;;  %v1223_v12 = vsel %vm1217_vm3, %v1220_v58, %v1222_v5 }
 0x17d   : > { %v7276_v34 = vmul.u32.u64.low %v7230_v18, %v1231_v8  ;;  %v7277_v29 = vmul.u32.u64.high %v7230_v18, %v1231_v8, %v7276_v34  ;;  %v2028_v16 = vsel %vm2027_vm6, %v2026_v62, 0  ;;  %v1777_v54 = vshll.u32 %v7239_v22, %v1775_v49 }
 0x17e   : > { %v1778_v59 = vshrl.u32 %v7228_v33, %v1776_v56  ;;  %v1781_v26 = vadd.s32 127, %v1780_v30  ;;  %v2030_v2 = vand.u32 31, %v2028_v16  ;;  %v1797_v40 = vadd.s32 3, %v1793_v60 }
 0x17f   : > { %v1242_v1 = vadd.s32 1, %v7269_v10  ;;  %v7284_v15 = vadd.f32 %v6383_v3, %v6397_v9  ;;  %v7288_v17 = vadd.f32 %v6421_v27, %v6441_v42  ;;  %v7291_v22 = vadd.s32 4294967169, %v7218_v0 }
 0x180   : > { %v1779_v24 = vor.u32 %v1778_v59, %v1777_v54  ;;  %v1782_v43 = vshll.u32 %v1781_v26, 23  ;;  %v2031_v63 = vsub.s32 32, %v2030_v2  ;;  %v5836_v25 = vpop.eup %5835  ;;  %v7294_v33 = vadd.s32 4294967169, %v7075_v21 }
 0x181   : > { %v1239_v58 = vmul.u32 %v7230_v18, %v1223_v12  ;;  %vm1241_vm7 = vc.u32 %v7277_v29, %v7268_v50  ;;  %v7300_v3 = vadd.s32 1, %v7214_v31  ;;  %v7305_v9 = vsel %vm1091_vm15, %v7222_v7, 0 }
 0x182   : > { %v1783_v27 = vor.u32 4788187, %v1782_v43  ;;  %v1243_v42 = vsel %vm1241_vm7, %v1242_v1, %v7269_v10  ;;  %v5838_v0 = vpop.eup %5837  ;;  %vm968_vm8 = vcmp.eq.s32.totalorder %v7225_v35, 0  ;;  %vm971_vm9 = vcmp.eq.s32.totalorder %v7225_v35, 2 }
 0x183   : > { %v7310_v21 = vand.u32 3, %v1797_v40  ;;  %v1244_v18 = vadd.s32 %v1243_v42, %v1239_v58  ;;  %v2024_v32 = vor.u32 8388608, %v7237_v36  ;;  %v972_v31 = vxor.u32 2147483648, %v5836_v25 }
 0x184   : > { %v1784_v44 = vand.u32 2147483647, %v1783_v27  ;;  %v1786_v23 = vcvt.s32.f32 %v1779_v24  ;;  %v2034_v11 = vshrl.u32 %v9137_v57, %v2031_v63  ;;  %v2037_v62 = vshrl.u32 %v9138_v46, %v2031_v63 }
 0x185   : > { %v1245_v7 = vadd.s32 536870912, %v1244_v18  ;;  %v2039_v5 = vshll.u32 %v9138_v46, %v2030_v2  ;;  %v2040_v45 = vshrl.u32 %v9132_v4, %v2031_v63  ;;  %v2029_v49 = vshrl.u32 %v2028_v16, 5 }
 0x186   : > { %v1787_v52 = vmul.f32 %v1786_v23, %v1784_v44  ;;  %v2033_v8 = vshll.u32 %v5978_v6, %v2030_v2  ;;  %v2036_v10 = vshll.u32 %v9137_v57, %v2030_v2  ;;  %v969_v56 = vxor.u32 2147483648, %v5838_v0 }
 0x187   : > { %v1246_v36 = vshrl.u32 %v1245_v7, 30  ;;  %v2041_v30 = vor.u32 %v2040_v45, %v2039_v5  ;;  %v2043_v60 = vshrl.u32 %v9125_v19, %v2031_v63  ;;  %vm967_vm10 = vcmp.lt.s32.totalorder %v7225_v35, 2 }
 0x188   : > { %v1788_v12 = vxor.u32 2147483648, %v1787_v52  ;;  %v2042_v34 = vshll.u32 %v9132_v4, %v2030_v2  ;;  %v2045_v54 = vshll.u32 %v9125_v19, %v2030_v2  ;;  %v2046_v59 = vshrl.u32 %v9133_v51, %v2031_v63 }
 0x189   : > { %v973_v16 = vsel %vm971_vm9, %v972_v31, %v5838_v0  ;;  %v1247_v26 = vshll.u32 %v1246_v36, 30  ;;  %v2035_v40 = vor.u32 %v2034_v11, %v2033_v8  ;;  %v2038_v1 = vor.u32 %v2037_v62, %v2036_v10 }
 0x18a   : > { %v1789_v24 = vsel %vm1706_vm14, %v1788_v12, %v1787_v52  ;;  %v2044_v43 = vor.u32 %v2043_v60, %v2042_v34  ;;  %v2047_v58 = vor.u32 %v2046_v59, %v2045_v54  ;;  %vm2051_vm11 = vcmp.lt.s32.totalorder %v2029_v49, 4 }
 0x18b   : > { %vm964_vm12 = vweird.f32 %v6947_v39  ;;  %v1792_v2 = vsel %vm7249_vm0, %v7000_v20, %v1789_v24  ;;  %v7332_v27 = vsub.s32 %v1244_v18, %v1247_v26  ;;  %v2032_v42 = vshrl.u32 %v5978_v6, %v2031_v63 }
 0x18c   : > { %v2053_v0 = vsel %vm2051_vm11, %v2041_v30, 2102212464  ;;  %v970_v31 = vsel %vm968_vm8, %v5836_v25, %v969_v56  ;;  %5839 = vcosq.f32 %v1792_v2  ;;  %vm1186_vm13 = vcmp.lt.s32.totalorder %v7126_v38, 0 }
 0x18d   : > { %vm2048_vm14 = vcmp.lt.s32.totalorder %v2029_v49, 1  ;;  %vm2050_vm2 = vcmp.lt.s32.totalorder %v2029_v49, 3  ;;  %5841 = vsinq.f32 %v1792_v2  ;;  %v1250_v44 = vsub.s32 0, %v7332_v27 }
 0x18e   : > { %v2052_v23 = vsel %vm2048_vm14, %v2032_v42, %v2035_v40  ;;  %v2056_v13 = vsel %vm2048_vm14, %v2035_v40, %v2038_v1  ;;  %v2054_v11 = vsel %vm2050_vm2, %v2038_v1, %v2053_v0  ;;  %v2057_v18 = vsel %vm2051_vm11, %v2044_v43, 920167782 }
 0x18f   : > { %v2060_v7 = vsel %vm2048_vm14, %v2038_v1, %v2041_v30  ;;  %v2061_v63 = vsel %vm2051_vm11, %v2047_v58, 1326507024  ;;  %v5494_v62 = vmin.u32 %v1250_v44, %v7332_v27  ;;  %vm2049_vm0 = vcmp.lt.s32.totalorder %v2029_v49, 2 }
 0x190   : > { %v2058_v25 = vsel %vm2050_vm2, %v2041_v30, %v2057_v18  ;;  %v2062_v5 = vsel %vm2050_vm2, %v2044_v43, %v2061_v63  ;;  %v2064_v8 = vshll.u32 %v2024_v32, 8  ;;  %v7345_v10 = vadd.f32 %v6443_v47, %v7284_v15 }
 0x191   : > { %v2059_v45 = vsel %vm2049_vm0, %v2056_v13, %v2058_v25  ;;  %v2063_v52 = vsel %vm2049_vm0, %v2060_v7, %v2062_v5  ;;  %vm1923_vm3 = vcmp.gt.s32.totalorder %v7300_v3, 0  ;;  %v974_v56 = vsel %vm967_vm10, %v970_v31, %v973_v16 }
 0x192   : > { %v1252_v60 = vclz %v5494_v62  ;;  %v1270_v12 = vsub.s32 4, %v1246_v36  ;;  %v2055_v34 = vsel %vm2049_vm0, %v2052_v23, %v2054_v11  ;;  %vm1796_vm4 = vweird.f32 %v7000_v20 }
 0x193   : > { %v7350_v54 = vmul.u32.u64.low %v2064_v8, %v2063_v52  ;;  %v7351_v59 = vmul.u32.u64.high %v2064_v8, %v2063_v52, %v7350_v54  ;;  %v7353_v49 = vmul.u32.u64.low %v2064_v8, %v2059_v45  ;;  %v7354_v30 = vmul.u32.u64.high %v2064_v8, %v2059_v45, %v7353_v49 }
 0x194   : > { %vm1799_vm15 = vcmp.lt.s32.totalorder %v7310_v21, 2  ;;  %v5495_v47 = vadd.s32 4294967294, %v1252_v60  ;;  %v7361_v15 = vadd.f32 %v6464_v37, %v7288_v17  ;;  %v1395_v35 = vand.u32 2139095040, %v7345_v10  ;;  %v5767_v54 = vld [vmem:[%s9093_s4] sm:$0xff]  }
 0x195   : > { %v975_v32 = vsel %vm964_vm12, nan, %v974_v56  ;;  %vm1800_vm5 = vcmp.eq.s32.totalorder %v7310_v21, 0  ;;  %vm1803_vm1 = vcmp.eq.s32.totalorder %v7310_v21, 2  ;;  %v1240_v16 = vadd.s32 %v7268_v50, %v7277_v29 }
 0x196   : > { %vm5496_vm6 = vcmp.lt.s32.totalorder %v5495_v47, 0  ;;  %v1271_v26 = vsel %vm1186_vm13, %v1270_v12, %v1246_v36  ;;  %v2071_v40 = vmul.u32 %v2064_v8, %v2055_v34  ;;  %v1396_v1 = vshrl.u32 %v1395_v35, 23  ;;  %v5840_v37 = vpop.eup %5839 }
 0x197   : > { %v1255_v17 = vsel %vm5496_vm6, 0, %v5495_v47  ;;  %vm2073_vm7 = vc.u32 %v7351_v59, %v7353_v49  ;;  %v2074_v39 = vadd.s32 1, %v7354_v30  ;;  %v1392_v24 = vand.u32 2147483647, %v7345_v10  ;;  %v5842_v43 = vpop.eup %5841 }
 0x198   : > { %v1804_v58 = vxor.u32 2147483648, %v5840_v37  ;;  %v1256_v2 = vsub.s32 32, %v1255_v17  ;;  %v1260_v42 = vsub.s32 4294967266, %v1255_v17  ;;  %v2227_v50 = vand.u32 2139095040, %v7361_v15 }
 0x199   : > { %v1801_v29 = vxor.u32 2147483648, %v5842_v43  ;;  %v1257_v36 = vshll.u32 %v7332_v27, %v1255_v17  ;;  %v2075_v0 = vsel %vm2073_vm7, %v2074_v39, %v7354_v30  ;;  %v5501_v31 = vadd.s32 4294967169, %v1396_v1 }
 0x19a   : > { %v1805_v44 = vsel %vm1803_vm1, %v1804_v58, %v5842_v43  ;;  %v1258_v23 = vshrl.u32 %v1240_v16, %v1256_v2  ;;  %v1261_v13 = vadd.s32 127, %v1260_v42  ;;  %v2076_v11 = vadd.s32 %v2075_v0, %v2071_v40 }
 0x19b   : > { %v1802_v18 = vsel %vm1800_vm5, %v5840_v37, %v1801_v29  ;;  %v1399_v7 = vand.u32 8388607, %v1392_v24  ;;  %v1402_v63 = vadd.s32 1, %v5501_v31  ;;  %v2224_v62 = vand.u32 2147483647, %v7361_v15 }
 0x19c   : > { %v1806_v27 = vsel %vm1799_vm15, %v1802_v18, %v1805_v44  ;;  %v1259_v25 = vor.u32 %v1258_v23, %v1257_v36  ;;  %v1262_v5 = vshll.u32 %v1261_v13, 23  ;;  %v2077_v45 = vadd.s32 536870912, %v2076_v11 }
 0x19d   : > { %v7391_v52 = vsel %vm1923_vm3, %v7300_v3, 0  ;;  %v1807_v8 = vsel %vm1796_vm4, nan, %v1806_v27  ;;  %vm1403_vm8 = vcmp.gt.s32.totalorder %v1402_v63, 0  ;;  %v2228_v56 = vshrl.u32 %v2227_v50, 23 }
 0x19e   : > { %v2330_v60 = vpack.c.bf16 %v1807_v8, %v975_v32  ;;  %vm7397_vm9 = vcmp.le.f32.partialorder %v1184_v61, 0.7853982  ;;  %v1263_v21 = vor.u32 4788187, %v1262_v5  ;;  %v2078_v34 = vshrl.u32 %v2077_v45, 30 }
 0x19f   : > { %v1273_v3 = vsel %vm7397_vm9, 0, %v1271_v26  ;;  %v1400_v20 = vor.u32 8388608, %v1399_v7  ;;  %v1404_v30 = vsel %vm1403_vm8, %v1402_v63, 0  ;;  %v7408_v47 = vand.u32 8388607, %v2224_v62 }
 0x1a0   : > { %2883 = vmatpush1.bf16.msra.mxu1 %v2330_v60  ;;  %v1264_v61 = vand.u32 2147483647, %v1263_v21  ;;  %v1266_v35 = vcvt.s32.f32 %v1259_v25  ;;  %v2079_v32 = vshll.u32 %v2078_v34, 30  ;;  %v2102_v16 = vsub.s32 4, %v2078_v34 }
 0x1a1   : > { %vm2018_vm10 = vcmp.lt.s32.totalorder %v7193_v41, 0  ;;  %v1406_v40 = vand.u32 31, %v1404_v30  ;;  %v5533_v1 = vadd.s32 4294967169, %v2228_v56  ;;  %vm2640_vm11 = vcmask 130048  }
 0x1a2   : > { %v1267_v37 = vmul.f32 %v1266_v35, %v1264_v61  ;;  %v7411_v17 = vadd.s32 3, %v1273_v3  ;;  %vm7415_vm12 = vcmp.le.f32.partialorder %v2016_v14, 0.7853982  ;;  %v7419_v39 = vsub.s32 %v2076_v11, %v2079_v32  ;;  %5553 = vmatmul.mubr.msk.bf16.vlgmr.msra.gmra.mrb[0].mxu0 %vm2640_vm11, %v5767_v54 }
 0x1a3   : > { %v2072_v43 = vadd.s32 %v7353_v49, %v7351_v59  ;;  %v7424_v58 = vshrl.u32 %v1404_v30, 5  ;;  %v1407_v2 = vsub.s32 32, %v1406_v40  ;;  %v7426_v42 = vshll.u32 %v1400_v20, 8  ;;  %5569 = vmatmul.mubr.msk.bf16.vlgmr.msra.gmra.mrb[0].mxu1 %vm2640_vm11, %v5767_v54 }
 0x1a4   : > { %v9155_v50 = vmov 0   ;;  %v1268_v14 = vxor.u32 2147483648, %v1267_v37  ;;  %v2082_v29 = vsub.s32 0, %v7419_v39  ;;  %v2103_v36 = vsel %vm2018_vm10, %v2102_v16, %v2078_v34 }
 0x1a5   : > { %2731 = vmatprep.mubr.bf16.mxu0 %v9155_v50  ;;  %v2232_v0 = vor.u32 8388608, %v7408_v47  ;;  %2924 = vmatprep.mubr.bf16.mxu1 %v9155_v50  ;;  %v1410_v59 = vshrl.u32 %v9137_v57, %v1407_v2  ;;  %v1413_v49 = vshrl.u32 %v9138_v46, %v1407_v2  ;;  %v1416_v31 = vshrl.u32 %v9132_v4, %v1407_v2 }
 0x1a6   : > { %v2234_v44 = vadd.s32 1, %v5533_v1  ;;  %v1269_v23 = vsel %vm1186_vm13, %v1268_v14, %v1267_v37  ;;  %v5526_v13 = vmin.u32 %v2082_v29, %v7419_v39  ;;  %v1409_v11 = vshll.u32 %v5978_v6, %v1406_v40 }
 0x1a7   : > { %v1415_v18 = vshll.u32 %v9138_v46, %v1406_v40  ;;  %v1272_v7 = vsel %vm7397_vm9, %v7126_v38, %v1269_v23  ;;  %v2105_v63 = vsel %vm7415_vm12, 0, %v2103_v36  ;;  %v1412_v27 = vshll.u32 %v9137_v57, %v1406_v40 }
 0x1a8   : > { %vm1424_vm14 = vcmp.lt.s32.totalorder %v7424_v58, 1  ;;  %v2084_v25 = vclz %v5526_v13  ;;  %v1408_v5 = vshrl.u32 %v5978_v6, %v1407_v2  ;;  %v1411_v45 = vor.u32 %v1410_v59, %v1409_v11 }
 0x1a9   : > { %v1417_v8 = vor.u32 %v1416_v31, %v1415_v18  ;;  %5843 = vcosq.f32 %v1272_v7  ;;  %v1414_v56 = vor.u32 %v1413_v49, %v1412_v27  ;;  %v1418_v60 = vshll.u32 %v9132_v4, %v1406_v40 }
 0x1aa   : > { %v1419_v21 = vshrl.u32 %v9125_v19, %v1407_v2  ;;  %5845 = vsinq.f32 %v1272_v7  ;;  %v5527_v12 = vadd.s32 4294967294, %v2084_v25  ;;  %v1421_v34 = vshll.u32 %v9125_v19, %v1406_v40 }
 0x1ab   : > { %v1422_v54 = vshrl.u32 %v9133_v51, %v1407_v2  ;;  %vm1425_vm13 = vcmp.lt.s32.totalorder %v7424_v58, 2  ;;  %vm1426_vm2 = vcmp.lt.s32.totalorder %v7424_v58, 3  ;;  %vm1427_vm0 = vcmp.lt.s32.totalorder %v7424_v58, 4 }
 0x1ac   : > { %v1420_v3 = vor.u32 %v1419_v21, %v1418_v60  ;;  %vm5528_vm3 = vcmp.lt.s32.totalorder %v5527_v12, 0  ;;  %v1428_v30 = vsel %vm1424_vm14, %v1408_v5, %v1411_v45  ;;  %v1429_v61 = vsel %vm1427_vm0, %v1417_v8, 2102212464 }
 0x1ad   : > { %v1423_v20 = vor.u32 %v1422_v54, %v1421_v34  ;;  %v2087_v35 = vsel %vm5528_vm3, 0, %v5527_v12  ;;  %v1432_v32 = vsel %vm1424_vm14, %v1411_v45, %v1414_v56  ;;  %vm2235_vm4 = vcmp.gt.s32.totalorder %v2234_v44, 0 }
 0x1ae   : > { %v1433_v16 = vsel %vm1427_vm0, %v1420_v3, 920167782  ;;  %v2088_v40 = vsub.s32 32, %v2087_v35  ;;  %v2092_v1 = vsub.s32 4294967266, %v2087_v35  ;;  %v1430_v37 = vsel %vm1426_vm2, %v1414_v56, %v1429_v61 }
 0x1af   : > { %v1436_v2 = vsel %vm1424_vm14, %v1414_v56, %v1417_v8  ;;  %v2089_v14 = vshll.u32 %v7419_v39, %v2087_v35  ;;  %v1434_v29 = vsel %vm1426_vm2, %v1417_v8, %v1433_v16  ;;  %v1437_v36 = vsel %vm1427_vm0, %v1423_v20, 1326507024 }
 0x1b0   : > { %v2236_v59 = vsel %vm2235_vm4, %v2234_v44, 0  ;;  %v2090_v49 = vshrl.u32 %v2072_v43, %v2088_v40  ;;  %v2093_v31 = vadd.s32 127, %v2092_v1  ;;  %v1435_v23 = vsel %vm1425_vm13, %v1432_v32, %v1434_v29 }
 0x1b1   : > { %v1438_v13 = vsel %vm1426_vm2, %v1420_v3, %v1437_v36  ;;  %v2109_v11 = vadd.s32 3, %v2105_v63  ;;  %v7476_v7 = vmul.u32.u64.low %v7426_v42, %v1435_v23  ;;  %v7477_v39 = vmul.u32.u64.high %v7426_v42, %v1435_v23, %v7476_v7 }
 0x1b2   : > { %v1439_v18 = vsel %vm1425_vm13, %v1436_v2, %v1438_v13  ;;  %v2091_v27 = vor.u32 %v2090_v49, %v2089_v14  ;;  %v2094_v25 = vshll.u32 %v2093_v31, 23  ;;  %v7487_v45 = vshrl.u32 %v7305_v9, 5 }
 0x1b3   : > { %v7481_v43 = vmul.u32.u64.low %v7426_v42, %v1439_v18  ;;  %v7482_v44 = vmul.u32.u64.high %v7426_v42, %v1439_v18, %v7481_v43  ;;  %v7484_v5 = vpop.eup %5843  ;;  %v7490_v63 = vadd.s32 1, %v7294_v33  ;;  %v1431_v8 = vsel %vm1425_vm13, %v1428_v30, %v1430_v37 }
 0x1b4   : > { %v2238_v56 = vand.u32 31, %v2236_v59  ;;  %v5846_v60 = vpop.eup %5845  ;;  %v7495_v21 = vand.u32 31, %v7391_v52  ;;  %v7498_v12 = vand.u32 31, %v7305_v9  ;;  %v7501_v34 = vand.u32 3, %v7411_v17 }
 0x1b5   : > { %v2095_v54 = vor.u32 4788187, %v2094_v25  ;;  %v7503_v3 = vand.u32 3, %v2109_v11  ;;  %v1450_v33 = vadd.s32 1, %v7477_v39  ;;  %v7508_v58 = vshll.u32 %v2232_v0, 8 }
 0x1b6   : > { %v2239_v20 = vsub.s32 32, %v2238_v56  ;;  %v2098_v61 = vcvt.s32.f32 %v2091_v27  ;;  %v1447_v35 = vmul.u32 %v7426_v42, %v1431_v8  ;;  %vm1449_vm15 = vc.u32 %v7482_v44, %v7476_v7 }
 0x1b7   : > { %v2096_v30 = vand.u32 2147483647, %v2095_v54  ;;  %v1451_v9 = vsel %vm1449_vm15, %v1450_v33, %v7477_v39  ;;  %v2237_v17 = vshrl.u32 %v2236_v59, 5  ;;  %v2241_v32 = vshll.u32 %v5978_v6, %v2238_v56 }
 0x1b8   : > { %v2242_v16 = vshrl.u32 %v9137_v57, %v2239_v20  ;;  %vm1280_vm5 = vcmp.eq.s32.totalorder %v7501_v34, 0  ;;  %vm1283_vm1 = vcmp.eq.s32.totalorder %v7501_v34, 2  ;;  %v1284_v47 = vxor.u32 2147483648, %v7484_v5 }
 0x1b9   : > { %v2099_v0 = vmul.f32 %v2098_v61, %v2096_v30  ;;  %v1452_v40 = vadd.s32 %v1451_v9, %v1447_v35  ;;  %v2244_v42 = vshll.u32 %v9137_v57, %v2238_v56  ;;  %v2245_v37 = vshrl.u32 %v9138_v46, %v2239_v20 }
 0x1ba   : > { %v2243_v1 = vor.u32 %v2242_v16, %v2241_v32  ;;  %v2247_v2 = vshll.u32 %v9138_v46, %v2238_v56  ;;  %v2248_v14 = vshrl.u32 %v9132_v4, %v2239_v20  ;;  %v2250_v59 = vshll.u32 %v9132_v4, %v2238_v56 }
 0x1bb   : > { %v2100_v29 = vxor.u32 2147483648, %v2099_v0  ;;  %v1453_v36 = vadd.s32 536870912, %v1452_v40  ;;  %v2251_v49 = vshrl.u32 %v9125_v19, %v2239_v20  ;;  %v2246_v31 = vor.u32 %v2245_v37, %v2244_v42 }
 0x1bc   : > { %v2249_v23 = vor.u32 %v2248_v14, %v2247_v2  ;;  %v2253_v13 = vshll.u32 %v9125_v19, %v2238_v56  ;;  %v2254_v11 = vshrl.u32 %v9133_v51, %v2239_v20  ;;  %vm2256_vm6 = vcmp.lt.s32.totalorder %v2237_v17, 1 }
 0x1bd   : > { %v2101_v18 = vsel %vm2018_vm10, %v2100_v29, %v2099_v0  ;;  %v7529_v39 = vshrl.u32 %v1453_v36, 30  ;;  %v2252_v27 = vor.u32 %v2251_v49, %v2250_v59  ;;  %v1281_v25 = vxor.u32 2147483648, %v5846_v60 }
 0x1be   : > { %v2104_v43 = vsel %vm7415_vm12, %v7193_v41, %v2101_v18  ;;  %v2255_v8 = vor.u32 %v2254_v11, %v2253_v13  ;;  %vm2257_vm7 = vcmp.lt.s32.totalorder %v2237_v17, 2  ;;  %vm2258_vm8 = vcmp.lt.s32.totalorder %v2237_v17, 3 }
 0x1bf   : > { %5847 = vcosq.f32 %v2104_v43  ;;  %v1455_v54 = vshll.u32 %v7529_v39, 30  ;;  %vm2259_vm9 = vcmp.lt.s32.totalorder %v2237_v17, 4  ;;  %v2264_v33 = vsel %vm2256_vm6, %v2243_v1, %v2246_v31 }
 0x1c0   : > { %5849 = vsinq.f32 %v2104_v43  ;;  %v2261_v56 = vsel %vm2259_vm9, %v2249_v23, 2102212464  ;;  %v2265_v30 = vsel %vm2259_vm9, %v2252_v27, 920167782  ;;  %v2240_v35 = vshrl.u32 %v5978_v6, %v2239_v20 }
 0x1c1   : > { %v7536_v61 = vsub.s32 %v1452_v40, %v1455_v54  ;;  %v2266_v9 = vsel %vm2258_vm8, %v2249_v23, %v2265_v30  ;;  %v2268_v26 = vsel %vm2256_vm6, %v2246_v31, %v2249_v23  ;;  %v1282_v32 = vsel %vm1280_vm5, %v7484_v5, %v1281_v25 }
 0x1c2   : > { %v1285_v16 = vsel %vm1283_vm1, %v1284_v47, %v5846_v60  ;;  %v2267_v0 = vsel %vm2257_vm7, %v2264_v33, %v2266_v9  ;;  %v2269_v42 = vsel %vm2259_vm9, %v2255_v8, 1326507024  ;;  %v2260_v40 = vsel %vm2256_vm6, %v2240_v35, %v2243_v1 }
 0x1c3   : > { %v1458_v37 = vsub.s32 0, %v7536_v61  ;;  %v2262_v20 = vsel %vm2258_vm8, %v2246_v31, %v2261_v56  ;;  %v2270_v2 = vsel %vm2258_vm8, %v2252_v27, %v2269_v42  ;;  %vm1279_vm10 = vcmp.lt.s32.totalorder %v7501_v34, 2 }
 0x1c4   : > { %v2271_v14 = vsel %vm2257_vm7, %v2268_v26, %v2270_v2  ;;  %v7554_v5 = vmul.u32.u64.low %v7508_v58, %v2267_v0  ;;  %v7555_v29 = vmul.u32.u64.high %v7508_v58, %v2267_v0, %v7554_v5  ;;  %v1286_v60 = vsel %vm1279_vm10, %v1282_v32, %v1285_v16 }
 0x1c5   : > { %v5502_v47 = vmin.u32 %v1458_v37, %v7536_v61  ;;  %v7560_v36 = vmul.u32.u64.low %v7508_v58, %v2271_v14  ;;  %v7561_v59 = vmul.u32.u64.high %v7508_v58, %v2271_v14, %v7560_v36  ;;  %vm1276_vm12 = vweird.f32 %v7126_v38 }
 0x1c6   : > { %vm2108_vm14 = vweird.f32 %v7193_v41  ;;  %v2263_v34 = vsel %vm2257_vm7, %v2260_v40, %v2262_v20  ;;  %v1080_v1 = vand.u32 2147483647, %v6797_v55  ;;  %vm2111_vm13 = vcmp.lt.s32.totalorder %v7503_v3, 2 }
 0x1c7   : > { %vm2112_vm2 = vcmp.eq.s32.totalorder %v7503_v3, 0  ;;  %vm2115_vm0 = vcmp.eq.s32.totalorder %v7503_v3, 2  ;;  %v1460_v49 = vclz %v5502_v47  ;;  %v1287_v31 = vsel %vm1276_vm12, nan, %v1286_v60 }
 0x1c8   : > { %v1448_v23 = vadd.s32 %v7476_v7, %v7482_v44  ;;  %v2282_v13 = vadd.s32 1, %v7555_v29  ;;  %v1095_v38 = vsub.s32 32, %v7498_v12  ;;  %v1478_v18 = vsub.s32 4, %v7529_v39 }
 0x1c9   : > { %v5848_v11 = vpop.eup %5847  ;;  %v5503_v17 = vadd.s32 4294967294, %v1460_v49  ;;  %v2279_v27 = vmul.u32 %v7508_v58, %v2263_v34  ;;  %vm2281_vm3 = vc.u32 %v7561_v59, %v7554_v5  ;;  %v7581_v7 = vand.u32 8388607, %v1080_v1 }
 0x1ca   : > { %v5850_v25 = vpop.eup %5849  ;;  %v2116_v43 = vxor.u32 2147483648, %v5848_v11  ;;  %v2283_v8 = vsel %vm2281_vm3, %v2282_v13, %v7555_v29  ;;  %v1097_v44 = vshll.u32 %v5978_v6, %v7498_v12  ;;  %v1100_v58 = vshll.u32 %v9137_v57, %v7498_v12 }
 0x1cb   : > { %v2113_v54 = vxor.u32 2147483648, %v5850_v25  ;;  %vm5504_vm4 = vcmp.lt.s32.totalorder %v5503_v17, 0  ;;  %v2284_v56 = vadd.s32 %v2283_v8, %v2279_v27  ;;  %v1098_v35 = vshrl.u32 %v9137_v57, %v1095_v38 }
 0x1cc   : > { %v2117_v33 = vsel %vm2115_vm0, %v2116_v43, %v5850_v25  ;;  %v1463_v30 = vsel %vm5504_vm4, 0, %v5503_v17  ;;  %v1101_v9 = vshrl.u32 %v9138_v46, %v1095_v38  ;;  %v1104_v0 = vshrl.u32 %v9132_v4, %v1095_v38 }
 0x1cd   : > { %v2114_v26 = vsel %vm2112_vm2, %v5848_v11, %v2113_v54  ;;  %v1464_v32 = vsub.s32 32, %v1463_v30  ;;  %v1468_v16 = vsub.s32 4294967266, %v1463_v30  ;;  %v2285_v37 = vadd.s32 536870912, %v2284_v56 }
 0x1ce   : > { %v2118_v42 = vsel %vm2111_vm13, %v2114_v26, %v2117_v33  ;;  %v1106_v40 = vshll.u32 %v9132_v4, %v7498_v12  ;;  %v1107_v20 = vshrl.u32 %v9125_v19, %v1095_v38  ;;  %v1465_v14 = vshll.u32 %v7536_v61, %v1463_v30 }
 0x1cf   : > { %v2119_v2 = vsel %vm2108_vm14, nan, %v2118_v42  ;;  %v1466_v29 = vshrl.u32 %v1448_v23, %v1464_v32  ;;  %v1469_v60 = vadd.s32 127, %v1468_v16  ;;  %v2286_v36 = vshrl.u32 %v2285_v37, 30 }
 0x1d0   : > { %v2333_v47 = vpack.c.bf16 %v2119_v2, %v1287_v31  ;;  %v1103_v34 = vshll.u32 %v9138_v46, %v7498_v12  ;;  %v1110_v3 = vshrl.u32 %v9133_v51, %v1095_v38  ;;  %v1108_v11 = vor.u32 %v1107_v20, %v1106_v40 }
 0x1d1   : > { %v1467_v49 = vor.u32 %v1466_v29, %v1465_v14  ;;  %v1470_v13 = vshll.u32 %v1469_v60, 23  ;;  %v1109_v17 = vshll.u32 %v9125_v19, %v7498_v12  ;;  %vm1299_vm15 = vcmp.gt.s32.totalorder %v7490_v63, 0 }
 0x1d2   : > { %3075 = vmatprep.subr.bf16.mxu0 %v2333_v47  ;;  %v2287_v41 = vshll.u32 %v2286_v36, 30  ;;  %v1099_v61 = vor.u32 %v1098_v35, %v1097_v44  ;;  %v1102_v23 = vor.u32 %v1101_v9, %v1100_v58  ;;  %v1105_v27 = vor.u32 %v1104_v0, %v1103_v34 }
 0x1d3   : > { %vm7610_vm5 = vcmp.le.f32.partialorder %v1392_v24, 0.7853982  ;;  %vm1394_vm1 = vcmp.lt.s32.totalorder %v7345_v10, 0  ;;  %v1471_v25 = vor.u32 4788187, %v1470_v13  ;;  %v1111_v43 = vor.u32 %v1110_v3, %v1109_v17 }
 0x1d4   : > { %v7615_v8 = vsub.s32 %v2284_v56, %v2287_v41  ;;  %v1088_v12 = vor.u32 8388608, %v7581_v7  ;;  %vm1112_vm6 = vcmp.lt.s32.totalorder %v7487_v45, 1  ;;  %vm1115_vm7 = vcmp.lt.s32.totalorder %v7487_v45, 4 }
 0x1d5   : > { %v1472_v44 = vand.u32 2147483647, %v1471_v25  ;;  %v1474_v54 = vcvt.s32.f32 %v1467_v49  ;;  %vm1114_vm8 = vcmp.lt.s32.totalorder %v7487_v45, 3  ;;  %v1121_v24 = vsel %vm1115_vm7, %v1108_v11, 920167782 }
 0x1d6   : > { %v1479_v58 = vsel %vm1394_vm1, %v1478_v18, %v7529_v39  ;;  %v2290_v33 = vsub.s32 0, %v7615_v8  ;;  %v1120_v56 = vsel %vm1112_vm6, %v1099_v61, %v1102_v23  ;;  %v1122_v7 = vsel %vm1114_vm8, %v1105_v27, %v1121_v24 }
 0x1d7   : > { %v1475_v30 = vmul.f32 %v1474_v54, %v1472_v44  ;;  %v1096_v35 = vshrl.u32 %v5978_v6, %v1095_v38  ;;  %v1124_v9 = vsel %vm1112_vm6, %v1102_v23, %v1105_v27  ;;  %v1125_v26 = vsel %vm1115_vm7, %v1111_v43, 1326507024 }
 0x1d8   : > { %v5534_v32 = vmin.u32 %v2290_v33, %v7615_v8  ;;  %vm1113_vm9 = vcmp.lt.s32.totalorder %v7487_v45, 2  ;;  %v1117_v39 = vsel %vm1115_vm7, %v1105_v27, 2102212464  ;;  %v1126_v18 = vsel %vm1114_vm8, %v1108_v11, %v1125_v26  ;;  %v7711_v26 = vld [vmem:[%s9093_s4 + $0x10] sm:$0xff]  }
 0x1d9   : > { %v1476_v16 = vxor.u32 2147483648, %v1475_v30  ;;  %v1123_v0 = vsel %vm1113_vm9, %v1120_v56, %v1122_v7  ;;  %v1127_v42 = vsel %vm1113_vm9, %v1124_v9, %v1126_v18  ;;  %v1128_v38 = vshll.u32 %v1088_v12, 8 }
 0x1da   : > { %v1481_v37 = vsel %vm7610_vm5, 0, %v1479_v58  ;;  %v2292_v40 = vclz %v5534_v32  ;;  %v2310_v20 = vsub.s32 4, %v2286_v36  ;;  %v1116_v2 = vsel %vm1112_vm6, %v1096_v35, %v1099_v61 }
 0x1db   : > { %v1477_v14 = vsel %vm1394_vm1, %v1476_v16, %v1475_v30  ;;  %v1118_v29 = vsel %vm1114_vm8, %v1102_v23, %v1117_v39  ;;  %v7648_v60 = vmul.u32.u64.low %v1128_v38, %v1127_v42  ;;  %v7649_v47 = vmul.u32.u64.high %v1128_v38, %v1127_v42, %v7648_v60 }
 0x1dc   : > { %v1480_v34 = vsel %vm7610_vm5, %v7345_v10, %v1477_v14  ;;  %v5535_v3 = vadd.s32 4294967294, %v2292_v40  ;;  %v7654_v49 = vmul.u32.u64.low %v1128_v38, %v1123_v0  ;;  %v7655_v13 = vmul.u32.u64.high %v1128_v38, %v1123_v0, %v7654_v49 }
 0x1dd   : > { %v7661_v11 = vsel %vm1299_vm15, %v7490_v63, 0  ;;  %v1485_v17 = vadd.s32 3, %v1481_v37  ;;  %vm7665_vm10 = vcmp.le.f32.partialorder %v2224_v62, 0.7853982  ;;  %vm2226_vm12 = vcmp.lt.s32.totalorder %v7361_v15, 0  ;;  %v7677_v63 = vld [vmem:[%s9093_s4 + $0x8] sm:$0xff]  }
 0x1de   : > { %5851 = vcosq.f32 %v1480_v34  ;;  %vm5536_vm14 = vcmp.lt.s32.totalorder %v5535_v3, 0  ;;  %v2311_v61 = vsel %vm2226_vm12, %v2310_v20, %v2286_v36  ;;  %v1119_v23 = vsel %vm1113_vm9, %v1116_v2, %v1118_v29  ;;  %5554 = vmatmul.mubr.msk.bf16.gmra.mrb[4].mxu0 %vm2640_vm11, %v7677_v63  ;;  %5570 = vmatmul.mubr.msk.bf16.gmra.mrb[4].mxu1 %vm2640_vm11, %v7677_v63 }
 0x1df   : > { %5853 = vsinq.f32 %v1480_v34  ;;  %v2280_v62 = vadd.s32 %v7554_v5, %v7561_v59  ;;  %v2295_v27 = vsel %vm5536_vm14, 0, %v5535_v3  ;;  %vm1137_vm13 = vc.u32 %v7649_v47, %v7654_v49  ;;  %2741 = vmatprep.mubr.bf16.mxu0 %v9155_v50  ;;  %2934 = vmatprep.mubr.bf16.mxu1 %v9155_v50 }
 0x1e0   : > { %v2296_v31 = vsub.s32 32, %v2295_v27  ;;  %v2300_v25 = vsub.s32 4294967266, %v2295_v27  ;;  %v1138_v36 = vadd.s32 1, %v7655_v13  ;;  %v1927_v45 = vsub.s32 32, %v7495_v21 }
 0x1e1   : > { %v7690_v43 = vadd.s32 1, %v7291_v22  ;;  %v2313_v5 = vsel %vm7665_vm10, 0, %v2311_v61  ;;  %v1135_v59 = vmul.u32 %v1128_v38, %v1119_v23  ;;  %v1912_v12 = vand.u32 2147483647, %v6815_v28 }
 0x1e2   : > { %v2297_v44 = vshll.u32 %v7615_v8, %v2295_v27  ;;  %v2298_v54 = vshrl.u32 %v2280_v62, %v2296_v31  ;;  %v2301_v24 = vadd.s32 127, %v2300_v25  ;;  %v1139_v58 = vsel %vm1137_vm13, %v1138_v36, %v7655_v13 }
 0x1e3   : > { %v7700_v33 = vshrl.u32 %v7391_v52, 5  ;;  %v7703_v22 = vand.u32 31, %v7661_v11  ;;  %v7705_v56 = vand.u32 3, %v1485_v17  ;;  %v1140_v7 = vadd.s32 %v1139_v58, %v1135_v59 }
 0x1e4   : > { %v2299_v30 = vor.u32 %v2298_v54, %v2297_v44  ;;  %v2302_v35 = vshll.u32 %v2301_v24, 23  ;;  %v2317_v9 = vadd.s32 3, %v2313_v5  ;;  %v1939_v8 = vshrl.u32 %v9125_v19, %v1927_v45  ;;  %v7751_v24 = vld [vmem:[%s9093_s4 + $0x18] sm:$0xff]  }
 0x1e5   : > { %v1141_v32 = vadd.s32 536870912, %v1140_v7  ;;  %v1930_v52 = vshrl.u32 %v9137_v57, %v1927_v45  ;;  %v1933_v39 = vshrl.u32 %v9138_v46, %v1927_v45  ;;  %v1936_v18 = vshrl.u32 %v9132_v4, %v1927_v45 }
 0x1e6   : > { %v2303_v16 = vor.u32 4788187, %v2302_v35  ;;  %v1919_v0 = vand.u32 8388607, %v1912_v12  ;;  %v1938_v42 = vshll.u32 %v9132_v4, %v7495_v21  ;;  %v1942_v38 = vshrl.u32 %v9133_v51, %v1927_v45  ;;  %5555 = vmatmul.mubr.msk.bf16.gmra.mrb[8].mxu0 %vm2640_vm11, %v7711_v26  ;;  %5571 = vmatmul.mubr.msk.bf16.gmra.mrb[8].mxu1 %vm2640_vm11, %v7711_v26 }
 0x1e7   : > { %v7721_v37 = vshrl.u32 %v1141_v32, 30  ;;  %v1929_v40 = vshll.u32 %v5978_v6, %v7495_v21  ;;  %v1932_v20 = vshll.u32 %v9137_v57, %v7495_v21  ;;  %v1935_v2 = vshll.u32 %v9138_v46, %v7495_v21  ;;  %2751 = vmatprep.mubr.bf16.mxu0 %v9155_v50  ;;  %2944 = vmatprep.mubr.bf16.mxu1 %v9155_v50 }
 0x1e8   : > { %v5852_v14 = vpop.eup %5851  ;;  %v2304_v29 = vand.u32 2147483647, %v2303_v16  ;;  %v2306_v60 = vcvt.s32.f32 %v2299_v30  ;;  %v1940_v34 = vor.u32 %v1939_v8, %v1938_v42  ;;  %v1941_v3 = vshll.u32 %v9125_v19, %v7495_v21 }
 0x1e9   : > { %v5854_v13 = vpop.eup %5853  ;;  %vm1488_vm2 = vcmp.eq.s32.totalorder %v7705_v56, 0  ;;  %vm1491_vm0 = vcmp.eq.s32.totalorder %v7705_v56, 2  ;;  %v1143_v17 = vshll.u32 %v7721_v37, 30  ;;  %v1931_v61 = vor.u32 %v1930_v52, %v1929_v40 }
 0x1ea   : > { %v1934_v23 = vor.u32 %v1933_v39, %v1932_v20  ;;  %v1937_v62 = vor.u32 %v1936_v18, %v1935_v2  ;;  %v2307_v21 = vmul.f32 %v2306_v60, %v2304_v29  ;;  %v7740_v27 = vand.u32 3, %v2317_v9 }
 0x1eb   : > { %v1920_v31 = vor.u32 8388608, %v1919_v0  ;;  %v1943_v25 = vor.u32 %v1942_v38, %v1941_v3  ;;  %v7742_v36 = vsub.s32 %v1140_v7, %v1143_v17  ;;  %v1928_v5 = vshrl.u32 %v5978_v6, %v1927_v45 }
 0x1ec   : > { %vm1944_vm3 = vcmp.lt.s32.totalorder %v7700_v33, 1  ;;  %vm1947_vm4 = vcmp.lt.s32.totalorder %v7700_v33, 4  ;;  %v1492_v59 = vxor.u32 2147483648, %v5852_v14  ;;  %v2308_v44 = vxor.u32 2147483648, %v2307_v21 }
 0x1ed   : > { %vm1946_vm15 = vcmp.lt.s32.totalorder %v7700_v33, 3  ;;  %v1953_v54 = vsel %vm1947_vm4, %v1940_v34, 920167782  ;;  %v1489_v58 = vxor.u32 2147483648, %v5854_v13  ;;  %v1146_v7 = vsub.s32 0, %v7742_v36 }
 0x1ee   : > { %v1952_v45 = vsel %vm1944_vm3, %v1931_v61, %v1934_v23  ;;  %v1954_v30 = vsel %vm1946_vm15, %v1937_v62, %v1953_v54  ;;  %v2309_v35 = vsel %vm2226_vm12, %v2308_v44, %v2307_v21  ;;  %v1949_v9 = vsel %vm1947_vm4, %v1937_v62, 2102212464  ;;  %5556 = vmatmul.mubr.msk.bf16.gmra.mrb[12].mxu0 %vm2640_vm11, %v7751_v24  ;;  %5572 = vmatmul.mubr.msk.bf16.gmra.mrb[12].mxu1 %vm2640_vm11, %v7751_v24 }
 0x1ef   : > { %v1956_v8 = vsel %vm1944_vm3, %v1934_v23, %v1937_v62  ;;  %v1957_v32 = vsel %vm1947_vm4, %v1943_v25, 1326507024  ;;  %v2312_v52 = vsel %vm7665_vm10, %v7361_v15, %v2309_v35  ;;  %v5490_v39 = vmin.u32 %v1146_v7, %v7742_v36  ;;  %2761 = vmatprep.mubr.bf16.mxu0 %v9155_v50  ;;  %2954 = vmatprep.mubr.bf16.mxu1 %v9155_v50 }
 0x1f0   : > { %vm1945_vm5 = vcmp.lt.s32.totalorder %v7700_v33, 2  ;;  %v1958_v18 = vsel %vm1946_vm15, %v1940_v34, %v1957_v32  ;;  %5855 = vcosq.f32 %v2312_v52  ;;  %v1960_v42 = vshll.u32 %v1920_v31, 8 }
 0x1f1   : > { %v1955_v16 = vsel %vm1945_vm5, %v1952_v45, %v1954_v30  ;;  %v1959_v0 = vsel %vm1945_vm5, %v1956_v8, %v1958_v18  ;;  %5857 = vsinq.f32 %v2312_v52  ;;  %v1148_v41 = vclz %v5490_v39 }
 0x1f2   : > { %v1948_v38 = vsel %vm1944_vm3, %v1928_v5, %v1931_v61  ;;  %v1950_v40 = vsel %vm1946_vm15, %v1934_v23, %v1949_v9  ;;  %v1490_v20 = vsel %vm1488_vm2, %v5852_v14, %v1489_v58  ;;  %v1493_v2 = vsel %vm1491_vm0, %v1492_v59, %v5854_v13 }
 0x1f3   : > { %v7787_v29 = vmul.u32.u64.low %v1960_v42, %v1959_v0  ;;  %v7788_v60 = vmul.u32.u64.high %v1960_v42, %v1959_v0, %v7787_v29  ;;  %v7791_v34 = vshrl.u32 %v7661_v11, 5  ;;  %v5491_v3 = vadd.s32 4294967294, %v1148_v41  ;;  %v7807_v11 = vld [vmem:[%s9093_s4 + $0x20] sm:$0xff]  }
 0x1f4   : > { %v7793_v17 = vmul.u32.u64.low %v1960_v42, %v1955_v16  ;;  %v7794_v61 = vmul.u32.u64.high %v1960_v42, %v1955_v16, %v7793_v17  ;;  %vm1484_vm1 = vweird.f32 %v7345_v10  ;;  %vm1487_vm6 = vcmp.lt.s32.totalorder %v7705_v56, 2 }
 0x1f5   : > { %v1951_v14 = vsel %vm1945_vm5, %v1948_v38, %v1950_v40  ;;  %v7802_v13 = vsub.s32 32, %v7703_v22  ;;  %vm2131_vm7 = vcmp.gt.s32.totalorder %v7690_v43, 0  ;;  %v1494_v23 = vsel %vm1487_vm6, %v1490_v20, %v1493_v2  ;;  %v7851_v40 = vld [vmem:[%s9093_s4 + $0x28] sm:$0xff]  }
 0x1f6   : > { %vm2320_vm8 = vcmp.eq.s32.totalorder %v7740_v27, 0  ;;  %vm5492_vm9 = vcmp.lt.s32.totalorder %v5491_v3, 0  ;;  %v1288_v62 = vand.u32 2147483647, %v6801_v53  ;;  %vm2319_vm10 = vcmp.lt.s32.totalorder %v7740_v27, 2  ;;  %5557 = vmatmul.mubr.msk.bf16.gmra.mrb[16].mxu0 %vm2640_vm11, %v7807_v11  ;;  %5573 = vmatmul.mubr.msk.bf16.gmra.mrb[16].mxu1 %vm2640_vm11, %v7807_v11 }
 0x1f7   : > { %vm2323_vm12 = vcmp.eq.s32.totalorder %v7740_v27, 2  ;;  %v1136_v33 = vadd.s32 %v7654_v49, %v7649_v47  ;;  %v1151_v56 = vsel %vm5492_vm9, 0, %v5491_v3  ;;  %vm1969_vm14 = vc.u32 %v7788_v60, %v7793_v17  ;;  %2771 = vmatprep.mubr.bf16.mxu0 %v9155_v50  ;;  %2964 = vmatprep.mubr.bf16.mxu1 %v9155_v50 }
 0x1f8   : > { %vm2316_vm13 = vweird.f32 %v7361_v15  ;;  %v1152_v21 = vsub.s32 32, %v1151_v56  ;;  %v1156_v31 = vsub.s32 4294967266, %v1151_v56  ;;  %v1967_v25 = vmul.u32 %v1960_v42, %v1951_v14 }
 0x1f9   : > { %v1970_v5 = vadd.s32 1, %v7794_v61  ;;  %v1495_v59 = vsel %vm1484_vm1, nan, %v1494_v23  ;;  %v1305_v44 = vshll.u32 %v5978_v6, %v7703_v22  ;;  %v1306_v47 = vshrl.u32 %v9137_v57, %v7802_v13 }
 0x1fa   : > { %v1308_v49 = vshll.u32 %v9137_v57, %v7703_v22  ;;  %v1154_v54 = vshrl.u32 %v1136_v33, %v1152_v21  ;;  %v1157_v58 = vadd.s32 127, %v1156_v31  ;;  %v1295_v7 = vand.u32 8388607, %v1288_v62  ;;  %v5856_v45 = vpop.eup %5855 }
 0x1fb   : > { %v1971_v10 = vsel %vm1969_vm14, %v1970_v5, %v7794_v61  ;;  %v1309_v35 = vshrl.u32 %v9138_v46, %v7802_v13  ;;  %v1311_v9 = vshll.u32 %v9138_v46, %v7703_v22  ;;  %v1312_v8 = vshrl.u32 %v9132_v4, %v7802_v13  ;;  %v5858_v32 = vpop.eup %5857 }
 0x1fc   : > { %v1972_v30 = vadd.s32 %v1971_v10, %v1967_v25  ;;  %v2324_v52 = vxor.u32 2147483648, %v5856_v45  ;;  %v1153_v39 = vshll.u32 %v7742_v36, %v1151_v56  ;;  %v1158_v18 = vshll.u32 %v1157_v58, 23 }
 0x1fd   : > { %v1315_v16 = vshrl.u32 %v9125_v19, %v7802_v13  ;;  %v2321_v0 = vxor.u32 2147483648, %v5858_v32  ;;  %v1307_v41 = vor.u32 %v1306_v47, %v1305_v44  ;;  %v1314_v38 = vshll.u32 %v9132_v4, %v7703_v22 }
 0x1fe   : > { %v1973_v42 = vadd.s32 536870912, %v1972_v30  ;;  %v2325_v20 = vsel %vm2323_vm12, %v2324_v52, %v5858_v32  ;;  %v1155_v2 = vor.u32 %v1154_v54, %v1153_v39  ;;  %v1159_v36 = vor.u32 4788187, %v1158_v18  ;;  %5558 = vmatmul.mubr.msk.bf16.gmra.mrb[20].mxu0 %vm2640_vm11, %v7851_v40  ;;  %5574 = vmatmul.mubr.msk.bf16.gmra.mrb[20].mxu1 %vm2640_vm11, %v7851_v40 }
 0x1ff   : > { %v1318_v29 = vshrl.u32 %v9133_v51, %v7802_v13  ;;  %v2322_v3 = vsel %vm2320_vm8, %v5856_v45, %v2321_v0  ;;  %v1310_v14 = vor.u32 %v1309_v35, %v1308_v49  ;;  %v1313_v23 = vor.u32 %v1312_v8, %v1311_v9  ;;  %2781 = vmatprep.mubr.bf16.mxu0 %v9155_v50 }
 0x200   : > { %v7859_v61 = vshrl.u32 %v1973_v42, 30  ;;  %v2326_v33 = vsel %vm2319_vm10, %v2322_v3, %v2325_v20  ;;  %v1160_v56 = vand.u32 2147483647, %v1159_v36  ;;  %v1316_v21 = vor.u32 %v1315_v16, %v1314_v38  ;;  %2974 = vmatprep.mubr.bf16.mxu1 %v9155_v50 }
 0x201   : > { %v1317_v31 = vshll.u32 %v9125_v19, %v7703_v22  ;;  %v7868_v25 = vsel %vm2131_vm7, %v7690_v43, 0  ;;  %v2327_v5 = vsel %vm2316_vm13, nan, %v2326_v33  ;;  %v1296_v47 = vor.u32 8388608, %v1295_v7 }
 0x202   : > { %v1975_v44 = vshll.u32 %v7859_v61, 30  ;;  %v2335_v27 = vpack.c.bf16 %v2327_v5, %v1495_v59  ;;  %v1162_v49 = vcvt.s32.f32 %v1155_v2  ;;  %vm1320_vm2 = vcmp.lt.s32.totalorder %v7791_v34, 1 }
 0x203   : > { %v1319_v22 = vor.u32 %v1318_v29, %v1317_v31  ;;  %v1304_v43 = vshrl.u32 %v5978_v6, %v7802_v13  ;;  %vm1323_vm0 = vcmp.lt.s32.totalorder %v7791_v34, 4  ;;  %v1328_v54 = vsel %vm1320_vm2, %v1307_v41, %v1310_v14  ;;  %v7895_v13 = vld [vmem:[%s9093_s4 + $0x30] sm:$0xff]  }
 0x204   : > { %v7880_v15 = vsub.s32 %v1972_v30, %v1975_v44  ;;  %3268 = vmatprep.subr.bf16.mxu1 %v2335_v27  ;;  %v1163_v59 = vmul.f32 %v1162_v49, %v1160_v56  ;;  %vm1322_vm3 = vcmp.lt.s32.totalorder %v7791_v34, 3  ;;  %v1325_v58 = vsel %vm1323_vm0, %v1313_v23, 2102212464 }
 0x205   : > { %v1329_v10 = vsel %vm1323_vm0, %v1316_v21, 920167782  ;;  %vm1321_vm4 = vcmp.lt.s32.totalorder %v7791_v34, 2  ;;  %v1332_v30 = vsel %vm1320_vm2, %v1310_v14, %v1313_v23  ;;  %v1166_v35 = vsub.s32 4, %v7721_v37  ;;  %v7937_v34 = vld [vmem:[%s9093_s4 + $0x38] sm:$0xff]  }
 0x206   : > { %v1978_v7 = vsub.s32 0, %v7880_v15  ;;  %v1330_v45 = vsel %vm1322_vm3, %v1313_v23, %v1329_v10  ;;  %v1333_v8 = vsel %vm1323_vm0, %v1319_v22, 1326507024  ;;  %v1336_v32 = vshll.u32 %v1296_v47, 8  ;;  %5559 = vmatmul.mubr.msk.bf16.gmra.mrb[24].mxu0 %vm2640_vm11, %v7895_v13  ;;  %5575 = vmatmul.mubr.msk.bf16.gmra.mrb[24].mxu1 %vm2640_vm11, %v7895_v13 }
 0x207   : > { %v1331_v9 = vsel %vm1321_vm4, %v1328_v54, %v1330_v45  ;;  %v1324_v39 = vsel %vm1320_vm2, %v1304_v43, %v1307_v41  ;;  %v1326_v18 = vsel %vm1322_vm3, %v1310_v14, %v1325_v58  ;;  %v1334_v16 = vsel %vm1322_vm3, %v1316_v21, %v1333_v8  ;;  %2791 = vmatprep.mubr.bf16.mxu0 %v9155_v50 }
 0x208   : > { %v5522_v52 = vmin.u32 %v1978_v7, %v7880_v15  ;;  %v1164_v0 = vxor.u32 2147483648, %v1163_v59  ;;  %v1335_v42 = vsel %vm1321_vm4, %v1332_v30, %v1334_v16  ;;  %vm1082_vm15 = vcmp.lt.s32.totalorder %v6797_v55, 0  ;;  %2984 = vmatprep.mubr.bf16.mxu1 %v9155_v50 }
 0x209   : > { %v7905_v38 = vmul.u32.u64.low %v1336_v32, %v1331_v9  ;;  %v7906_v20 = vmul.u32.u64.high %v1336_v32, %v1331_v9, %v7905_v38  ;;  %v2134_v41 = vand.u32 31, %v7868_v25  ;;  %v1167_v36 = vsel %vm1082_vm15, %v1166_v35, %v7721_v37 }
 0x20a   : > { %v1980_v2 = vclz %v5522_v52  ;;  %v7916_v29 = vmul.u32.u64.low %v1336_v32, %v1335_v42  ;;  %v7917_v3 = vmul.u32.u64.high %v1336_v32, %v1335_v42, %v7916_v29  ;;  %v1327_v23 = vsel %vm1321_vm4, %v1324_v39, %v1326_v18 }
 0x20b   : > { %vm7925_vm5 = vcmp.le.f32.partialorder %v1080_v1, 0.7853982  ;;  %v1165_v56 = vsel %vm1082_vm15, %v1164_v0, %v1163_v59  ;;  %v1346_v37 = vadd.s32 1, %v7906_v20  ;;  %v1968_v31 = vadd.s32 %v7793_v17, %v7788_v60 }
 0x20c   : > { %v5523_v14 = vadd.s32 4294967294, %v1980_v2  ;;  %v1169_v21 = vsel %vm7925_vm5, 0, %v1167_v36  ;;  %v1343_v1 = vmul.u32 %v1336_v32, %v1327_v23  ;;  %vm1345_vm6 = vc.u32 %v7917_v3, %v7905_v38 }
 0x20d   : > { %v7941_v44 = vsub.s32 32, %v2134_v41  ;;  %v1168_v47 = vsel %vm7925_vm5, %v6797_v55, %v1165_v56  ;;  %v1347_v60 = vsel %vm1345_vm6, %v1346_v37, %v7906_v20  ;;  %v7948_v17 = vshrl.u32 %v7868_v25, 5  ;;  %v7979_v20 = vld [vmem:[%s9093_s4 + $0x40] sm:$0xff]  }
 0x20e   : > { %vm5524_vm1 = vcmp.lt.s32.totalorder %v5523_v14, 0  ;;  %v1173_v22 = vadd.s32 3, %v1169_v21  ;;  %v1998_v43 = vsub.s32 4, %v7859_v61  ;;  %v1348_v54 = vadd.s32 %v1347_v60, %v1343_v1  ;;  %5560 = vmatmul.mubr.msk.bf16.gmra.mrb[28].mxu0 %vm2640_vm11, %v7937_v34  ;;  %5576 = vmatmul.mubr.msk.bf16.gmra.mrb[28].mxu1 %vm2640_vm11, %v7937_v34 }
 0x20f   : > { %v1983_v5 = vsel %vm5524_vm1, 0, %v5523_v14  ;;  %v2120_v7 = vand.u32 2147483647, %v6819_v48  ;;  %5859 = vcosq.f32 %v1168_v47  ;;  %v2138_v25 = vshrl.u32 %v9137_v57, %v7941_v44  ;;  %2801 = vmatprep.mubr.bf16.mxu0 %v9155_v50  ;;  %2994 = vmatprep.mubr.bf16.mxu1 %v9155_v50 }
 0x210   : > { %v1984_v27 = vsub.s32 32, %v1983_v5  ;;  %v1988_v49 = vsub.s32 4294967266, %v1983_v5  ;;  %v1985_v59 = vshll.u32 %v7880_v15, %v1983_v5  ;;  %v1349_v45 = vadd.s32 536870912, %v1348_v54 }
 0x211   : > { %v2141_v30 = vshrl.u32 %v9138_v46, %v7941_v44  ;;  %5861 = vsinq.f32 %v1168_v47  ;;  %v2147_v9 = vshrl.u32 %v9125_v19, %v7941_v44  ;;  %v2137_v32 = vshll.u32 %v5978_v6, %v2134_v41 }
 0x212   : > { %v1986_v58 = vshrl.u32 %v1968_v31, %v1984_v27  ;;  %v1989_v10 = vadd.s32 127, %v1988_v49  ;;  %v7965_v8 = vshrl.u32 %v1349_v45, 30  ;;  %v2140_v52 = vshll.u32 %v9137_v57, %v2134_v41 }
 0x213   : > { %v2144_v39 = vshrl.u32 %v9132_v4, %v7941_v44  ;;  %v2127_v16 = vand.u32 8388607, %v2120_v7  ;;  %v2146_v0 = vshll.u32 %v9132_v4, %v2134_v41  ;;  %v2150_v42 = vshrl.u32 %v9133_v51, %v7941_v44 }
 0x214   : > { %v1987_v15 = vor.u32 %v1986_v58, %v1985_v59  ;;  %v1990_v35 = vshll.u32 %v1989_v10, 23  ;;  %v1351_v2 = vshll.u32 %v7965_v8, 30  ;;  %v2139_v57 = vor.u32 %v2138_v25, %v2137_v32 }
 0x215   : > { %v2142_v36 = vor.u32 %v2141_v30, %v2140_v52  ;;  %v2143_v29 = vshll.u32 %v9138_v46, %v2134_v41  ;;  %v2148_v33 = vor.u32 %v2147_v9, %v2146_v0  ;;  %v2149_v56 = vshll.u32 %v9125_v19, %v2134_v41 }
 0x216   : > { %v1991_v18 = vor.u32 4788187, %v1990_v35  ;;  %v1994_v23 = vcvt.s32.f32 %v1987_v15  ;;  %vm7986_vm7 = vcmp.le.f32.partialorder %v1912_v12, 0.7853982  ;;  %vm1914_vm8 = vcmp.lt.s32.totalorder %v6815_v28, 0  ;;  %5561 = vmatmul.mubr.msk.bf16.gmra.mrb[32].mxu0 %vm2640_vm11, %v7979_v20  ;;  %5577 = vmatmul.mubr.msk.bf16.gmra.mrb[32].mxu1 %vm2640_vm11, %v7979_v20 }
 0x217   : > { %v7991_v51 = vsub.s32 %v1348_v54, %v1351_v2  ;;  %v2145_v37 = vor.u32 %v2144_v39, %v2143_v29  ;;  %v7993_v21 = vand.u32 3, %v1173_v22  ;;  %v1999_v46 = vsel %vm1914_vm8, %v1998_v43, %v7859_v61  ;;  %2811 = vmatprep.mubr.bf16.mxu0 %v9155_v50  ;;  %3004 = vmatprep.mubr.bf16.mxu1 %v9155_v50 }
 0x218   : > { %v1992_v14 = vand.u32 2147483647, %v1991_v18  ;;  %v2151_v5 = vor.u32 %v2150_v42, %v2149_v56  ;;  %v2128_v12 = vor.u32 8388608, %v2127_v16  ;;  %vm2152_vm9 = vcmp.lt.s32.totalorder %v7948_v17, 1 }
 0x219   : > { %v1354_v19 = vsub.s32 0, %v7991_v51  ;;  %vm2155_vm10 = vcmp.lt.s32.totalorder %v7948_v17, 4  ;;  %vm2154_vm12 = vcmp.lt.s32.totalorder %v7948_v17, 3  ;;  %v2160_v61 = vsel %vm2152_vm9, %v2139_v57, %v2142_v36  ;;  %v5860_v47 = vpop.eup %5859 }
 0x21a   : > { %v1995_v31 = vmul.f32 %v1994_v23, %v1992_v14  ;;  %v2161_v1 = vsel %vm2155_vm10, %v2148_v33, 920167782  ;;  %v2136_v49 = vshrl.u32 %v5978_v6, %v7941_v44  ;;  %vm2153_vm14 = vcmp.lt.s32.totalorder %v7948_v17, 2  ;;  %v8029_v6 = vld [vmem:[%s9093_s4 + $0x48] sm:$0xff]  }
 0x21b   : > { %v5498_v27 = vmin.u32 %v1354_v19, %v7991_v51  ;;  %v2162_v60 = vsel %vm2154_vm12, %v2145_v37, %v2161_v1  ;;  %v5862_v22 = vpop.eup %5861  ;;  %v2157_v54 = vsel %vm2155_vm10, %v2145_v37, 2102212464  ;;  %v2164_v59 = vsel %vm2152_vm9, %v2142_v36, %v2145_v37 }
 0x21c   : > { %v1996_v41 = vxor.u32 2147483648, %v1995_v31  ;;  %v2165_v58 = vsel %vm2155_vm10, %v2151_v5, 1326507024  ;;  %v2001_v10 = vsel %vm7986_vm7, 0, %v1999_v46  ;;  %v2163_v25 = vsel %vm2153_vm14, %v2160_v61, %v2162_v60 }
 0x21d   : > { %v1356_v45 = vclz %v5498_v27  ;;  %v2156_v30 = vsel %vm2152_vm9, %v2136_v49, %v2139_v57  ;;  %v2166_v15 = vsel %vm2154_vm12, %v2148_v33, %v2165_v58  ;;  %v2168_v35 = vshll.u32 %v2128_v12, 8  ;;  %v8068_v33 = vld [vmem:[%s9093_s4 + $0x50] sm:$0xff]   ;;  %v8088_v58 = vld [vmem:[%s9093_s4 + $0x58] sm:$0xff]  }
 0x21e   : > { %v1997_v43 = vsel %vm1914_vm8, %v1996_v41, %v1995_v31  ;;  %v2158_v32 = vsel %vm2154_vm12, %v2142_v36, %v2157_v54  ;;  %v2167_v52 = vsel %vm2153_vm14, %v2164_v59, %v2166_v15  ;;  %5562 = vmatmul.mubr.msk.bf16.gmra.mrb[36].mxu0 %vm2640_vm11, %v8029_v6  ;;  %5578 = vmatmul.mubr.msk.bf16.gmra.mrb[36].mxu1 %vm2640_vm11, %v8029_v6  ;;  %v2005_v42 = vadd.s32 3, %v2001_v10 }
 0x21f   : > { %v2000_v44 = vsel %vm7986_vm7, %v6815_v28, %v1997_v43  ;;  %v5499_v9 = vadd.s32 4294967294, %v1356_v45  ;;  %v8046_v39 = vmul.u32.u64.low %v2168_v35, %v2167_v52  ;;  %v8047_v18 = vmul.u32.u64.high %v2168_v35, %v2167_v52, %v8046_v39  ;;  %2821 = vmatprep.mubr.bf16.mxu0 %v9155_v50  ;;  %3014 = vmatprep.mubr.bf16.mxu1 %v9155_v50 }
 0x220   : > { %5863 = vcosq.f32 %v2000_v44  ;;  %v8049_v16 = vmul.u32.u64.low %v2168_v35, %v2163_v25  ;;  %v8050_v0 = vmul.u32.u64.high %v2168_v35, %v2163_v25, %v8049_v16  ;;  %v1177_v2 = vxor.u32 2147483648, %v5862_v22 }
 0x221   : > { %5865 = vsinq.f32 %v2000_v44  ;;  %vm5500_vm13 = vcmp.lt.s32.totalorder %v5499_v9, 0  ;;  %v1180_v57 = vxor.u32 2147483648, %v5860_v47  ;;  %v2159_v29 = vsel %vm2153_vm14, %v2156_v30, %v2158_v32  ;;  %v8101_v32 = vld [vmem:[%s9093_s4 + $0x60] sm:$0xff]  }
 0x222   : > { %v1359_v36 = vsel %vm5500_vm13, 0, %v5499_v9  ;;  %vm1176_vm2 = vcmp.eq.s32.totalorder %v7993_v21, 0  ;;  %vm2177_vm0 = vc.u32 %v8047_v18, %v8049_v16  ;;  %v2178_v23 = vadd.s32 1, %v8050_v0 }
 0x223   : > { %v1364_v14 = vsub.s32 4294967266, %v1359_v36  ;;  %vm1179_vm3 = vcmp.eq.s32.totalorder %v7993_v21, 2  ;;  %v1360_v56 = vsub.s32 32, %v1359_v36  ;;  %v2175_v37 = vmul.u32 %v2168_v35, %v2159_v29 }
 0x224   : > { %v1178_v17 = vsel %vm1176_vm2, %v5860_v47, %v1177_v2  ;;  %v1181_v31 = vsel %vm1179_vm3, %v1180_v57, %v5862_v22  ;;  %v2006_v46 = vand.u32 3, %v2005_v42  ;;  %v2179_v5 = vsel %vm2177_vm0, %v2178_v23, %v8050_v0 }
 0x225   : > { %v1365_v4 = vadd.s32 127, %v1364_v14  ;;  %v1344_v19 = vadd.s32 %v7905_v38, %v7917_v3  ;;  %v2180_v41 = vadd.s32 %v2179_v5, %v2175_v37  ;;  %vm1175_vm4 = vcmp.lt.s32.totalorder %v7993_v21, 2  ;;  %v8117_v14 = vld [vmem:[%s9093_s4 + $0x68] sm:$0xff]  }
 0x226   : > { %5563 = vmatmul.mubr.msk.bf16.gmra.mrb[40].mxu0 %vm2640_vm11, %v8068_v33  ;;  %5579 = vmatmul.mubr.msk.bf16.gmra.mrb[40].mxu1 %vm2640_vm11, %v8068_v33  ;;  %v1182_v47 = vsel %vm1175_vm4, %v1178_v17, %v1181_v31  ;;  %vm1172_vm15 = vweird.f32 %v6797_v55  ;;  %vm2008_vm5 = vcmp.eq.s32.totalorder %v2006_v46, 0  ;;  %vm2011_vm1 = vcmp.eq.s32.totalorder %v2006_v46, 2 }
 0x227   : > { %v1366_v12 = vshll.u32 %v1365_v4, 23  ;;  %v1362_v49 = vshrl.u32 %v1344_v19, %v1360_v56  ;;  %v2181_v60 = vadd.s32 536870912, %v2180_v41  ;;  %2831 = vmatprep.mubr.bf16.mxu0 %v9155_v50  ;;  %3024 = vmatprep.mubr.bf16.mxu1 %v9155_v50  ;;  %v1361_v21 = vshll.u32 %v7991_v51, %v1359_v36 }
 0x228   : > { %v1183_v54 = vsel %vm1172_vm15, nan, %v1182_v47  ;;  %vm2007_vm6 = vcmp.lt.s32.totalorder %v2006_v46, 2  ;;  %vm2004_vm7 = vweird.f32 %v6815_v28  ;;  %vm1290_vm9 = vcmp.lt.s32.totalorder %v6801_v53, 0 }
 0x229   : > { %v1367_v22 = vor.u32 4788187, %v1366_v12  ;;  %v8083_v43 = vshrl.u32 %v2181_v60, 30  ;;  %v1363_v44 = vor.u32 %v1362_v49, %v1361_v21  ;;  %v2176_v57 = vadd.s32 %v8049_v16, %v8047_v18  ;;  %v8141_v12 = vld [vmem:[%s9093_s4 + $0x70] sm:$0xff]  }
 0x22a   : > { %v5864_v61 = vpop.eup %5863  ;;  %vm8121_vm10 = vcmp.le.f32.partialorder %v1288_v62, 0.7853982  ;;  %v1374_v31 = vsub.s32 4, %v7965_v8  ;;  %vm2122_vm12 = vcmp.lt.s32.totalorder %v6819_v48, 0  ;;  %vm8153_vm14 = vcmp.le.f32.partialorder %v2120_v7, 0.7853982 }
 0x22b   : > { %v5866_v1 = vpop.eup %5865  ;;  %v2012_v27 = vxor.u32 2147483648, %v5864_v61  ;;  %v2183_v10 = vshll.u32 %v8083_v43, 30  ;;  %v1368_v51 = vand.u32 2147483647, %v1367_v22  ;;  %v1370_v15 = vcvt.s32.f32 %v1363_v44  ;;  %v8168_v22 = vld [vmem:[%s9093_s4 + $0x78] sm:$0xff]  }
 0x22c   : > { %v2009_v38 = vxor.u32 2147483648, %v5866_v1  ;;  %v1375_v19 = vsel %vm1290_vm9, %v1374_v31, %v7965_v8  ;;  %vm1380_vm4 = vweird.f32 %v6801_v53 }
 0x22d   : > { %v2013_v3 = vsel %vm2011_vm1, %v2012_v27, %v5866_v1  ;;  %v2184_v30 = vsub.s32 %v2180_v41, %v2183_v10  ;;  %v1371_v28 = vmul.f32 %v1370_v15, %v1368_v51  ;;  %v1377_v1 = vsel %vm8121_vm10, 0, %v1375_v19 }
 0x22e   : > { %v2010_v59 = vsel %vm2008_vm5, %v5864_v61, %v2009_v38  ;;  %5564 = vmatmul.mubr.msk.bf16.gmra.mrb[44].mxu0 %vm2640_vm11, %v8088_v58  ;;  %5580 = vmatmul.mubr.msk.bf16.gmra.mrb[44].mxu1 %vm2640_vm11, %v8088_v58  ;;  %v2206_v61 = vsub.s32 4, %v8083_v43  ;;  %v1381_v60 = vadd.s32 3, %v1377_v1  ;;  %vm2212_vm1 = vweird.f32 %v6819_v48 }
 0x22f   : > { %v2014_v55 = vsel %vm2007_vm6, %v2010_v59, %v2013_v3  ;;  %v2186_v35 = vsub.s32 0, %v2184_v30  ;;  %2841 = vmatprep.mubr.bf16.mxu0 %v9155_v50  ;;  %3034 = vmatprep.mubr.bf16.mxu1 %v9155_v50  ;;  %v1372_v39 = vxor.u32 2147483648, %v1371_v28 }
 0x230   : > { %v2015_v45 = vsel %vm2004_vm7, nan, %v2014_v55  ;;  %v2207_v49 = vsel %vm2122_vm12, %v2206_v61, %v8083_v43  ;;  %v1382_v43 = vand.u32 3, %v1381_v60 }
 0x231   : > { %v2332_v25 = vpack.c.bf16 %v2015_v45, %v1183_v54  ;;  %v5530_v9 = vmin.u32 %v2186_v35, %v2184_v30  ;;  %v1373_v2 = vsel %vm1290_vm9, %v1372_v39, %v1371_v28  ;;  %v2209_v7 = vsel %vm8153_vm14, 0, %v2207_v49 }
 0x232   : > { %v1376_v18 = vsel %vm8121_vm10, %v6801_v53, %v1373_v2  ;;  %v2213_v55 = vadd.s32 3, %v2209_v7  ;;  %vm1384_vm13 = vcmp.eq.s32.totalorder %v1382_v43, 0  ;;  %vm1387_vm2 = vcmp.eq.s32.totalorder %v1382_v43, 2  ;;  %v8200_v53 = vpop.permute.xlu1 %2407 }
 0x233   : > { %3076 = vmatpush1.bf16.msra.mxu0 %v2332_v25  ;;  %v2188_v52 = vclz %v5530_v9  ;;  %5867 = vcosq.f32 %v1376_v18  ;;  %vm1383_vm0 = vcmp.lt.s32.totalorder %v1382_v43, 2  ;;  %v5907_v9 = vld [vmem:[%s9093_s4] sm:$0xff]  }
 0x234   : > { %5869 = vsinq.f32 %v1376_v18  ;;  %v2214_v45 = vand.u32 3, %v2213_v55 }
 0x235   : > { %v5531_v0 = vadd.s32 4294967294, %v2188_v52 }
 0x236   : > { %5565 = vmatmul.mubr.msk.bf16.gmra.mrb[48].mxu0 %vm2640_vm11, %v8101_v32  ;;  %5581 = vmatmul.mubr.msk.bf16.gmra.mrb[48].mxu1 %vm2640_vm11, %v8101_v32  ;;  %vm2219_vm3 = vcmp.eq.s32.totalorder %v2214_v45, 2  ;;  %vm2216_vm15 = vcmp.eq.s32.totalorder %v2214_v45, 0  ;;  %vm2215_vm5 = vcmp.lt.s32.totalorder %v2214_v45, 2 }
 0x237   : > { %vm5532_vm8 = vcmp.lt.s32.totalorder %v5531_v0, 0  ;;  %2851 = vmatprep.mubr.bf16.mxu0 %v9155_v50  ;;  %3044 = vmatprep.mubr.bf16.mxu1 %v9155_v50 }
 0x238   : > { %v2191_v42 = vsel %vm5532_vm8, 0, %v5531_v0 }
 0x239   : > { %v2192_v36 = vsub.s32 32, %v2191_v42  ;;  %v2196_v29 = vsub.s32 4294967266, %v2191_v42  ;;  %v2193_v56 = vshll.u32 %v2184_v30, %v2191_v42 }
 0x23b   : > { %v2194_v4 = vshrl.u32 %v2176_v57, %v2192_v36  ;;  %v2197_v37 = vadd.s32 127, %v2196_v29 }
 0x23d   : > { %v2195_v16 = vor.u32 %v2194_v4, %v2193_v56  ;;  %v2198_v17 = vshll.u32 %v2197_v37, 23  ;;  %v5868_v3 = vpop.eup %5867 }
 0x23e   : > { %5566 = vmatmul.mubr.msk.bf16.gmra.mrb[52].mxu0 %vm2640_vm11, %v8117_v14  ;;  %5582 = vmatmul.mubr.msk.bf16.gmra.mrb[52].mxu1 %vm2640_vm11, %v8117_v14  ;;  %v5870_v21 = vpop.eup %5869  ;;  %v1388_v59 = vxor.u32 2147483648, %v5868_v3 }
 0x23f   : > { %v2199_v62 = vor.u32 4788187, %v2198_v17  ;;  %2861 = vmatprep.mubr.bf16.mxu0 %v9155_v50  ;;  %3054 = vmatprep.mubr.bf16.mxu1 %v9155_v50  ;;  %v2202_v5 = vcvt.s32.f32 %v2195_v16  ;;  %v1385_v54 = vxor.u32 2147483648, %v5870_v21 }
 0x240   : > { %v1389_v10 = vsel %vm1387_vm2, %v1388_v59, %v5870_v21 }
 0x241   : > { %v2200_v46 = vand.u32 2147483647, %v2199_v62  ;;  %v1386_v44 = vsel %vm1384_vm13, %v5868_v3, %v1385_v54 }
 0x242   : > { %v1390_v30 = vsel %vm1383_vm0, %v1386_v44, %v1389_v10 }
 0x243   : > { %v2203_v41 = vmul.f32 %v2202_v5, %v2200_v46  ;;  %v1391_v52 = vsel %vm1380_vm4, nan, %v1390_v30 }
 0x245   : > { %v2204_v47 = vxor.u32 2147483648, %v2203_v41 }
 0x246   : > { %5567 = vmatmul.mubr.msk.bf16.gmra.mrb[56].mxu0 %vm2640_vm11, %v8141_v12  ;;  %5583 = vmatmul.mubr.msk.bf16.gmra.mrb[56].mxu1 %vm2640_vm11, %v8141_v12 }
 0x247   : > { %v2205_v27 = vsel %vm2122_vm12, %v2204_v47, %v2203_v41  ;;  %2871 = vmatprep.mubr.bf16.mxu0 %v9155_v50  ;;  %3064 = vmatprep.mubr.bf16.mxu1 %v9155_v50 }
 0x248   : > { %v2208_v38 = vsel %vm8153_vm14, %v6819_v48, %v2205_v27  ;;  %v8202_v48 = vpop.permute.xlu0 %2402 }
 0x249   : > { %5871 = vcosq.f32 %v2208_v38 }
 0x24a   : > { %5873 = vsinq.f32 %v2208_v38 }
 0x24e   : > { %5568 = vmatmul.mubr.msk.bf16.gmra.mrb[60].mxu0 %vm2640_vm11, %v8168_v22  ;;  %5584 = vmatmul.mubr.msk.bf16.gmra.mrb[60].mxu1 %vm2640_vm11, %v8168_v22 }
 0x24f   : > { %3107 = vmatprep.mubr.bf16.mxu0 %v9155_v50  ;;  %3300 = vmatprep.mubr.bf16.mxu1 %v9155_v50 }
 0x253   : > { %v5872_v25 = vpop.eup %5871 }
 0x254   : > { %v5874_v51 = vpop.eup %5873  ;;  %v2220_v15 = vxor.u32 2147483648, %v5872_v25 }
 0x255   : > { %v2217_v35 = vxor.u32 2147483648, %v5874_v51 }
 0x256   : > { %v2221_v28 = vsel %vm2219_vm3, %v2220_v15, %v5874_v51  ;;  %5585 = vmatmul.mubr.msk.bf16.vlgmr.msra.gmra.mrb[64].mxu0 %vm2640_vm11, %v5907_v9 }
 0x257   : > { %v2218_v39 = vsel %vm2216_vm15, %v5872_v25, %v2217_v35  ;;  %3117 = vmatprep.mubr.bf16.mxu0 %v9155_v50 }
 0x258   : > { %v2222_v0 = vsel %vm2215_vm5, %v2218_v39, %v2221_v28 }
 0x259   : > { %v2223_v42 = vsel %vm2212_vm1, nan, %v2222_v0 }
 0x25a   : > { %v2334_v2 = vpack.c.bf16 %v2223_v42, %v1391_v52 }
 0x25c   : > { %3269 = vmatpush1.bf16.msra.mxu1 %v2334_v2 }
 0x25e   : > { %5586 = vmatmul.mubr.msk.bf16.gmra.mrb[68].mxu0 %vm2640_vm11, %v7677_v63 }
 0x25f   : > { %5601 = vmatmul.mubr.msk.bf16.vlgmr.msra.gmra.mrb[64].mxu1 %vm2640_vm11, %v5907_v9  ;;  %3127 = vmatprep.mubr.bf16.mxu0 %v9155_v50 }
 0x260   : > { %3310 = vmatprep.mubr.bf16.mxu1 %v9155_v50 }
 0x266   : > { %5587 = vmatmul.mubr.msk.bf16.gmra.mrb[72].mxu0 %vm2640_vm11, %v7711_v26 }
 0x267   : > { %5602 = vmatmul.mubr.msk.bf16.gmra.mrb[68].mxu1 %vm2640_vm11, %v7677_v63  ;;  %3137 = vmatprep.mubr.bf16.mxu0 %v9155_v50 }
 0x268   : > { %3320 = vmatprep.mubr.bf16.mxu1 %v9155_v50 }
 0x26e   : > { %5588 = vmatmul.mubr.msk.bf16.gmra.mrb[76].mxu0 %vm2640_vm11, %v7751_v24 }
 0x26f   : > { %5603 = vmatmul.mubr.msk.bf16.gmra.mrb[72].mxu1 %vm2640_vm11, %v7711_v26  ;;  %3147 = vmatprep.mubr.bf16.mxu0 %v9155_v50 }
 0x270   : > { %3330 = vmatprep.mubr.bf16.mxu1 %v9155_v50 }
 0x275   : > { %v2723_v57 = vpop.f32.mrb[0].mxu0 }
 0x276   : > { %v2724_v63 = vadd.f32 %v2723_v57, %v8202_v48  ;;  %v2916_v36 = vpop.f32.mrb[0].mxu1  ;;  %v2725_v29 = vpop.f32.mrb[1].mxu0  ;;  %5589 = vmatmul.mubr.msk.bf16.gmra.mrb[80].mxu0 %vm2640_vm11, %v7807_v11 }
 0x277   : > { %v2917_v23 = vadd.f32 %v2916_v36, %v8202_v48  ;;  %v2726_v26 = vadd.f32 %v2725_v29, %v8202_v48  ;;  %v2918_v56 = vpop.f32.mrb[1].mxu1  ;;  %v2727_v4 = vpop.f32.mrb[2].mxu0  ;;  %5604 = vmatmul.mubr.msk.bf16.gmra.mrb[76].mxu1 %vm2640_vm11, %v7751_v24  ;;  %3157 = vmatprep.mubr.bf16.mxu0 %v9155_v50 }
 0x278   : > { %v2919_v37 = vadd.f32 %v2918_v56, %v8202_v48  ;;  %v2728_v18 = vadd.f32 %v2727_v4, %v8200_v53  ;;  %v2920_v16 = vpop.f32.mrb[2].mxu1  ;;  %v2729_v17 = vpop.f32.mrb[3].mxu0  ;;  %3340 = vmatprep.mubr.bf16.mxu1 %v9155_v50  ;;  %v3461_v5 = vmax.f32 %v2724_v63, 0.0 }
 0x279   : > { %v2921_v31 = vadd.f32 %v2920_v16, %v8200_v53  ;;  %v2730_v62 = vadd.f32 %v2729_v17, %v8200_v53  ;;  %v2922_v46 = vpop.f32.mrb[3].mxu1  ;;  %v3463_v24 = vmax.f32 %v2917_v23, 0.0  ;;  %v3462_v61 = vmax.f32 %v2726_v26, 0.0 }
 0x27a   : > { %v3469_v19 = vmax.f32 %v2728_v18, 0.0  ;;  %v2923_v41 = vadd.f32 %v2922_v46, %v8200_v53  ;;  %v3464_v8 = vmax.f32 %v2919_v37, 0.0 }
 0x27b   : > { %v3471_v1 = vmax.f32 %v2921_v31, 0.0  ;;  %v3470_v47 = vmax.f32 %v2730_v62, 0.0 }
 0x27c   : > { %v3717_v27 = vpack.c.bf16 %v3469_v19, %v3461_v5  ;;  %v3472_v49 = vmax.f32 %v2923_v41, 0.0 }
 0x27d   : > { %v3719_v60 = vpack.c.bf16 %v3471_v1, %v3463_v24  ;;  %v3718_v38 = vpack.c.bf16 %v3470_v47, %v3462_v61 }
 0x27e   : > { %v3720_v3 = vpack.c.bf16 %v3472_v49, %v3464_v8  ;;  %5590 = vmatmul.mubr.msk.bf16.gmra.mrb[84].mxu0 %vm2640_vm11, %v7851_v40 }
 0x27f   : > { %4037 = vmatprep.subr.bf16.mxu0 %v3718_v38  ;;  %5605 = vmatmul.mubr.msk.bf16.gmra.mrb[80].mxu1 %vm2640_vm11, %v7807_v11  ;;  %v8259_v11 = vpop.permute.xlu1 %2417 }
 0x280   : > { %3167 = vmatprep.mubr.bf16.mxu0 %v9155_v50  ;;  %3350 = vmatprep.mubr.bf16.mxu1 %v9155_v50 }
 0x281   : > { %4150 = vmatprep.subr.bf16.mxu1 %v3720_v3  ;;  %4038 = vmatpush1.bf16.msra.mxu0 %v3717_v27 }
 0x282   : > { %4151 = vmatpush1.bf16.msra.mxu1 %v3719_v60 }
 0x283   : > { %v8277_v42 = vpop.permute.xlu1 %2427 }
 0x286   : > { %5591 = vmatmul.mubr.msk.bf16.gmra.mrb[88].mxu0 %vm2640_vm11, %v7895_v13 }
 0x287   : > { %5606 = vmatmul.mubr.msk.bf16.gmra.mrb[84].mxu1 %vm2640_vm11, %v7851_v40  ;;  %3177 = vmatprep.mubr.bf16.mxu0 %v9155_v50  ;;  %v8261_v40 = vpop.permute.xlu0 %2412  ;;  %v8295_v3 = vpop.permute.xlu1 %2437 }
 0x288   : > { %3360 = vmatprep.mubr.bf16.mxu1 %v9155_v50 }
 0x28b   : > { %v8279_v2 = vpop.permute.xlu0 %2422 }
 0x28e   : > { %5592 = vmatmul.mubr.msk.bf16.gmra.mrb[92].mxu0 %vm2640_vm11, %v7937_v34 }
 0x28f   : > { %5607 = vmatmul.mubr.msk.bf16.gmra.mrb[88].mxu1 %vm2640_vm11, %v7895_v13  ;;  %3187 = vmatprep.mubr.bf16.mxu0 %v9155_v50 }
 0x290   : > { %3370 = vmatprep.mubr.bf16.mxu1 %v9155_v50 }
 0x296   : > { %5593 = vmatmul.mubr.msk.bf16.gmra.mrb[96].mxu0 %vm2640_vm11, %v7979_v20 }
 0x297   : > { %5608 = vmatmul.mubr.msk.bf16.gmra.mrb[92].mxu1 %vm2640_vm11, %v7937_v34  ;;  %3197 = vmatprep.mubr.bf16.mxu0 %v9155_v50 }
 0x298   : > { %3380 = vmatprep.mubr.bf16.mxu1 %v9155_v50 }
 0x29e   : > { %5594 = vmatmul.mubr.msk.bf16.gmra.mrb[100].mxu0 %vm2640_vm11, %v8029_v6 }
 0x29f   : > { %5609 = vmatmul.mubr.msk.bf16.gmra.mrb[96].mxu1 %vm2640_vm11, %v7979_v20  ;;  %3207 = vmatprep.mubr.bf16.mxu0 %v9155_v50 }
 0x2a0   : > { %3390 = vmatprep.mubr.bf16.mxu1 %v9155_v50 }
 0x2a6   : > { %5595 = vmatmul.mubr.msk.bf16.gmra.mrb[104].mxu0 %vm2640_vm11, %v8068_v33 }
 0x2a7   : > { %5610 = vmatmul.mubr.msk.bf16.gmra.mrb[100].mxu1 %vm2640_vm11, %v8029_v6  ;;  %3217 = vmatprep.mubr.bf16.mxu0 %v9155_v50 }
 0x2a8   : > { %3400 = vmatprep.mubr.bf16.mxu1 %v9155_v50 }
 0x2ae   : > { %5596 = vmatmul.mubr.msk.bf16.gmra.mrb[108].mxu0 %vm2640_vm11, %v8088_v58 }
 0x2af   : > { %5611 = vmatmul.mubr.msk.bf16.gmra.mrb[104].mxu1 %vm2640_vm11, %v8068_v33  ;;  %3227 = vmatprep.mubr.bf16.mxu0 %v9155_v50 }
 0x2b0   : > { %3410 = vmatprep.mubr.bf16.mxu1 %v9155_v50 }
 0x2b1   : > { %v2733_v13 = vpop.f32.mrb[4].mxu0  ;;  %v2926_v34 = vpop.f32.mrb[4].mxu1 }
 0x2b2   : > { %v2734_v20 = vadd.f32 %v2733_v13, %v8261_v40  ;;  %v2927_v6 = vadd.f32 %v2926_v34, %v8261_v40  ;;  %v2735_v21 = vpop.f32.mrb[5].mxu0  ;;  %v2928_v7 = vpop.f32.mrb[5].mxu1 }
 0x2b3   : > { %v2736_v43 = vadd.f32 %v2735_v21, %v8261_v40  ;;  %v2929_v33 = vadd.f32 %v2928_v7, %v8261_v40  ;;  %v2737_v54 = vpop.f32.mrb[6].mxu0  ;;  %v2930_v59 = vpop.f32.mrb[6].mxu1 }
 0x2b4   : > { %v2738_v55 = vadd.f32 %v2737_v54, %v8259_v11  ;;  %v2931_v44 = vadd.f32 %v2930_v59, %v8259_v11  ;;  %v2739_v10 = vpop.f32.mrb[7].mxu0  ;;  %v2932_v45 = vpop.f32.mrb[7].mxu1  ;;  %v3477_v30 = vmax.f32 %v2734_v20, 0.0  ;;  %v3479_v15 = vmax.f32 %v2927_v6, 0.0 }
 0x2b5   : > { %v2740_v25 = vadd.f32 %v2739_v10, %v8259_v11  ;;  %v2933_v51 = vadd.f32 %v2932_v45, %v8259_v11  ;;  %v3478_v9 = vmax.f32 %v2736_v43, 0.0  ;;  %v3480_v52 = vmax.f32 %v2929_v33, 0.0  ;;  %v8297_v13 = vpop.permute.xlu0 %2432 }
 0x2b6   : > { %v3485_v35 = vmax.f32 %v2738_v55, 0.0  ;;  %v3487_v28 = vmax.f32 %v2931_v44, 0.0  ;;  %5597 = vmatmul.mubr.msk.bf16.gmra.mrb[112].mxu0 %vm2640_vm11, %v8101_v32 }
 0x2b7   : > { %5612 = vmatmul.mubr.msk.bf16.gmra.mrb[108].mxu1 %vm2640_vm11, %v8088_v58  ;;  %v3486_v39 = vmax.f32 %v2740_v25, 0.0  ;;  %v3488_v0 = vmax.f32 %v2933_v51, 0.0  ;;  %3237 = vmatprep.mubr.bf16.mxu0 %v9155_v50 }
 0x2b8   : > { %v3725_v57 = vpack.c.bf16 %v3485_v35, %v3477_v30  ;;  %v3727_v63 = vpack.c.bf16 %v3487_v28, %v3479_v15  ;;  %3420 = vmatprep.mubr.bf16.mxu1 %v9155_v50 }
 0x2b9   : > { %v3726_v36 = vpack.c.bf16 %v3486_v39, %v3478_v9  ;;  %v3728_v29 = vpack.c.bf16 %v3488_v0, %v3480_v52  ;;  %v2743_v23 = vpop.f32.mrb[8].mxu0  ;;  %v2936_v26 = vpop.f32.mrb[8].mxu1 }
 0x2ba   : > { %v2744_v58 = vadd.f32 %v2743_v23, %v8279_v2  ;;  %v2937_v56 = vadd.f32 %v2936_v26, %v8279_v2  ;;  %v2745_v4 = vpop.f32.mrb[9].mxu0  ;;  %v2938_v37 = vpop.f32.mrb[9].mxu1 }
 0x2bb   : > { %v2746_v18 = vadd.f32 %v2745_v4, %v8279_v2  ;;  %v2939_v16 = vadd.f32 %v2938_v37, %v8279_v2  ;;  %v2747_v17 = vpop.f32.mrb[10].mxu0  ;;  %v2940_v31 = vpop.f32.mrb[10].mxu1  ;;  %4039 = vmatprep.subr.bf16.mxu0 %v3726_v36  ;;  %4152 = vmatprep.subr.bf16.mxu1 %v3728_v29 }
 0x2bc   : > { %v2748_v62 = vadd.f32 %v2747_v17, %v8277_v42  ;;  %v2941_v46 = vadd.f32 %v2940_v31, %v8277_v42  ;;  %v2749_v5 = vpop.f32.mrb[11].mxu0  ;;  %v2942_v19 = vpop.f32.mrb[11].mxu1  ;;  %4040 = vmatpush1.bf16.msra.mxu0 %v3725_v57  ;;  %4153 = vmatpush1.bf16.msra.mxu1 %v3727_v63  ;;  %v3493_v61 = vmax.f32 %v2744_v58, 0.0  ;;  %v3495_v1 = vmax.f32 %v2937_v56, 0.0 }
 0x2bd   : > { %v2750_v41 = vadd.f32 %v2749_v5, %v8277_v42  ;;  %v2943_v24 = vadd.f32 %v2942_v19, %v8277_v42  ;;  %v3494_v27 = vmax.f32 %v2746_v18, 0.0  ;;  %v3496_v49 = vmax.f32 %v2939_v16, 0.0  ;;  %v8313_v23 = vpop.permute.xlu1 %2447  ;;  %v8315_v26 = vpop.permute.xlu0 %2442 }
 0x2be   : > { %v3501_v47 = vmax.f32 %v2748_v62, 0.0  ;;  %v3503_v8 = vmax.f32 %v2941_v46, 0.0  ;;  %5598 = vmatmul.mubr.msk.bf16.gmra.mrb[116].mxu0 %vm2640_vm11, %v8117_v14 }
 0x2bf   : > { %5613 = vmatmul.mubr.msk.bf16.gmra.mrb[112].mxu1 %vm2640_vm11, %v8101_v32  ;;  %v3502_v60 = vmax.f32 %v2750_v41, 0.0  ;;  %v3504_v38 = vmax.f32 %v2943_v24, 0.0  ;;  %3247 = vmatprep.mubr.bf16.mxu0 %v9155_v50  ;;  %v5785_v24 = vld [vmem:[%s9095_s6 + $0x4] ss:$8 sps:$4 sm:$0xff]  }
 0x2c0   : > { %v3733_v34 = vpack.c.bf16 %v3501_v47, %v3493_v61  ;;  %v3735_v20 = vpack.c.bf16 %v3503_v8, %v3495_v1  ;;  %3430 = vmatprep.mubr.bf16.mxu1 %v9155_v50 }
 0x2c1   : > { %v3734_v6 = vpack.c.bf16 %v3502_v60, %v3494_v27  ;;  %v3736_v21 = vpack.c.bf16 %v3504_v38, %v3496_v49  ;;  %v2753_v7 = vpop.f32.mrb[12].mxu0  ;;  %v2946_v43 = vpop.f32.mrb[12].mxu1 }
 0x2c2   : > { %v2754_v32 = vadd.f32 %v2753_v7, %v8297_v13  ;;  %v2947_v33 = vadd.f32 %v2946_v43, %v8297_v13  ;;  %v2755_v54 = vpop.f32.mrb[13].mxu0  ;;  %v2948_v59 = vpop.f32.mrb[13].mxu1 }
 0x2c3   : > { %v2756_v55 = vadd.f32 %v2755_v54, %v8297_v13  ;;  %v2949_v44 = vadd.f32 %v2948_v59, %v8297_v13  ;;  %v2757_v10 = vpop.f32.mrb[14].mxu0  ;;  %v2950_v45 = vpop.f32.mrb[14].mxu1  ;;  %4041 = vmatprep.subr.bf16.mxu0 %v3734_v6  ;;  %4154 = vmatprep.subr.bf16.mxu1 %v3736_v21 }
 0x2c4   : > { %v2758_v25 = vadd.f32 %v2757_v10, %v8295_v3  ;;  %v2951_v51 = vadd.f32 %v2950_v45, %v8295_v3  ;;  %v2759_v30 = vpop.f32.mrb[15].mxu0  ;;  %v2952_v15 = vpop.f32.mrb[15].mxu1  ;;  %4042 = vmatpush1.bf16.msra.mxu0 %v3733_v34  ;;  %4155 = vmatpush1.bf16.msra.mxu1 %v3735_v20  ;;  %v3509_v9 = vmax.f32 %v2754_v32, 0.0  ;;  %v3511_v52 = vmax.f32 %v2947_v33, 0.0 }
 0x2c5   : > { %v2760_v35 = vadd.f32 %v2759_v30, %v8295_v3  ;;  %v2953_v28 = vadd.f32 %v2952_v15, %v8295_v3  ;;  %v3510_v57 = vmax.f32 %v2756_v55, 0.0  ;;  %v3512_v63 = vmax.f32 %v2949_v44, 0.0  ;;  %v8333_v32 = vpop.permute.xlu1 %2457  ;;  %v8335_v33 = vpop.permute.xlu0 %2452 }
 0x2c6   : > { %v3517_v39 = vmax.f32 %v2758_v25, 0.0  ;;  %v3519_v0 = vmax.f32 %v2951_v51, 0.0  ;;  %5599 = vmatmul.mubr.msk.bf16.gmra.mrb[120].mxu0 %vm2640_vm11, %v8141_v12 }
 0x2c7   : > { %5614 = vmatmul.mubr.msk.bf16.gmra.mrb[116].mxu1 %vm2640_vm11, %v8117_v14  ;;  %v3518_v36 = vmax.f32 %v2760_v35, 0.0  ;;  %v3520_v29 = vmax.f32 %v2953_v28, 0.0  ;;  %3257 = vmatprep.mubr.bf16.mxu0 %v9155_v50 }
 0x2c8   : > { %v3741_v58 = vpack.c.bf16 %v3517_v39, %v3509_v9  ;;  %v3743_v56 = vpack.c.bf16 %v3519_v0, %v3511_v52  ;;  %3440 = vmatprep.mubr.bf16.mxu1 %v9155_v50 }
 0x2c9   : > { %v3742_v4 = vpack.c.bf16 %v3518_v36, %v3510_v57  ;;  %v3744_v37 = vpack.c.bf16 %v3520_v29, %v3512_v63  ;;  %v2763_v18 = vpop.f32.mrb[16].mxu0  ;;  %v2956_v16 = vpop.f32.mrb[16].mxu1 }
 0x2ca   : > { %v2764_v14 = vadd.f32 %v2763_v18, %v8315_v26  ;;  %v2957_v17 = vadd.f32 %v2956_v16, %v8315_v26  ;;  %v2765_v31 = vpop.f32.mrb[17].mxu0  ;;  %v2958_v62 = vpop.f32.mrb[17].mxu1 }
 0x2cb   : > { %v2766_v46 = vadd.f32 %v2765_v31, %v8315_v26  ;;  %v2959_v5 = vadd.f32 %v2958_v62, %v8315_v26  ;;  %v2767_v19 = vpop.f32.mrb[18].mxu0  ;;  %v2960_v41 = vpop.f32.mrb[18].mxu1  ;;  %4043 = vmatprep.subr.bf16.mxu0 %v3742_v4  ;;  %4156 = vmatprep.subr.bf16.mxu1 %v3744_v37 }
 0x2cc   : > { %v2768_v61 = vadd.f32 %v2767_v19, %v8313_v23  ;;  %v2961_v1 = vadd.f32 %v2960_v41, %v8313_v23  ;;  %v2769_v47 = vpop.f32.mrb[19].mxu0  ;;  %v2962_v8 = vpop.f32.mrb[19].mxu1  ;;  %4044 = vmatpush1.bf16.msra.mxu0 %v3741_v58  ;;  %4157 = vmatpush1.bf16.msra.mxu1 %v3743_v56  ;;  %v3525_v60 = vmax.f32 %v2764_v14, 0.0  ;;  %v3527_v38 = vmax.f32 %v2957_v17, 0.0 }
 0x2cd   : > { %v2770_v27 = vadd.f32 %v2769_v47, %v8313_v23  ;;  %v2963_v49 = vadd.f32 %v2962_v8, %v8313_v23  ;;  %v3526_v6 = vmax.f32 %v2766_v46, 0.0  ;;  %v3528_v21 = vmax.f32 %v2959_v5, 0.0  ;;  %v8348_v17 = vpop.permute.xlu1 %2467  ;;  %v8350_v31 = vpop.permute.xlu0 %2462 }
 0x2ce   : > { %v3533_v34 = vmax.f32 %v2768_v61, 0.0  ;;  %v3535_v20 = vmax.f32 %v2961_v1, 0.0  ;;  %5600 = vmatmul.mubr.msk.bf16.gmra.mrb[124].mxu0 %vm2640_vm11, %v8168_v22 }
 0x2cf   : > { %5615 = vmatmul.mubr.msk.bf16.gmra.mrb[120].mxu1 %vm2640_vm11, %v8141_v12  ;;  %v3534_v7 = vmax.f32 %v2770_v27, 0.0  ;;  %v3536_v43 = vmax.f32 %v2963_v49, 0.0  ;;  %4069 = vmatprep.mubr.bf16.mxu0 %v5785_v24 }
 0x2d0   : > { %v3749_v54 = vpack.c.bf16 %v3533_v34, %v3525_v60  ;;  %v3751_v59 = vpack.c.bf16 %v3535_v20, %v3527_v38  ;;  %3450 = vmatprep.mubr.bf16.mxu1 %v9155_v50 }
 0x2d1   : > { %v3750_v55 = vpack.c.bf16 %v3534_v7, %v3526_v6  ;;  %v3752_v44 = vpack.c.bf16 %v3536_v43, %v3528_v21  ;;  %v2773_v10 = vpop.f32.mrb[20].mxu0  ;;  %v2966_v45 = vpop.f32.mrb[20].mxu1 }
 0x2d2   : > { %v2774_v25 = vadd.f32 %v2773_v10, %v8335_v33  ;;  %v2967_v12 = vadd.f32 %v2966_v45, %v8335_v33  ;;  %v2775_v51 = vpop.f32.mrb[21].mxu0  ;;  %v2968_v30 = vpop.f32.mrb[21].mxu1 }
 0x2d3   : > { %v2776_v15 = vadd.f32 %v2775_v51, %v8335_v33  ;;  %v2969_v35 = vadd.f32 %v2968_v30, %v8335_v33  ;;  %v2777_v28 = vpop.f32.mrb[22].mxu0  ;;  %v2970_v9 = vpop.f32.mrb[22].mxu1  ;;  %4045 = vmatprep.subr.bf16.mxu0 %v3750_v55  ;;  %4158 = vmatprep.subr.bf16.mxu1 %v3752_v44 }
 0x2d4   : > { %v2778_v52 = vadd.f32 %v2777_v28, %v8333_v32  ;;  %v2971_v39 = vadd.f32 %v2970_v9, %v8333_v32  ;;  %v2779_v0 = vpop.f32.mrb[23].mxu0  ;;  %v2972_v57 = vpop.f32.mrb[23].mxu1  ;;  %4046 = vmatpush1.bf16.msra.mxu0 %v3749_v54  ;;  %4159 = vmatpush1.bf16.msra.mxu1 %v3751_v59  ;;  %v3541_v29 = vmax.f32 %v2774_v25, 0.0  ;;  %v3543_v58 = vmax.f32 %v2967_v12, 0.0 }
 0x2d5   : > { %v2780_v63 = vadd.f32 %v2779_v0, %v8333_v32  ;;  %v2973_v36 = vadd.f32 %v2972_v57, %v8333_v32  ;;  %v3542_v37 = vmax.f32 %v2776_v15, 0.0  ;;  %v3544_v18 = vmax.f32 %v2969_v35, 0.0  ;;  %v8360_v12 = vpop.permute.xlu1 %2477  ;;  %v8362_v51 = vpop.permute.xlu0 %2472 }
 0x2d6   : > { %v3549_v56 = vmax.f32 %v2778_v52, 0.0  ;;  %v3551_v4 = vmax.f32 %v2971_v39, 0.0 }
 0x2d7   : > { %5616 = vmatmul.mubr.msk.bf16.gmra.mrb[124].mxu1 %vm2640_vm11, %v8168_v22  ;;  %v3550_v16 = vmax.f32 %v2780_v63, 0.0  ;;  %v3552_v14 = vmax.f32 %v2973_v36, 0.0  ;;  %vm5156_vm11 = vcmask 523264  }
 0x2d8   : > { %v3757_v62 = vpack.c.bf16 %v3549_v56, %v3541_v29  ;;  %v3759_v46 = vpack.c.bf16 %v3551_v4, %v3543_v58  ;;  %4182 = vmatprep.mubr.bf16.mxu1 %v5785_v24 }
 0x2d9   : > { %v3758_v5 = vpack.c.bf16 %v3550_v16, %v3542_v37  ;;  %v3760_v19 = vpack.c.bf16 %v3552_v14, %v3544_v18  ;;  %v2783_v41 = vpop.f32.mrb[24].mxu0  ;;  %v2976_v61 = vpop.f32.mrb[24].mxu1 }
 0x2da   : > { %v2784_v1 = vadd.f32 %v2783_v41, %v8350_v31  ;;  %v2977_v47 = vadd.f32 %v2976_v61, %v8350_v31  ;;  %v2785_v22 = vpop.f32.mrb[25].mxu0  ;;  %v2978_v8 = vpop.f32.mrb[25].mxu1 }
 0x2db   : > { %v2786_v27 = vadd.f32 %v2785_v22, %v8350_v31  ;;  %v2979_v49 = vadd.f32 %v2978_v8, %v8350_v31  ;;  %v2787_v60 = vpop.f32.mrb[26].mxu0  ;;  %v2980_v38 = vpop.f32.mrb[26].mxu1  ;;  %4047 = vmatprep.subr.bf16.mxu0 %v3758_v5  ;;  %4160 = vmatprep.subr.bf16.mxu1 %v3760_v19 }
 0x2dc   : > { %v2788_v24 = vadd.f32 %v2787_v60, %v8348_v17  ;;  %v2981_v34 = vadd.f32 %v2980_v38, %v8348_v17  ;;  %v2789_v20 = vpop.f32.mrb[27].mxu0  ;;  %v2982_v6 = vpop.f32.mrb[27].mxu1  ;;  %4048 = vmatpush1.bf16.msra.mxu0 %v3757_v62  ;;  %4161 = vmatpush1.bf16.msra.mxu1 %v3759_v46  ;;  %v3557_v43 = vmax.f32 %v2784_v1, 0.0  ;;  %v3559_v54 = vmax.f32 %v2977_v47, 0.0 }
 0x2dd   : > { %v2790_v21 = vadd.f32 %v2789_v20, %v8348_v17  ;;  %v2983_v7 = vadd.f32 %v2982_v6, %v8348_v17  ;;  %v3558_v44 = vmax.f32 %v2786_v27, 0.0  ;;  %v3560_v10 = vmax.f32 %v2979_v49, 0.0  ;;  %v8372_v8 = vpop.permute.xlu1 %2487  ;;  %v8374_v27 = vpop.permute.xlu0 %2482 }
 0x2de   : > { %v3565_v59 = vmax.f32 %v2788_v24, 0.0  ;;  %v3567_v55 = vmax.f32 %v2981_v34, 0.0 }
 0x2df   : > { %v3566_v45 = vmax.f32 %v2790_v21, 0.0  ;;  %v3568_v25 = vmax.f32 %v2983_v7, 0.0 }
 0x2e0   : > { %v3765_v30 = vpack.c.bf16 %v3565_v59, %v3557_v43  ;;  %v3767_v15 = vpack.c.bf16 %v3567_v55, %v3559_v54 }
 0x2e1   : > { %v3766_v35 = vpack.c.bf16 %v3566_v45, %v3558_v44  ;;  %v3768_v28 = vpack.c.bf16 %v3568_v25, %v3560_v10  ;;  %v2793_v9 = vpop.f32.mrb[28].mxu0  ;;  %v2986_v52 = vpop.f32.mrb[28].mxu1 }
 0x2e2   : > { %v2794_v39 = vadd.f32 %v2793_v9, %v8362_v51  ;;  %v2987_v0 = vadd.f32 %v2986_v52, %v8362_v51  ;;  %v2795_v57 = vpop.f32.mrb[29].mxu0  ;;  %v2988_v63 = vpop.f32.mrb[29].mxu1 }
 0x2e3   : > { %v2796_v36 = vadd.f32 %v2795_v57, %v8362_v51  ;;  %v2989_v29 = vadd.f32 %v2988_v63, %v8362_v51  ;;  %v2797_v58 = vpop.f32.mrb[30].mxu0  ;;  %v2990_v56 = vpop.f32.mrb[30].mxu1  ;;  %4049 = vmatprep.subr.bf16.mxu0 %v3766_v35  ;;  %4162 = vmatprep.subr.bf16.mxu1 %v3768_v28 }
 0x2e4   : > { %v2798_v4 = vadd.f32 %v2797_v58, %v8360_v12  ;;  %v2991_v37 = vadd.f32 %v2990_v56, %v8360_v12  ;;  %v2799_v18 = vpop.f32.mrb[31].mxu0  ;;  %v2992_v16 = vpop.f32.mrb[31].mxu1  ;;  %4050 = vmatpush1.bf16.msra.mxu0 %v3765_v30  ;;  %4163 = vmatpush1.bf16.msra.mxu1 %v3767_v15  ;;  %v3573_v46 = vmax.f32 %v2794_v39, 0.0  ;;  %v3575_v5 = vmax.f32 %v2987_v0, 0.0 }
 0x2e5   : > { %v2800_v14 = vadd.f32 %v2799_v18, %v8360_v12  ;;  %v2993_v62 = vadd.f32 %v2992_v16, %v8360_v12  ;;  %v3574_v61 = vmax.f32 %v2796_v36, 0.0  ;;  %v3576_v1 = vmax.f32 %v2989_v29, 0.0  ;;  %v8384_v29 = vpop.permute.xlu1 %2497  ;;  %v8386_v58 = vpop.permute.xlu0 %2492 }
 0x2e6   : > { %v3581_v19 = vmax.f32 %v2798_v4, 0.0  ;;  %v3583_v41 = vmax.f32 %v2991_v37, 0.0 }
 0x2e7   : > { %v3582_v47 = vmax.f32 %v2800_v14, 0.0  ;;  %v3584_v22 = vmax.f32 %v2993_v62, 0.0 }
 0x2e8   : > { %v3773_v49 = vpack.c.bf16 %v3581_v19, %v3573_v46  ;;  %v3775_v60 = vpack.c.bf16 %v3583_v41, %v3575_v5 }
 0x2e9   : > { %v3774_v38 = vpack.c.bf16 %v3582_v47, %v3574_v61  ;;  %v3776_v24 = vpack.c.bf16 %v3584_v22, %v3576_v1  ;;  %v2803_v34 = vpop.f32.mrb[32].mxu0  ;;  %v2996_v20 = vpop.f32.mrb[32].mxu1 }
 0x2ea   : > { %v2804_v6 = vadd.f32 %v2803_v34, %v8374_v27  ;;  %v2997_v21 = vadd.f32 %v2996_v20, %v8374_v27  ;;  %v2805_v7 = vpop.f32.mrb[33].mxu0  ;;  %v2998_v43 = vpop.f32.mrb[33].mxu1 }
 0x2eb   : > { %v2806_v54 = vadd.f32 %v2805_v7, %v8374_v27  ;;  %v2999_v59 = vadd.f32 %v2998_v43, %v8374_v27  ;;  %v2807_v55 = vpop.f32.mrb[34].mxu0  ;;  %v3000_v44 = vpop.f32.mrb[34].mxu1  ;;  %4051 = vmatprep.subr.bf16.mxu0 %v3774_v38  ;;  %4164 = vmatprep.subr.bf16.mxu1 %v3776_v24 }
 0x2ec   : > { %v2808_v10 = vadd.f32 %v2807_v55, %v8372_v8  ;;  %v3001_v45 = vadd.f32 %v3000_v44, %v8372_v8  ;;  %v2809_v25 = vpop.f32.mrb[35].mxu0  ;;  %v3002_v30 = vpop.f32.mrb[35].mxu1  ;;  %4052 = vmatpush1.bf16.msra.mxu0 %v3773_v49  ;;  %4165 = vmatpush1.bf16.msra.mxu1 %v3775_v60  ;;  %v3589_v28 = vmax.f32 %v2804_v6, 0.0  ;;  %v3591_v9 = vmax.f32 %v2997_v21, 0.0 }
 0x2ed   : > { %v2810_v15 = vadd.f32 %v2809_v25, %v8372_v8  ;;  %v3003_v35 = vadd.f32 %v3002_v30, %v8372_v8  ;;  %v3590_v0 = vmax.f32 %v2806_v54, 0.0  ;;  %v3592_v57 = vmax.f32 %v2999_v59, 0.0  ;;  %v8396_v44 = vpop.permute.xlu1 %2507 }
 0x2ee   : > { %v3597_v52 = vmax.f32 %v2808_v10, 0.0  ;;  %v3599_v39 = vmax.f32 %v3001_v45, 0.0  ;;  %v8398_v10 = vpop.permute.xlu0 %2502 }
 0x2ef   : > { %v3598_v63 = vmax.f32 %v2810_v15, 0.0  ;;  %v3600_v36 = vmax.f32 %v3003_v35, 0.0 }
 0x2f0   : > { %v3781_v56 = vpack.c.bf16 %v3597_v52, %v3589_v28  ;;  %v3783_v4 = vpack.c.bf16 %v3599_v39, %v3591_v9 }
 0x2f1   : > { %v3782_v37 = vpack.c.bf16 %v3598_v63, %v3590_v0  ;;  %v3784_v18 = vpack.c.bf16 %v3600_v36, %v3592_v57  ;;  %v2813_v16 = vpop.f32.mrb[36].mxu0  ;;  %v3006_v14 = vpop.f32.mrb[36].mxu1 }
 0x2f2   : > { %v2814_v62 = vadd.f32 %v2813_v16, %v8386_v58  ;;  %v3007_v46 = vadd.f32 %v3006_v14, %v8386_v58  ;;  %v2815_v5 = vpop.f32.mrb[37].mxu0  ;;  %v3008_v19 = vpop.f32.mrb[37].mxu1 }
 0x2f3   : > { %v2816_v41 = vadd.f32 %v2815_v5, %v8386_v58  ;;  %v3009_v61 = vadd.f32 %v3008_v19, %v8386_v58  ;;  %v2817_v1 = vpop.f32.mrb[38].mxu0  ;;  %v3010_v47 = vpop.f32.mrb[38].mxu1  ;;  %4053 = vmatprep.subr.bf16.mxu0 %v3782_v37  ;;  %4166 = vmatprep.subr.bf16.mxu1 %v3784_v18 }
 0x2f4   : > { %v2818_v22 = vadd.f32 %v2817_v1, %v8384_v29  ;;  %v3011_v49 = vadd.f32 %v3010_v47, %v8384_v29  ;;  %v2819_v60 = vpop.f32.mrb[39].mxu0  ;;  %v3012_v38 = vpop.f32.mrb[39].mxu1  ;;  %4054 = vmatpush1.bf16.msra.mxu0 %v3781_v56  ;;  %4167 = vmatpush1.bf16.msra.mxu1 %v3783_v4  ;;  %v3605_v20 = vmax.f32 %v2814_v62, 0.0  ;;  %v3607_v6 = vmax.f32 %v3007_v46, 0.0 }
 0x2f5   : > { %v2820_v24 = vadd.f32 %v2819_v60, %v8384_v29  ;;  %v3013_v34 = vadd.f32 %v3012_v38, %v8384_v29  ;;  %v3606_v43 = vmax.f32 %v2816_v41, 0.0  ;;  %v3608_v54 = vmax.f32 %v3009_v61, 0.0  ;;  %v8410_v60 = vpop.permute.xlu0 %2512 }
 0x2f6   : > { %v3613_v21 = vmax.f32 %v2818_v22, 0.0  ;;  %v3615_v7 = vmax.f32 %v3011_v49, 0.0  ;;  %v8408_v49 = vpop.permute.xlu1 %2517 }
 0x2f7   : > { %v3614_v59 = vmax.f32 %v2820_v24, 0.0  ;;  %v3616_v55 = vmax.f32 %v3013_v34, 0.0 }
 0x2f8   : > { %v3789_v45 = vpack.c.bf16 %v3613_v21, %v3605_v20  ;;  %v3791_v25 = vpack.c.bf16 %v3615_v7, %v3607_v6 }
 0x2f9   : > { %v3790_v30 = vpack.c.bf16 %v3614_v59, %v3606_v43  ;;  %v3792_v15 = vpack.c.bf16 %v3616_v55, %v3608_v54  ;;  %v2823_v35 = vpop.f32.mrb[40].mxu0  ;;  %v3016_v28 = vpop.f32.mrb[40].mxu1 }
 0x2fa   : > { %v2824_v9 = vadd.f32 %v2823_v35, %v8398_v10  ;;  %v3017_v52 = vadd.f32 %v3016_v28, %v8398_v10  ;;  %v2825_v39 = vpop.f32.mrb[41].mxu0  ;;  %v3018_v0 = vpop.f32.mrb[41].mxu1 }
 0x2fb   : > { %v2826_v57 = vadd.f32 %v2825_v39, %v8398_v10  ;;  %v3019_v63 = vadd.f32 %v3018_v0, %v8398_v10  ;;  %v2827_v36 = vpop.f32.mrb[42].mxu0  ;;  %v3020_v56 = vpop.f32.mrb[42].mxu1  ;;  %4055 = vmatprep.subr.bf16.mxu0 %v3790_v30  ;;  %4168 = vmatprep.subr.bf16.mxu1 %v3792_v15 }
 0x2fc   : > { %v2828_v4 = vadd.f32 %v2827_v36, %v8396_v44  ;;  %v3021_v37 = vadd.f32 %v3020_v56, %v8396_v44  ;;  %v2829_v18 = vpop.f32.mrb[43].mxu0  ;;  %v3022_v16 = vpop.f32.mrb[43].mxu1  ;;  %4056 = vmatpush1.bf16.msra.mxu0 %v3789_v45  ;;  %4169 = vmatpush1.bf16.msra.mxu1 %v3791_v25  ;;  %v3621_v46 = vmax.f32 %v2824_v9, 0.0  ;;  %v3623_v5 = vmax.f32 %v3017_v52, 0.0 }
 0x2fd   : > { %v2830_v14 = vadd.f32 %v2829_v18, %v8396_v44  ;;  %v3023_v62 = vadd.f32 %v3022_v16, %v8396_v44  ;;  %v3622_v61 = vmax.f32 %v2826_v57, 0.0  ;;  %v3624_v1 = vmax.f32 %v3019_v63, 0.0  ;;  %v8420_v16 = vpop.permute.xlu1 %2527 }
 0x2fe   : > { %v3629_v19 = vmax.f32 %v2828_v4, 0.0  ;;  %v3631_v41 = vmax.f32 %v3021_v37, 0.0 }
 0x2ff   : > { %v3630_v47 = vmax.f32 %v2830_v14, 0.0  ;;  %v3632_v22 = vmax.f32 %v3023_v62, 0.0  ;;  %v8422_v14 = vpop.permute.xlu0 %2522 }
 0x300   : > { %v3797_v38 = vpack.c.bf16 %v3629_v19, %v3621_v46  ;;  %v3799_v24 = vpack.c.bf16 %v3631_v41, %v3623_v5 }
 0x301   : > { %v3798_v34 = vpack.c.bf16 %v3630_v47, %v3622_v61  ;;  %v3800_v20 = vpack.c.bf16 %v3632_v22, %v3624_v1  ;;  %v2833_v6 = vpop.f32.mrb[44].mxu0  ;;  %v3026_v21 = vpop.f32.mrb[44].mxu1 }
 0x302   : > { %v2834_v7 = vadd.f32 %v2833_v6, %v8410_v60  ;;  %v3027_v43 = vadd.f32 %v3026_v21, %v8410_v60  ;;  %v2835_v54 = vpop.f32.mrb[45].mxu0  ;;  %v3028_v59 = vpop.f32.mrb[45].mxu1 }
 0x303   : > { %v2836_v55 = vadd.f32 %v2835_v54, %v8410_v60  ;;  %v3029_v45 = vadd.f32 %v3028_v59, %v8410_v60  ;;  %v2837_v25 = vpop.f32.mrb[46].mxu0  ;;  %v3030_v30 = vpop.f32.mrb[46].mxu1  ;;  %4057 = vmatprep.subr.bf16.mxu0 %v3798_v34  ;;  %4170 = vmatprep.subr.bf16.mxu1 %v3800_v20 }
 0x304   : > { %v2838_v15 = vadd.f32 %v2837_v25, %v8408_v49  ;;  %v3031_v35 = vadd.f32 %v3030_v30, %v8408_v49  ;;  %v2839_v28 = vpop.f32.mrb[47].mxu0  ;;  %v3032_v9 = vpop.f32.mrb[47].mxu1  ;;  %4058 = vmatpush1.bf16.msra.mxu0 %v3797_v38  ;;  %4171 = vmatpush1.bf16.msra.mxu1 %v3799_v24  ;;  %v3637_v0 = vmax.f32 %v2834_v7, 0.0  ;;  %v3639_v57 = vmax.f32 %v3027_v43, 0.0 }
 0x305   : > { %v2840_v52 = vadd.f32 %v2839_v28, %v8408_v49  ;;  %v3033_v39 = vadd.f32 %v3032_v9, %v8408_v49  ;;  %v3638_v56 = vmax.f32 %v2836_v55, 0.0  ;;  %v3640_v4 = vmax.f32 %v3029_v45, 0.0 }
 0x306   : > { %v3645_v63 = vmax.f32 %v2838_v15, 0.0  ;;  %v3647_v36 = vmax.f32 %v3031_v35, 0.0 }
 0x307   : > { %v3646_v37 = vmax.f32 %v2840_v52, 0.0  ;;  %v3648_v18 = vmax.f32 %v3033_v39, 0.0  ;;  %v8432_v39 = vpop.permute.xlu1 %2537 }
 0x308   : > { %v3805_v62 = vpack.c.bf16 %v3645_v63, %v3637_v0  ;;  %v3807_v46 = vpack.c.bf16 %v3647_v36, %v3639_v57  ;;  %v8434_v0 = vpop.permute.xlu0 %2532 }
 0x309   : > { %v3806_v5 = vpack.c.bf16 %v3646_v37, %v3638_v56  ;;  %v3808_v19 = vpack.c.bf16 %v3648_v18, %v3640_v4  ;;  %v2843_v41 = vpop.f32.mrb[48].mxu0  ;;  %v3036_v61 = vpop.f32.mrb[48].mxu1 }
 0x30a   : > { %v2844_v1 = vadd.f32 %v2843_v41, %v8422_v14  ;;  %v3037_v47 = vadd.f32 %v3036_v61, %v8422_v14  ;;  %v2845_v22 = vpop.f32.mrb[49].mxu0  ;;  %v3038_v38 = vpop.f32.mrb[49].mxu1 }
 0x30b   : > { %v2846_v24 = vadd.f32 %v2845_v22, %v8422_v14  ;;  %v3039_v34 = vadd.f32 %v3038_v38, %v8422_v14  ;;  %v2847_v20 = vpop.f32.mrb[50].mxu0  ;;  %v3040_v6 = vpop.f32.mrb[50].mxu1  ;;  %4059 = vmatprep.subr.bf16.mxu0 %v3806_v5  ;;  %4172 = vmatprep.subr.bf16.mxu1 %v3808_v19 }
 0x30c   : > { %v2848_v21 = vadd.f32 %v2847_v20, %v8420_v16  ;;  %v3041_v7 = vadd.f32 %v3040_v6, %v8420_v16  ;;  %v2849_v43 = vpop.f32.mrb[51].mxu0  ;;  %v3042_v54 = vpop.f32.mrb[51].mxu1  ;;  %4060 = vmatpush1.bf16.msra.mxu0 %v3805_v62  ;;  %4173 = vmatpush1.bf16.msra.mxu1 %v3807_v46  ;;  %v3653_v45 = vmax.f32 %v2844_v1, 0.0  ;;  %v3655_v25 = vmax.f32 %v3037_v47, 0.0 }
 0x30d   : > { %v2850_v59 = vadd.f32 %v2849_v43, %v8420_v16  ;;  %v3043_v55 = vadd.f32 %v3042_v54, %v8420_v16  ;;  %v3654_v35 = vmax.f32 %v2846_v24, 0.0  ;;  %v3656_v28 = vmax.f32 %v3039_v34, 0.0 }
 0x30e   : > { %v3661_v30 = vmax.f32 %v2848_v21, 0.0  ;;  %v3663_v15 = vmax.f32 %v3041_v7, 0.0 }
 0x30f   : > { %v3662_v9 = vmax.f32 %v2850_v59, 0.0  ;;  %v3664_v52 = vmax.f32 %v3043_v55, 0.0 }
 0x310   : > { %v3813_v57 = vpack.c.bf16 %v3661_v30, %v3653_v45  ;;  %v3815_v63 = vpack.c.bf16 %v3663_v15, %v3655_v25  ;;  %v8444_v25 = vpop.permute.xlu1 %2547  ;;  %v8446_v30 = vpop.permute.xlu0 %2542 }
 0x311   : > { %v3814_v36 = vpack.c.bf16 %v3662_v9, %v3654_v35  ;;  %v3816_v56 = vpack.c.bf16 %v3664_v52, %v3656_v28  ;;  %v2853_v4 = vpop.f32.mrb[52].mxu0  ;;  %v3046_v37 = vpop.f32.mrb[52].mxu1 }
 0x312   : > { %v2854_v18 = vadd.f32 %v2853_v4, %v8434_v0  ;;  %v3047_v62 = vadd.f32 %v3046_v37, %v8434_v0  ;;  %v2855_v46 = vpop.f32.mrb[53].mxu0  ;;  %v3048_v5 = vpop.f32.mrb[53].mxu1 }
 0x313   : > { %v2856_v19 = vadd.f32 %v2855_v46, %v8434_v0  ;;  %v3049_v41 = vadd.f32 %v3048_v5, %v8434_v0  ;;  %v2857_v61 = vpop.f32.mrb[54].mxu0  ;;  %v3050_v1 = vpop.f32.mrb[54].mxu1  ;;  %4061 = vmatprep.subr.bf16.mxu0 %v3814_v36  ;;  %4174 = vmatprep.subr.bf16.mxu1 %v3816_v56 }
 0x314   : > { %v2858_v47 = vadd.f32 %v2857_v61, %v8432_v39  ;;  %v3051_v22 = vadd.f32 %v3050_v1, %v8432_v39  ;;  %v2859_v38 = vpop.f32.mrb[55].mxu0  ;;  %v3052_v24 = vpop.f32.mrb[55].mxu1  ;;  %4062 = vmatpush1.bf16.msra.mxu0 %v3813_v57  ;;  %4175 = vmatpush1.bf16.msra.mxu1 %v3815_v63  ;;  %v3669_v6 = vmax.f32 %v2854_v18, 0.0  ;;  %v3671_v21 = vmax.f32 %v3047_v62, 0.0 }
 0x315   : > { %v2860_v34 = vadd.f32 %v2859_v38, %v8432_v39  ;;  %v3053_v20 = vadd.f32 %v3052_v24, %v8432_v39  ;;  %v3670_v54 = vmax.f32 %v2856_v19, 0.0  ;;  %v3672_v59 = vmax.f32 %v3049_v41, 0.0 }
 0x316   : > { %v3677_v7 = vmax.f32 %v2858_v47, 0.0  ;;  %v3679_v43 = vmax.f32 %v3051_v22, 0.0 }
 0x317   : > { %v3678_v55 = vmax.f32 %v2860_v34, 0.0  ;;  %v3680_v45 = vmax.f32 %v3053_v20, 0.0 }
 0x318   : > { %v3821_v15 = vpack.c.bf16 %v3677_v7, %v3669_v6  ;;  %v3823_v35 = vpack.c.bf16 %v3679_v43, %v3671_v21  ;;  %v8456_v43 = vpop.permute.xlu1 %2557 }
 0x319   : > { %v3822_v28 = vpack.c.bf16 %v3678_v55, %v3670_v54  ;;  %v3824_v9 = vpack.c.bf16 %v3680_v45, %v3672_v59  ;;  %v2863_v52 = vpop.f32.mrb[56].mxu0  ;;  %v3056_v57 = vpop.f32.mrb[56].mxu1 }
 0x31a   : > { %v2864_v63 = vadd.f32 %v2863_v52, %v8446_v30  ;;  %v3057_v36 = vadd.f32 %v3056_v57, %v8446_v30  ;;  %v2865_v56 = vpop.f32.mrb[57].mxu0  ;;  %v3058_v4 = vpop.f32.mrb[57].mxu1 }
 0x31b   : > { %v2866_v37 = vadd.f32 %v2865_v56, %v8446_v30  ;;  %v3059_v18 = vadd.f32 %v3058_v4, %v8446_v30  ;;  %v2867_v62 = vpop.f32.mrb[58].mxu0  ;;  %v3060_v46 = vpop.f32.mrb[58].mxu1  ;;  %4063 = vmatprep.subr.bf16.mxu0 %v3822_v28  ;;  %4176 = vmatprep.subr.bf16.mxu1 %v3824_v9 }
 0x31c   : > { %v2868_v5 = vadd.f32 %v2867_v62, %v8444_v25  ;;  %v3061_v19 = vadd.f32 %v3060_v46, %v8444_v25  ;;  %v2869_v41 = vpop.f32.mrb[59].mxu0  ;;  %v3062_v61 = vpop.f32.mrb[59].mxu1  ;;  %4064 = vmatpush1.bf16.msra.mxu0 %v3821_v15  ;;  %4177 = vmatpush1.bf16.msra.mxu1 %v3823_v35  ;;  %v3685_v22 = vmax.f32 %v2864_v63, 0.0  ;;  %v3687_v38 = vmax.f32 %v3057_v36, 0.0 }
 0x31d   : > { %v2870_v1 = vadd.f32 %v2869_v41, %v8444_v25  ;;  %v3063_v47 = vadd.f32 %v3062_v61, %v8444_v25  ;;  %v3686_v20 = vmax.f32 %v2866_v37, 0.0  ;;  %v3688_v6 = vmax.f32 %v3059_v18, 0.0  ;;  %v8458_v54 = vpop.permute.xlu0 %2552 }
 0x31e   : > { %v3693_v24 = vmax.f32 %v2868_v5, 0.0  ;;  %v3695_v34 = vmax.f32 %v3061_v19, 0.0 }
 0x31f   : > { %v3694_v21 = vmax.f32 %v2870_v1, 0.0  ;;  %v3696_v7 = vmax.f32 %v3063_v47, 0.0 }
 0x320   : > { %v3829_v59 = vpack.c.bf16 %v3693_v24, %v3685_v22  ;;  %v3831_v55 = vpack.c.bf16 %v3695_v34, %v3687_v38 }
 0x321   : > { %v3830_v45 = vpack.c.bf16 %v3694_v21, %v3686_v20  ;;  %v3832_v15 = vpack.c.bf16 %v3696_v7, %v3688_v6  ;;  %v2873_v35 = vpop.f32.mrb[60].mxu0  ;;  %v3066_v28 = vpop.f32.mrb[60].mxu1 }
 0x322   : > { %v2874_v9 = vadd.f32 %v2873_v35, %v8458_v54  ;;  %v3067_v52 = vadd.f32 %v3066_v28, %v8458_v54  ;;  %v2875_v57 = vpop.f32.mrb[61].mxu0  ;;  %v3068_v63 = vpop.f32.mrb[61].mxu1 }
 0x323   : > { %v2876_v36 = vadd.f32 %v2875_v57, %v8458_v54  ;;  %v3069_v56 = vadd.f32 %v3068_v63, %v8458_v54  ;;  %v2877_v4 = vpop.f32.mrb[62].mxu0  ;;  %v3070_v37 = vpop.f32.mrb[62].mxu1  ;;  %4065 = vmatprep.subr.bf16.mxu0 %v3830_v45  ;;  %4178 = vmatprep.subr.bf16.mxu1 %v3832_v15  ;;  %v5786_v63 = vld [vmem:[%s9095_s6 + $0x14] ss:$8 sps:$4 sm:$0xff]  }
 0x324   : > { %v2878_v18 = vadd.f32 %v2877_v4, %v8456_v43  ;;  %v3071_v62 = vadd.f32 %v3070_v37, %v8456_v43  ;;  %v2879_v46 = vpop.f32.mrb[63].mxu0  ;;  %v3072_v5 = vpop.f32.mrb[63].mxu1  ;;  %4066 = vmatpush1.bf16.msra.mxu0 %v3829_v59  ;;  %4179 = vmatpush1.bf16.msra.mxu1 %v3831_v55  ;;  %v3701_v61 = vmax.f32 %v2874_v9, 0.0  ;;  %v3703_v1 = vmax.f32 %v3067_v52, 0.0  ;;  %v5783_v9 = vld [vmem:[%s9095_s6] ss:$8 sps:$4 sm:$0xff]  }
 0x325   : > { %v2880_v19 = vadd.f32 %v2879_v46, %v8456_v43  ;;  %v3073_v41 = vadd.f32 %v3072_v5, %v8456_v43  ;;  %v3702_v38 = vmax.f32 %v2876_v36, 0.0  ;;  %v3704_v24 = vmax.f32 %v3069_v56, 0.0 }
 0x326   : > { %v3709_v47 = vmax.f32 %v2878_v18, 0.0  ;;  %v3711_v22 = vmax.f32 %v3071_v62, 0.0 }
 0x327   : > { %v3710_v34 = vmax.f32 %v2880_v19, 0.0  ;;  %v3712_v20 = vmax.f32 %v3073_v41, 0.0 }
 0x328   : > { %v3837_v6 = vpack.c.bf16 %v3709_v47, %v3701_v61  ;;  %v3839_v21 = vpack.c.bf16 %v3711_v22, %v3703_v1 }
 0x329   : > { %v3838_v7 = vpack.c.bf16 %v3710_v34, %v3702_v38  ;;  %v3840_v45 = vpack.c.bf16 %v3712_v20, %v3704_v24  ;;  %v3109_v15 = vpop.f32.mrb[64].mxu0  ;;  %v5788_v24 = vld [vmem:[%s9095_s6 + $0x10] ss:$8 sps:$4 sm:$0xff]  }
 0x32a   : > { %v3110_v59 = vadd.f32 %v3109_v15, %v8202_v48  ;;  %v3111_v55 = vpop.f32.mrb[65].mxu0 }
 0x32b   : > { %v3112_v35 = vadd.f32 %v3111_v55, %v8202_v48  ;;  %v3113_v28 = vpop.f32.mrb[66].mxu0  ;;  %4067 = vmatprep.subr.bf16.mxu0 %v3838_v7  ;;  %4180 = vmatprep.subr.bf16.mxu1 %v3840_v45  ;;  %v5789_v7 = vld [vmem:[%s9095_s6 + $0x24] ss:$8 sps:$4 sm:$0xff]  }
 0x32c   : > { %v3114_v52 = vadd.f32 %v3113_v28, %v8200_v53  ;;  %v3115_v57 = vpop.f32.mrb[67].mxu0  ;;  %4068 = vmatpush1.bf16.msra.mxu0 %v3837_v6  ;;  %4181 = vmatpush1.bf16.msra.mxu1 %v3839_v21  ;;  %v3465_v56 = vmax.f32 %v3110_v59, 0.0 }
 0x32d   : > { %v3116_v36 = vadd.f32 %v3115_v57, %v8200_v53  ;;  %v3466_v37 = vmax.f32 %v3112_v35, 0.0 }
 0x32e   : > { %v3473_v4 = vmax.f32 %v3114_v52, 0.0 }
 0x32f   : > { %v3474_v18 = vmax.f32 %v3116_v36, 0.0  ;;  %4070 = vmatmul.mubr.bf16.vlgmr.msra.gmra.mrb[128].mxu0 %v5783_v9  ;;  %4183 = vmatmul.mubr.bf16.vlgmr.msra.gmra.mrb[128].mxu1 %v5783_v9 }
 0x330   : > { %v3721_v62 = vpack.c.bf16 %v3473_v4, %v3465_v56  ;;  %4079 = vmatprep.mubr.bf16.mxu0 %v5786_v63  ;;  %4192 = vmatprep.mubr.bf16.mxu1 %v5786_v63 }
 0x331   : > { %v3722_v46 = vpack.c.bf16 %v3474_v18, %v3466_v37  ;;  %v3119_v5 = vpop.f32.mrb[68].mxu0 }
 0x332   : > { %v3302_v19 = vpop.f32.mrb[64].mxu1  ;;  %v3120_v41 = vadd.f32 %v3119_v5, %v8261_v40  ;;  %v3121_v61 = vpop.f32.mrb[69].mxu0 }
 0x333   : > { %v3303_v1 = vadd.f32 %v3302_v19, %v8202_v48  ;;  %v3304_v47 = vpop.f32.mrb[65].mxu1  ;;  %v3122_v22 = vadd.f32 %v3121_v61, %v8261_v40  ;;  %v3123_v38 = vpop.f32.mrb[70].mxu0  ;;  %4263 = vmatprep.subr.bf16.mxu0 %v3722_v46 }
 0x334   : > { %v3305_v34 = vadd.f32 %v3304_v47, %v8202_v48  ;;  %v3306_v20 = vpop.f32.mrb[66].mxu1  ;;  %v3124_v6 = vadd.f32 %v3123_v38, %v8259_v11  ;;  %v3125_v21 = vpop.f32.mrb[71].mxu0  ;;  %4264 = vmatpush1.bf16.msra.mxu0 %v3721_v62  ;;  %v3481_v35 = vmax.f32 %v3120_v41, 0.0  ;;  %v8498_v47 = vld [vmem:[%s9095_s6 + $0x20] ss:$8 sps:$4 sm:$0xff]  }
 0x335   : > { %v3307_v45 = vadd.f32 %v3306_v20, %v8200_v53  ;;  %v3308_v15 = vpop.f32.mrb[67].mxu1  ;;  %v3126_v59 = vadd.f32 %v3125_v21, %v8259_v11  ;;  %v3467_v9 = vmax.f32 %v3303_v1, 0.0  ;;  %v3482_v52 = vmax.f32 %v3122_v22, 0.0  ;;  %v8505_v20 = vld [vmem:[%s9095_s6 + $0x34] ss:$8 sps:$4 sm:$0xff]  }
 0x336   : > { %v3309_v55 = vadd.f32 %v3308_v15, %v8200_v53  ;;  %v3489_v28 = vmax.f32 %v3124_v6, 0.0  ;;  %v3468_v63 = vmax.f32 %v3305_v34, 0.0 }
 0x337   : > { %v3475_v48 = vmax.f32 %v3307_v45, 0.0  ;;  %v3490_v57 = vmax.f32 %v3126_v59, 0.0  ;;  %4080 = vmatmul.mubr.bf16.gmra.mrb[132].mxu0 %v5788_v24  ;;  %4193 = vmatmul.mubr.bf16.gmra.mrb[132].mxu1 %v5788_v24 }
 0x338   : > { %v3476_v36 = vmax.f32 %v3309_v55, 0.0  ;;  %v3729_v56 = vpack.c.bf16 %v3489_v28, %v3481_v35  ;;  %4089 = vmatprep.mubr.bf16.mxu0 %v5789_v7  ;;  %4202 = vmatprep.mubr.bf16.mxu1 %v5789_v7 }
 0x339   : > { %v3723_v4 = vpack.c.bf16 %v3475_v48, %v3467_v9  ;;  %v3730_v37 = vpack.c.bf16 %v3490_v57, %v3482_v52  ;;  %v3129_v18 = vpop.f32.mrb[72].mxu0 }
 0x33a   : > { %v3724_v62 = vpack.c.bf16 %v3476_v36, %v3468_v63  ;;  %v3312_v46 = vpop.f32.mrb[68].mxu1  ;;  %v3130_v53 = vadd.f32 %v3129_v18, %v8279_v2  ;;  %v3131_v5 = vpop.f32.mrb[73].mxu0 }
 0x33b   : > { %v3313_v19 = vadd.f32 %v3312_v46, %v8261_v40  ;;  %v3314_v41 = vpop.f32.mrb[69].mxu1  ;;  %v3132_v61 = vadd.f32 %v3131_v5, %v8279_v2  ;;  %v3133_v1 = vpop.f32.mrb[74].mxu0  ;;  %4265 = vmatprep.subr.bf16.mxu0 %v3730_v37  ;;  %v8520_v5 = vld [vmem:[%s9095_s6 + $0x30] ss:$8 sps:$4 sm:$0xff]  }
 0x33c   : > { %v3315_v22 = vadd.f32 %v3314_v41, %v8261_v40  ;;  %v3316_v38 = vpop.f32.mrb[70].mxu1  ;;  %4376 = vmatprep.subr.bf16.mxu1 %v3724_v62  ;;  %v3134_v24 = vadd.f32 %v3133_v1, %v8277_v42  ;;  %v3135_v34 = vpop.f32.mrb[75].mxu0  ;;  %4266 = vmatpush1.bf16.msra.mxu0 %v3729_v56  ;;  %v3497_v40 = vmax.f32 %v3130_v53, 0.0 }
 0x33d   : > { %v3317_v6 = vadd.f32 %v3316_v38, %v8259_v11  ;;  %v3318_v21 = vpop.f32.mrb[71].mxu1  ;;  %4377 = vmatpush1.bf16.msra.mxu1 %v3723_v4  ;;  %v3136_v7 = vadd.f32 %v3135_v34, %v8277_v42  ;;  %v3483_v59 = vmax.f32 %v3313_v19, 0.0  ;;  %v3498_v35 = vmax.f32 %v3132_v61, 0.0 }
 0x33e   : > { %v3319_v45 = vadd.f32 %v3318_v21, %v8259_v11  ;;  %v3505_v15 = vmax.f32 %v3134_v24, 0.0  ;;  %v3484_v9 = vmax.f32 %v3315_v22, 0.0  ;;  %v8527_v22 = vld [vmem:[%s9095_s6 + $0x44] ss:$8 sps:$4 sm:$0xff]  }
 0x33f   : > { %v3491_v55 = vmax.f32 %v3317_v6, 0.0  ;;  %v3506_v28 = vmax.f32 %v3136_v7, 0.0  ;;  %4090 = vmatmul.mubr.bf16.gmra.mrb[136].mxu0 %v8498_v47  ;;  %4203 = vmatmul.mubr.bf16.gmra.mrb[136].mxu1 %v8498_v47 }
 0x340   : > { %v3492_v48 = vmax.f32 %v3319_v45, 0.0  ;;  %v3737_v52 = vpack.c.bf16 %v3505_v15, %v3497_v40  ;;  %4099 = vmatprep.mubr.bf16.mxu0 %v8505_v20  ;;  %4212 = vmatprep.mubr.bf16.mxu1 %v8505_v20 }
 0x341   : > { %v3731_v57 = vpack.c.bf16 %v3491_v55, %v3483_v59  ;;  %v3738_v63 = vpack.c.bf16 %v3506_v28, %v3498_v35  ;;  %v3139_v11 = vpop.f32.mrb[76].mxu0 }
 0x342   : > { %v3732_v36 = vpack.c.bf16 %v3492_v48, %v3484_v9  ;;  %v3322_v56 = vpop.f32.mrb[72].mxu1  ;;  %v3140_v4 = vadd.f32 %v3139_v11, %v8297_v13  ;;  %v3141_v37 = vpop.f32.mrb[77].mxu0 }
 0x343   : > { %v3323_v18 = vadd.f32 %v3322_v56, %v8279_v2  ;;  %v3324_v62 = vpop.f32.mrb[73].mxu1  ;;  %v3142_v46 = vadd.f32 %v3141_v37, %v8297_v13  ;;  %v3143_v53 = vpop.f32.mrb[78].mxu0  ;;  %4267 = vmatprep.subr.bf16.mxu0 %v3738_v63  ;;  %v8542_v37 = vld [vmem:[%s9095_s6 + $0x40] ss:$8 sps:$4 sm:$0xff]  }
 0x344   : > { %v3325_v19 = vadd.f32 %v3324_v62, %v8279_v2  ;;  %v3326_v41 = vpop.f32.mrb[74].mxu1  ;;  %4378 = vmatprep.subr.bf16.mxu1 %v3732_v36  ;;  %v3144_v61 = vadd.f32 %v3143_v53, %v8295_v3  ;;  %v3145_v1 = vpop.f32.mrb[79].mxu0  ;;  %4268 = vmatpush1.bf16.msra.mxu0 %v3737_v52  ;;  %v3513_v2 = vmax.f32 %v3140_v4, 0.0 }
 0x345   : > { %v3327_v38 = vadd.f32 %v3326_v41, %v8277_v42  ;;  %v3328_v24 = vpop.f32.mrb[75].mxu1  ;;  %4379 = vmatpush1.bf16.msra.mxu1 %v3731_v57  ;;  %v3146_v34 = vadd.f32 %v3145_v1, %v8295_v3  ;;  %v3499_v7 = vmax.f32 %v3323_v18, 0.0  ;;  %v3514_v40 = vmax.f32 %v3142_v46, 0.0 }
 0x346   : > { %v3329_v6 = vadd.f32 %v3328_v24, %v8277_v42  ;;  %v3521_v21 = vmax.f32 %v3144_v61, 0.0  ;;  %v3500_v59 = vmax.f32 %v3325_v19, 0.0  ;;  %v8549_v19 = vld [vmem:[%s9095_s6 + $0x54] ss:$8 sps:$4 sm:$0xff]  }
 0x347   : > { %v3507_v45 = vmax.f32 %v3327_v38, 0.0  ;;  %v3522_v15 = vmax.f32 %v3146_v34, 0.0  ;;  %4100 = vmatmul.mubr.bf16.gmra.mrb[140].mxu0 %v8520_v5  ;;  %4213 = vmatmul.mubr.bf16.gmra.mrb[140].mxu1 %v8520_v5 }
 0x348   : > { %v3508_v55 = vmax.f32 %v3329_v6, 0.0  ;;  %v3745_v35 = vpack.c.bf16 %v3521_v21, %v3513_v2  ;;  %4109 = vmatprep.mubr.bf16.mxu0 %v8527_v22  ;;  %4222 = vmatprep.mubr.bf16.mxu1 %v8527_v22 }
 0x349   : > { %v3739_v28 = vpack.c.bf16 %v3507_v45, %v3499_v7  ;;  %v3746_v9 = vpack.c.bf16 %v3522_v15, %v3514_v40  ;;  %v3149_v42 = vpop.f32.mrb[80].mxu0 }
 0x34a   : > { %v3740_v48 = vpack.c.bf16 %v3508_v55, %v3500_v59  ;;  %v3332_v52 = vpop.f32.mrb[76].mxu1  ;;  %v3150_v57 = vadd.f32 %v3149_v42, %v8315_v26  ;;  %v3151_v63 = vpop.f32.mrb[81].mxu0 }
 0x34b   : > { %v3333_v11 = vadd.f32 %v3332_v52, %v8297_v13  ;;  %v3334_v36 = vpop.f32.mrb[77].mxu1  ;;  %v3152_v56 = vadd.f32 %v3151_v63, %v8315_v26  ;;  %v3153_v4 = vpop.f32.mrb[82].mxu0  ;;  %4269 = vmatprep.subr.bf16.mxu0 %v3746_v9  ;;  %v8564_v63 = vld [vmem:[%s9095_s6 + $0x50] ss:$8 sps:$4 sm:$0xff]  }
 0x34c   : > { %v3335_v18 = vadd.f32 %v3334_v36, %v8297_v13  ;;  %v3336_v62 = vpop.f32.mrb[78].mxu1  ;;  %4380 = vmatprep.subr.bf16.mxu1 %v3740_v48  ;;  %v3154_v46 = vadd.f32 %v3153_v4, %v8313_v23  ;;  %v3155_v53 = vpop.f32.mrb[83].mxu0  ;;  %4270 = vmatpush1.bf16.msra.mxu0 %v3745_v35  ;;  %v3529_v13 = vmax.f32 %v3150_v57, 0.0 }
 0x34d   : > { %v3337_v41 = vadd.f32 %v3336_v62, %v8295_v3  ;;  %v3338_v61 = vpop.f32.mrb[79].mxu1  ;;  %4381 = vmatpush1.bf16.msra.mxu1 %v3739_v28  ;;  %v3156_v1 = vadd.f32 %v3155_v53, %v8313_v23  ;;  %v3515_v34 = vmax.f32 %v3333_v11, 0.0  ;;  %v3530_v2 = vmax.f32 %v3152_v56, 0.0 }
 0x34e   : > { %v3339_v38 = vadd.f32 %v3338_v61, %v8295_v3  ;;  %v3537_v24 = vmax.f32 %v3154_v46, 0.0  ;;  %v3516_v7 = vmax.f32 %v3335_v18, 0.0  ;;  %v8571_v18 = vld [vmem:[%s9095_s6 + $0x64] ss:$8 sps:$4 sm:$0xff]  }
 0x34f   : > { %v3523_v6 = vmax.f32 %v3337_v41, 0.0  ;;  %v3538_v21 = vmax.f32 %v3156_v1, 0.0  ;;  %4110 = vmatmul.mubr.bf16.gmra.mrb[144].mxu0 %v8542_v37  ;;  %4223 = vmatmul.mubr.bf16.gmra.mrb[144].mxu1 %v8542_v37 }
 0x350   : > { %v3524_v45 = vmax.f32 %v3339_v38, 0.0  ;;  %v3753_v40 = vpack.c.bf16 %v3537_v24, %v3529_v13  ;;  %4119 = vmatprep.mubr.bf16.mxu0 %v8549_v19  ;;  %4232 = vmatprep.mubr.bf16.mxu1 %v8549_v19 }
 0x351   : > { %v3747_v15 = vpack.c.bf16 %v3523_v6, %v3515_v34  ;;  %v3754_v59 = vpack.c.bf16 %v3538_v21, %v3530_v2  ;;  %v3159_v3 = vpop.f32.mrb[84].mxu0 }
 0x352   : > { %v3748_v55 = vpack.c.bf16 %v3524_v45, %v3516_v7  ;;  %v3342_v35 = vpop.f32.mrb[80].mxu1  ;;  %v3160_v28 = vadd.f32 %v3159_v3, %v8335_v33  ;;  %v3161_v9 = vpop.f32.mrb[85].mxu0 }
 0x353   : > { %v3343_v42 = vadd.f32 %v3342_v35, %v8315_v26  ;;  %v3344_v48 = vpop.f32.mrb[81].mxu1  ;;  %v3162_v52 = vadd.f32 %v3161_v9, %v8335_v33  ;;  %v3163_v57 = vpop.f32.mrb[86].mxu0  ;;  %4271 = vmatprep.subr.bf16.mxu0 %v3754_v59  ;;  %v8586_v9 = vld [vmem:[%s9095_s6 + $0x60] ss:$8 sps:$4 sm:$0xff]  }
 0x354   : > { %v3345_v11 = vadd.f32 %v3344_v48, %v8315_v26  ;;  %v3346_v36 = vpop.f32.mrb[82].mxu1  ;;  %4382 = vmatprep.subr.bf16.mxu1 %v3748_v55  ;;  %v3164_v56 = vadd.f32 %v3163_v57, %v8333_v32  ;;  %v3165_v4 = vpop.f32.mrb[87].mxu0  ;;  %4272 = vmatpush1.bf16.msra.mxu0 %v3753_v40  ;;  %v3545_v26 = vmax.f32 %v3160_v28, 0.0 }
 0x355   : > { %v3347_v62 = vadd.f32 %v3346_v36, %v8313_v23  ;;  %v3348_v46 = vpop.f32.mrb[83].mxu1  ;;  %4383 = vmatpush1.bf16.msra.mxu1 %v3747_v15  ;;  %v3166_v53 = vadd.f32 %v3165_v4, %v8333_v32  ;;  %v3531_v1 = vmax.f32 %v3343_v42, 0.0  ;;  %v3546_v13 = vmax.f32 %v3162_v52, 0.0 }
 0x356   : > { %v3349_v41 = vadd.f32 %v3348_v46, %v8313_v23  ;;  %v3553_v61 = vmax.f32 %v3164_v56, 0.0  ;;  %v3532_v34 = vmax.f32 %v3345_v11, 0.0  ;;  %v8593_v11 = vld [vmem:[%s9095_s6 + $0x74] ss:$8 sps:$4 sm:$0xff]  }
 0x357   : > { %v3539_v38 = vmax.f32 %v3347_v62, 0.0  ;;  %v3554_v24 = vmax.f32 %v3166_v53, 0.0  ;;  %4120 = vmatmul.mubr.bf16.gmra.mrb[148].mxu0 %v8564_v63  ;;  %4233 = vmatmul.mubr.bf16.gmra.mrb[148].mxu1 %v8564_v63 }
 0x358   : > { %v3540_v6 = vmax.f32 %v3349_v41, 0.0  ;;  %v3761_v2 = vpack.c.bf16 %v3553_v61, %v3545_v26  ;;  %4129 = vmatprep.mubr.bf16.mxu0 %v8571_v18  ;;  %4242 = vmatprep.mubr.bf16.mxu1 %v8571_v18 }
 0x359   : > { %v3755_v21 = vpack.c.bf16 %v3539_v38, %v3531_v1  ;;  %v3762_v7 = vpack.c.bf16 %v3554_v24, %v3546_v13  ;;  %v3169_v23 = vpop.f32.mrb[88].mxu0 }
 0x35a   : > { %v3756_v45 = vpack.c.bf16 %v3540_v6, %v3532_v34  ;;  %v3352_v40 = vpop.f32.mrb[84].mxu1  ;;  %v3170_v15 = vadd.f32 %v3169_v23, %v8350_v31  ;;  %v3171_v59 = vpop.f32.mrb[89].mxu0 }
 0x35b   : > { %v3353_v3 = vadd.f32 %v3352_v40, %v8335_v33  ;;  %v3354_v55 = vpop.f32.mrb[85].mxu1  ;;  %v3172_v35 = vadd.f32 %v3171_v59, %v8350_v31  ;;  %v3173_v28 = vpop.f32.mrb[90].mxu0  ;;  %4273 = vmatprep.subr.bf16.mxu0 %v3762_v7  ;;  %v8608_v59 = vld [vmem:[%s9095_s6 + $0x70] ss:$8 sps:$4 sm:$0xff]  }
 0x35c   : > { %v3355_v42 = vadd.f32 %v3354_v55, %v8335_v33  ;;  %v3356_v48 = vpop.f32.mrb[86].mxu1  ;;  %4384 = vmatprep.subr.bf16.mxu1 %v3756_v45  ;;  %v3174_v52 = vadd.f32 %v3173_v28, %v8348_v17  ;;  %v3175_v57 = vpop.f32.mrb[91].mxu0  ;;  %4274 = vmatpush1.bf16.msra.mxu0 %v3761_v2  ;;  %v3561_v33 = vmax.f32 %v3170_v15, 0.0 }
 0x35d   : > { %v3357_v36 = vadd.f32 %v3356_v48, %v8333_v32  ;;  %v3358_v56 = vpop.f32.mrb[87].mxu1  ;;  %4385 = vmatpush1.bf16.msra.mxu1 %v3755_v21  ;;  %v3176_v4 = vadd.f32 %v3175_v57, %v8348_v17  ;;  %v3547_v53 = vmax.f32 %v3353_v3, 0.0  ;;  %v3562_v26 = vmax.f32 %v3172_v35, 0.0 }
 0x35e   : > { %v3359_v62 = vadd.f32 %v3358_v56, %v8333_v32  ;;  %v3569_v46 = vmax.f32 %v3174_v52, 0.0  ;;  %v3548_v1 = vmax.f32 %v3355_v42, 0.0 }
 0x35f   : > { %v3555_v41 = vmax.f32 %v3357_v36, 0.0  ;;  %v3570_v61 = vmax.f32 %v3176_v4, 0.0  ;;  %4130 = vmatmul.mubr.bf16.gmra.mrb[152].mxu0 %v8586_v9  ;;  %4243 = vmatmul.mubr.bf16.gmra.mrb[152].mxu1 %v8586_v9 }
 0x360   : > { %v3556_v38 = vmax.f32 %v3359_v62, 0.0  ;;  %v3769_v13 = vpack.c.bf16 %v3569_v46, %v3561_v33  ;;  %4139 = vmatprep.mubr.bf16.mxu0 %v8593_v11  ;;  %4252 = vmatprep.mubr.bf16.mxu1 %v8593_v11 }
 0x361   : > { %v3763_v24 = vpack.c.bf16 %v3555_v41, %v3547_v53  ;;  %v3770_v34 = vpack.c.bf16 %v3570_v61, %v3562_v26  ;;  %v3179_v32 = vpop.f32.mrb[92].mxu0  ;;  %v5908_v26 = vld [vmem:[%s9095_s6 + $0x4] ss:$8 sps:$4 sm:$0xff]  }
 0x362   : > { %v3764_v6 = vpack.c.bf16 %v3556_v38, %v3548_v1  ;;  %v3362_v2 = vpop.f32.mrb[88].mxu1  ;;  %v3180_v21 = vadd.f32 %v3179_v32, %v8362_v51  ;;  %v3181_v7 = vpop.f32.mrb[93].mxu0 }
 0x363   : > { %v3363_v23 = vadd.f32 %v3362_v2, %v8350_v31  ;;  %v3364_v45 = vpop.f32.mrb[89].mxu1  ;;  %v3182_v40 = vadd.f32 %v3181_v7, %v8362_v51  ;;  %v3183_v15 = vpop.f32.mrb[94].mxu0  ;;  %4275 = vmatprep.subr.bf16.mxu0 %v3770_v34 }
 0x364   : > { %v3365_v3 = vadd.f32 %v3364_v45, %v8350_v31  ;;  %v3366_v55 = vpop.f32.mrb[90].mxu1  ;;  %4386 = vmatprep.subr.bf16.mxu1 %v3764_v6  ;;  %v3184_v35 = vadd.f32 %v3183_v15, %v8360_v12  ;;  %v3185_v28 = vpop.f32.mrb[95].mxu0  ;;  %4276 = vmatpush1.bf16.msra.mxu0 %v3769_v13  ;;  %v3577_v36 = vmax.f32 %v3180_v21, 0.0 }
 0x365   : > { %v3367_v42 = vadd.f32 %v3366_v55, %v8348_v17  ;;  %v3368_v48 = vpop.f32.mrb[91].mxu1  ;;  %4387 = vmatpush1.bf16.msra.mxu1 %v3763_v24  ;;  %v3186_v52 = vadd.f32 %v3185_v28, %v8360_v12  ;;  %v3563_v4 = vmax.f32 %v3363_v23, 0.0  ;;  %v3578_v33 = vmax.f32 %v3182_v40, 0.0 }
 0x366   : > { %v3369_v57 = vadd.f32 %v3368_v48, %v8348_v17  ;;  %v3585_v56 = vmax.f32 %v3184_v35, 0.0  ;;  %v3564_v46 = vmax.f32 %v3365_v3, 0.0 }
 0x367   : > { %v3571_v62 = vmax.f32 %v3367_v42, 0.0  ;;  %v3586_v31 = vmax.f32 %v3186_v52, 0.0  ;;  %4140 = vmatmul.mubr.bf16.gmra.mrb[156].mxu0 %v8608_v59  ;;  %4253 = vmatmul.mubr.bf16.gmra.mrb[156].mxu1 %v8608_v59 }
 0x368   : > { %v3572_v53 = vmax.f32 %v3369_v57, 0.0  ;;  %v3777_v41 = vpack.c.bf16 %v3585_v56, %v3577_v36  ;;  %4295 = vmatprep.mubr.bf16.mxu0 %v5908_v26  ;;  %4408 = vmatprep.mubr.bf16.mxu1 %v5908_v26 }
 0x369   : > { %v3771_v17 = vpack.c.bf16 %v3571_v62, %v3563_v4  ;;  %v3778_v61 = vpack.c.bf16 %v3586_v31, %v3578_v33  ;;  %v3189_v1 = vpop.f32.mrb[96].mxu0 }
 0x36a   : > { %v3772_v38 = vpack.c.bf16 %v3572_v53, %v3564_v46  ;;  %v3372_v13 = vpop.f32.mrb[92].mxu1  ;;  %v3190_v24 = vadd.f32 %v3189_v1, %v8374_v27  ;;  %v3191_v34 = vpop.f32.mrb[97].mxu0 }
 0x36b   : > { %v3373_v32 = vadd.f32 %v3372_v13, %v8362_v51  ;;  %v3374_v6 = vpop.f32.mrb[93].mxu1  ;;  %v3192_v2 = vadd.f32 %v3191_v34, %v8374_v27  ;;  %v3193_v21 = vpop.f32.mrb[98].mxu0  ;;  %4277 = vmatprep.subr.bf16.mxu0 %v3778_v61 }
 0x36c   : > { %v3375_v7 = vadd.f32 %v3374_v6, %v8362_v51  ;;  %v3376_v23 = vpop.f32.mrb[94].mxu1  ;;  %4388 = vmatprep.subr.bf16.mxu1 %v3772_v38  ;;  %v3194_v45 = vadd.f32 %v3193_v21, %v8372_v8  ;;  %v3195_v40 = vpop.f32.mrb[99].mxu0  ;;  %4278 = vmatpush1.bf16.msra.mxu0 %v3777_v41  ;;  %v3593_v28 = vmax.f32 %v3190_v24, 0.0 }
 0x36d   : > { %v3377_v15 = vadd.f32 %v3376_v23, %v8360_v12  ;;  %v3378_v3 = vpop.f32.mrb[95].mxu1  ;;  %4389 = vmatpush1.bf16.msra.mxu1 %v3771_v17  ;;  %v3196_v55 = vadd.f32 %v3195_v40, %v8372_v8  ;;  %v3579_v48 = vmax.f32 %v3373_v32, 0.0  ;;  %v3594_v57 = vmax.f32 %v3192_v2, 0.0 }
 0x36e   : > { %v3379_v35 = vadd.f32 %v3378_v3, %v8360_v12  ;;  %v3601_v42 = vmax.f32 %v3194_v45, 0.0  ;;  %v3580_v36 = vmax.f32 %v3375_v7, 0.0 }
 0x36f   : > { %v3587_v52 = vmax.f32 %v3377_v15, 0.0  ;;  %v3602_v51 = vmax.f32 %v3196_v55, 0.0 }
 0x370   : > { %v3588_v56 = vmax.f32 %v3379_v35, 0.0  ;;  %v3785_v4 = vpack.c.bf16 %v3601_v42, %v3593_v28 }
 0x371   : > { %v3779_v62 = vpack.c.bf16 %v3587_v52, %v3579_v48  ;;  %v3786_v33 = vpack.c.bf16 %v3602_v51, %v3594_v57  ;;  %v3199_v31 = vpop.f32.mrb[100].mxu0 }
 0x372   : > { %v3780_v46 = vpack.c.bf16 %v3588_v56, %v3580_v36  ;;  %v3382_v53 = vpop.f32.mrb[96].mxu1  ;;  %v3200_v41 = vadd.f32 %v3199_v31, %v8386_v58  ;;  %v3201_v26 = vpop.f32.mrb[101].mxu0 }
 0x373   : > { %v3383_v17 = vadd.f32 %v3382_v53, %v8374_v27  ;;  %v3384_v12 = vpop.f32.mrb[97].mxu1  ;;  %v3202_v61 = vadd.f32 %v3201_v26, %v8386_v58  ;;  %v3203_v1 = vpop.f32.mrb[102].mxu0  ;;  %4279 = vmatprep.subr.bf16.mxu0 %v3786_v33 }
 0x374   : > { %v3385_v38 = vadd.f32 %v3384_v12, %v8374_v27  ;;  %v3386_v13 = vpop.f32.mrb[98].mxu1  ;;  %4390 = vmatprep.subr.bf16.mxu1 %v3780_v46  ;;  %v3204_v24 = vadd.f32 %v3203_v1, %v8384_v29  ;;  %v3205_v34 = vpop.f32.mrb[103].mxu0  ;;  %4280 = vmatpush1.bf16.msra.mxu0 %v3785_v4  ;;  %v3609_v7 = vmax.f32 %v3200_v41, 0.0 }
 0x375   : > { %v3387_v32 = vadd.f32 %v3386_v13, %v8372_v8  ;;  %v3388_v6 = vpop.f32.mrb[99].mxu1  ;;  %4391 = vmatpush1.bf16.msra.mxu1 %v3779_v62  ;;  %v3206_v2 = vadd.f32 %v3205_v34, %v8384_v29  ;;  %v3595_v45 = vmax.f32 %v3383_v17, 0.0  ;;  %v3610_v15 = vmax.f32 %v3202_v61, 0.0 }
 0x376   : > { %v3389_v21 = vadd.f32 %v3388_v6, %v8372_v8  ;;  %v3617_v23 = vmax.f32 %v3204_v24, 0.0  ;;  %v3596_v3 = vmax.f32 %v3385_v38, 0.0 }
 0x377   : > { %v3603_v40 = vmax.f32 %v3387_v32, 0.0  ;;  %v3618_v27 = vmax.f32 %v3206_v2, 0.0 }
 0x378   : > { %v3604_v55 = vmax.f32 %v3389_v21, 0.0  ;;  %v3793_v35 = vpack.c.bf16 %v3617_v23, %v3609_v7 }
 0x379   : > { %v3787_v28 = vpack.c.bf16 %v3603_v40, %v3595_v45  ;;  %v3794_v42 = vpack.c.bf16 %v3618_v27, %v3610_v15  ;;  %v3209_v48 = vpop.f32.mrb[104].mxu0 }
 0x37a   : > { %v3788_v52 = vpack.c.bf16 %v3604_v55, %v3596_v3  ;;  %v3392_v57 = vpop.f32.mrb[100].mxu1  ;;  %v3210_v51 = vadd.f32 %v3209_v48, %v8398_v10  ;;  %v3211_v36 = vpop.f32.mrb[105].mxu0 }
 0x37b   : > { %v3393_v56 = vadd.f32 %v3392_v57, %v8386_v58  ;;  %v3394_v8 = vpop.f32.mrb[101].mxu1  ;;  %v3212_v4 = vadd.f32 %v3211_v36, %v8398_v10  ;;  %v3213_v62 = vpop.f32.mrb[106].mxu0  ;;  %4281 = vmatprep.subr.bf16.mxu0 %v3794_v42 }
 0x37c   : > { %v3395_v33 = vadd.f32 %v3394_v8, %v8386_v58  ;;  %v3396_v31 = vpop.f32.mrb[102].mxu1  ;;  %4392 = vmatprep.subr.bf16.mxu1 %v3788_v52  ;;  %v3214_v46 = vadd.f32 %v3213_v62, %v8396_v44  ;;  %v3215_v53 = vpop.f32.mrb[107].mxu0  ;;  %4282 = vmatpush1.bf16.msra.mxu0 %v3793_v35  ;;  %v3625_v61 = vmax.f32 %v3210_v51, 0.0 }
 0x37d   : > { %v3397_v41 = vadd.f32 %v3396_v31, %v8384_v29  ;;  %v3398_v26 = vpop.f32.mrb[103].mxu1  ;;  %4393 = vmatpush1.bf16.msra.mxu1 %v3787_v28  ;;  %v3216_v17 = vadd.f32 %v3215_v53, %v8396_v44  ;;  %v3611_v38 = vmax.f32 %v3393_v56, 0.0  ;;  %v3626_v24 = vmax.f32 %v3212_v4, 0.0 }
 0x37e   : > { %v3399_v12 = vadd.f32 %v3398_v26, %v8384_v29  ;;  %v3633_v1 = vmax.f32 %v3214_v46, 0.0  ;;  %v3612_v34 = vmax.f32 %v3395_v33, 0.0 }
 0x37f   : > { %v3619_v13 = vmax.f32 %v3397_v41, 0.0  ;;  %v3634_v58 = vmax.f32 %v3216_v17, 0.0 }
 0x380   : > { %v3620_v32 = vmax.f32 %v3399_v12, 0.0  ;;  %v3801_v6 = vpack.c.bf16 %v3633_v1, %v3625_v61 }
 0x381   : > { %v3795_v2 = vpack.c.bf16 %v3619_v13, %v3611_v38  ;;  %v3802_v21 = vpack.c.bf16 %v3634_v58, %v3626_v24  ;;  %v3219_v7 = vpop.f32.mrb[108].mxu0 }
 0x382   : > { %v3796_v23 = vpack.c.bf16 %v3620_v32, %v3612_v34  ;;  %v3402_v45 = vpop.f32.mrb[104].mxu1  ;;  %v3220_v40 = vadd.f32 %v3219_v7, %v8410_v60  ;;  %v3221_v15 = vpop.f32.mrb[109].mxu0 }
 0x383   : > { %v3403_v27 = vadd.f32 %v3402_v45, %v8398_v10  ;;  %v3404_v29 = vpop.f32.mrb[105].mxu1  ;;  %v3222_v3 = vadd.f32 %v3221_v15, %v8410_v60  ;;  %v3223_v55 = vpop.f32.mrb[110].mxu0  ;;  %4283 = vmatprep.subr.bf16.mxu0 %v3802_v21 }
 0x384   : > { %v3405_v35 = vadd.f32 %v3404_v29, %v8398_v10  ;;  %v3406_v28 = vpop.f32.mrb[106].mxu1  ;;  %4394 = vmatprep.subr.bf16.mxu1 %v3796_v23  ;;  %v3224_v42 = vadd.f32 %v3223_v55, %v8408_v49  ;;  %v3225_v48 = vpop.f32.mrb[111].mxu0  ;;  %4284 = vmatpush1.bf16.msra.mxu0 %v3801_v6  ;;  %v3641_v56 = vmax.f32 %v3220_v40, 0.0 }
 0x385   : > { %v3407_v52 = vadd.f32 %v3406_v28, %v8396_v44  ;;  %v3408_v57 = vpop.f32.mrb[107].mxu1  ;;  %4395 = vmatpush1.bf16.msra.mxu1 %v3795_v2  ;;  %v3226_v51 = vadd.f32 %v3225_v48, %v8408_v49  ;;  %v3627_v4 = vmax.f32 %v3403_v27, 0.0  ;;  %v3642_v33 = vmax.f32 %v3222_v3, 0.0 }
 0x386   : > { %v3409_v36 = vadd.f32 %v3408_v57, %v8396_v44  ;;  %v3649_v8 = vmax.f32 %v3224_v42, 0.0  ;;  %v3628_v31 = vmax.f32 %v3405_v35, 0.0 }
 0x387   : > { %v3635_v62 = vmax.f32 %v3407_v52, 0.0  ;;  %v3650_v10 = vmax.f32 %v3226_v51, 0.0 }
 0x388   : > { %v3636_v46 = vmax.f32 %v3409_v36, 0.0  ;;  %v3809_v53 = vpack.c.bf16 %v3649_v8, %v3641_v56 }
 0x389   : > { %v3803_v41 = vpack.c.bf16 %v3635_v62, %v3627_v4  ;;  %v3810_v26 = vpack.c.bf16 %v3650_v10, %v3642_v33  ;;  %v3229_v17 = vpop.f32.mrb[112].mxu0 }
 0x38a   : > { %v3804_v12 = vpack.c.bf16 %v3636_v46, %v3628_v31  ;;  %v3412_v61 = vpop.f32.mrb[108].mxu1  ;;  %v3230_v1 = vadd.f32 %v3229_v17, %v8422_v14  ;;  %v3231_v38 = vpop.f32.mrb[113].mxu0 }
 0x38b   : > { %v3413_v13 = vadd.f32 %v3412_v61, %v8410_v60  ;;  %v3414_v44 = vpop.f32.mrb[109].mxu1  ;;  %v3232_v24 = vadd.f32 %v3231_v38, %v8422_v14  ;;  %v3233_v58 = vpop.f32.mrb[114].mxu0  ;;  %4285 = vmatprep.subr.bf16.mxu0 %v3810_v26 }
 0x38c   : > { %v3415_v34 = vadd.f32 %v3414_v44, %v8410_v60  ;;  %v3416_v32 = vpop.f32.mrb[110].mxu1  ;;  %4396 = vmatprep.subr.bf16.mxu1 %v3804_v12  ;;  %v3234_v6 = vadd.f32 %v3233_v58, %v8420_v16  ;;  %v3235_v2 = vpop.f32.mrb[115].mxu0  ;;  %4286 = vmatpush1.bf16.msra.mxu0 %v3809_v53  ;;  %v3657_v40 = vmax.f32 %v3230_v1, 0.0 }
 0x38d   : > { %v3417_v21 = vadd.f32 %v3416_v32, %v8408_v49  ;;  %v3418_v7 = vpop.f32.mrb[111].mxu1  ;;  %4397 = vmatpush1.bf16.msra.mxu1 %v3803_v41  ;;  %v3236_v23 = vadd.f32 %v3235_v2, %v8420_v16  ;;  %v3643_v27 = vmax.f32 %v3413_v13, 0.0  ;;  %v3658_v3 = vmax.f32 %v3232_v24, 0.0 }
 0x38e   : > { %v3419_v45 = vadd.f32 %v3418_v7, %v8408_v49  ;;  %v3665_v15 = vmax.f32 %v3234_v6, 0.0  ;;  %v3644_v55 = vmax.f32 %v3415_v34, 0.0 }
 0x38f   : > { %v3651_v29 = vmax.f32 %v3417_v21, 0.0  ;;  %v3666_v60 = vmax.f32 %v3236_v23, 0.0 }
 0x390   : > { %v3652_v35 = vmax.f32 %v3419_v45, 0.0  ;;  %v3817_v28 = vpack.c.bf16 %v3665_v15, %v3657_v40 }
 0x391   : > { %v3811_v42 = vpack.c.bf16 %v3651_v29, %v3643_v27  ;;  %v3818_v48 = vpack.c.bf16 %v3666_v60, %v3658_v3  ;;  %v3239_v52 = vpop.f32.mrb[116].mxu0 }
 0x392   : > { %v3812_v57 = vpack.c.bf16 %v3652_v35, %v3644_v55  ;;  %v3422_v51 = vpop.f32.mrb[112].mxu1  ;;  %v3240_v36 = vadd.f32 %v3239_v52, %v8434_v0  ;;  %v3241_v56 = vpop.f32.mrb[117].mxu0 }
 0x393   : > { %v3423_v8 = vadd.f32 %v3422_v51, %v8422_v14  ;;  %v3424_v49 = vpop.f32.mrb[113].mxu1  ;;  %v3242_v4 = vadd.f32 %v3241_v56, %v8434_v0  ;;  %v3243_v62 = vpop.f32.mrb[118].mxu0  ;;  %4287 = vmatprep.subr.bf16.mxu0 %v3818_v48 }
 0x394   : > { %v3425_v33 = vadd.f32 %v3424_v49, %v8422_v14  ;;  %v3426_v10 = vpop.f32.mrb[114].mxu1  ;;  %4398 = vmatprep.subr.bf16.mxu1 %v3812_v57  ;;  %v3244_v31 = vadd.f32 %v3243_v62, %v8432_v39  ;;  %v3245_v46 = vpop.f32.mrb[119].mxu0  ;;  %4288 = vmatpush1.bf16.msra.mxu0 %v3817_v28  ;;  %v3673_v12 = vmax.f32 %v3240_v36, 0.0 }
 0x395   : > { %v3427_v53 = vadd.f32 %v3426_v10, %v8420_v16  ;;  %v3428_v41 = vpop.f32.mrb[115].mxu1  ;;  %4399 = vmatpush1.bf16.msra.mxu1 %v3811_v42  ;;  %v3246_v26 = vadd.f32 %v3245_v46, %v8432_v39  ;;  %v3659_v1 = vmax.f32 %v3423_v8, 0.0  ;;  %v3674_v13 = vmax.f32 %v3242_v4, 0.0 }
 0x396   : > { %v3429_v17 = vadd.f32 %v3428_v41, %v8420_v16  ;;  %v3681_v61 = vmax.f32 %v3244_v31, 0.0  ;;  %v3660_v44 = vmax.f32 %v3425_v33, 0.0 }
 0x397   : > { %v3667_v38 = vmax.f32 %v3427_v53, 0.0  ;;  %v3682_v14 = vmax.f32 %v3246_v26, 0.0 }
 0x398   : > { %v3668_v24 = vmax.f32 %v3429_v17, 0.0  ;;  %v3825_v58 = vpack.c.bf16 %v3681_v61, %v3673_v12 }
 0x399   : > { %v3819_v34 = vpack.c.bf16 %v3667_v38, %v3659_v1  ;;  %v3826_v32 = vpack.c.bf16 %v3682_v14, %v3674_v13  ;;  %v3249_v6 = vpop.f32.mrb[120].mxu0 }
 0x39a   : > { %v3820_v2 = vpack.c.bf16 %v3668_v24, %v3660_v44  ;;  %v3432_v21 = vpop.f32.mrb[116].mxu1  ;;  %v3250_v7 = vadd.f32 %v3249_v6, %v8446_v30  ;;  %v3251_v23 = vpop.f32.mrb[121].mxu0 }
 0x39b   : > { %v3433_v45 = vadd.f32 %v3432_v21, %v8434_v0  ;;  %v3434_v16 = vpop.f32.mrb[117].mxu1  ;;  %v3252_v40 = vadd.f32 %v3251_v23, %v8446_v30  ;;  %v3253_v15 = vpop.f32.mrb[122].mxu0  ;;  %4289 = vmatprep.subr.bf16.mxu0 %v3826_v32 }
 0x39c   : > { %v3435_v27 = vadd.f32 %v3434_v16, %v8434_v0  ;;  %v3436_v29 = vpop.f32.mrb[118].mxu1  ;;  %4400 = vmatprep.subr.bf16.mxu1 %v3820_v2  ;;  %v3254_v3 = vadd.f32 %v3253_v15, %v8444_v25  ;;  %v3255_v60 = vpop.f32.mrb[123].mxu0  ;;  %4290 = vmatpush1.bf16.msra.mxu0 %v3825_v58  ;;  %v3689_v48 = vmax.f32 %v3250_v7, 0.0 }
 0x39d   : > { %v3437_v55 = vadd.f32 %v3436_v29, %v8432_v39  ;;  %v3438_v35 = vpop.f32.mrb[119].mxu1  ;;  %4401 = vmatpush1.bf16.msra.mxu1 %v3819_v34  ;;  %v3256_v28 = vadd.f32 %v3255_v60, %v8444_v25  ;;  %v3675_v57 = vmax.f32 %v3433_v45, 0.0  ;;  %v3690_v36 = vmax.f32 %v3252_v40, 0.0 }
 0x39e   : > { %v3439_v42 = vadd.f32 %v3438_v35, %v8432_v39  ;;  %v3697_v52 = vmax.f32 %v3254_v3, 0.0  ;;  %v3676_v56 = vmax.f32 %v3435_v27, 0.0 }
 0x39f   : > { %v3683_v51 = vmax.f32 %v3437_v55, 0.0  ;;  %v3698_v0 = vmax.f32 %v3256_v28, 0.0 }
 0x3a0   : > { %v3684_v8 = vmax.f32 %v3439_v42, 0.0  ;;  %v3833_v49 = vpack.c.bf16 %v3697_v52, %v3689_v48  ;;  %v5909_v48 = vld [vmem:[%s9095_s6] ss:$8 sps:$4 sm:$0xff]  }
 0x3a1   : > { %v3827_v4 = vpack.c.bf16 %v3683_v51, %v3675_v57  ;;  %v3834_v62 = vpack.c.bf16 %v3698_v0, %v3690_v36  ;;  %v3259_v33 = vpop.f32.mrb[124].mxu0  ;;  %v5912_v0 = vld [vmem:[%s9095_s6 + $0x24] ss:$8 sps:$4 sm:$0xff]  }
 0x3a2   : > { %v3828_v10 = vpack.c.bf16 %v3684_v8, %v3676_v56  ;;  %v3442_v31 = vpop.f32.mrb[120].mxu1  ;;  %v3260_v46 = vadd.f32 %v3259_v33, %v8458_v54  ;;  %v3261_v53 = vpop.f32.mrb[125].mxu0 }
 0x3a3   : > { %v3443_v41 = vadd.f32 %v3442_v31, %v8446_v30  ;;  %v3444_v39 = vpop.f32.mrb[121].mxu1  ;;  %v3262_v26 = vadd.f32 %v3261_v53, %v8458_v54  ;;  %v3263_v17 = vpop.f32.mrb[126].mxu0  ;;  %4291 = vmatprep.subr.bf16.mxu0 %v3834_v62 }
 0x3a4   : > { %v3445_v12 = vadd.f32 %v3444_v39, %v8446_v30  ;;  %v3446_v61 = vpop.f32.mrb[122].mxu1  ;;  %4402 = vmatprep.subr.bf16.mxu1 %v3828_v10  ;;  %v3264_v1 = vadd.f32 %v3263_v17, %v8456_v43  ;;  %v3265_v38 = vpop.f32.mrb[127].mxu0  ;;  %4292 = vmatpush1.bf16.msra.mxu0 %v3833_v49  ;;  %v3705_v58 = vmax.f32 %v3260_v46, 0.0 }
 0x3a5   : > { %v3447_v13 = vadd.f32 %v3446_v61, %v8444_v25  ;;  %v3448_v14 = vpop.f32.mrb[123].mxu1  ;;  %4403 = vmatpush1.bf16.msra.mxu1 %v3827_v4  ;;  %v3266_v44 = vadd.f32 %v3265_v38, %v8456_v43  ;;  %v3691_v32 = vmax.f32 %v3443_v41, 0.0  ;;  %v3706_v2 = vmax.f32 %v3262_v26, 0.0 }
 0x3a6   : > { %v3449_v24 = vadd.f32 %v3448_v14, %v8444_v25  ;;  %v3713_v34 = vmax.f32 %v3264_v1, 0.0  ;;  %v3692_v21 = vmax.f32 %v3445_v12, 0.0 }
 0x3a7   : > { %v3699_v6 = vmax.f32 %v3447_v13, 0.0  ;;  %v3714_v30 = vmax.f32 %v3266_v44, 0.0 }
 0x3a8   : > { %v3700_v7 = vmax.f32 %v3449_v24, 0.0  ;;  %v3841_v23 = vpack.c.bf16 %v3713_v34, %v3705_v58 }
 0x3a9   : > { %v3835_v45 = vpack.c.bf16 %v3699_v6, %v3691_v32  ;;  %v3842_v16 = vpack.c.bf16 %v3714_v30, %v3706_v2 }
 0x3aa   : > { %v3836_v40 = vpack.c.bf16 %v3700_v7, %v3692_v21  ;;  %v3452_v15 = vpop.f32.mrb[124].mxu1 }
 0x3ab   : > { %v3453_v27 = vadd.f32 %v3452_v15, %v8458_v54  ;;  %v3454_v29 = vpop.f32.mrb[125].mxu1  ;;  %4293 = vmatprep.subr.bf16.mxu0 %v3842_v16 }
 0x3ac   : > { %v3455_v3 = vadd.f32 %v3454_v29, %v8458_v54  ;;  %v3456_v25 = vpop.f32.mrb[126].mxu1  ;;  %4404 = vmatprep.subr.bf16.mxu1 %v3836_v40  ;;  %4294 = vmatpush1.bf16.msra.mxu0 %v3841_v23  ;;  %v5910_v54 = vld [vmem:[%s9095_s6 + $0x14] ss:$8 sps:$4 sm:$0xff]  }
 0x3ad   : > { %v3457_v60 = vadd.f32 %v3456_v25, %v8456_v43  ;;  %v3458_v55 = vpop.f32.mrb[127].mxu1  ;;  %4405 = vmatpush1.bf16.msra.mxu1 %v3835_v45  ;;  %v3707_v28 = vmax.f32 %v3453_v27, 0.0 }
 0x3ae   : > { %v3459_v35 = vadd.f32 %v3458_v55, %v8456_v43  ;;  %v3708_v52 = vmax.f32 %v3455_v3, 0.0  ;;  %v5911_v43 = vld [vmem:[%s9095_s6 + $0x10] ss:$8 sps:$4 sm:$0xff]  }
 0x3af   : > { %v3715_v42 = vmax.f32 %v3457_v60, 0.0  ;;  %4296 = vmatmul.mubr.bf16.vlgmr.msra.gmra.mrb[160].mxu0 %v5909_v48 }
 0x3b0   : > { %v3716_v57 = vmax.f32 %v3459_v35, 0.0  ;;  %4305 = vmatprep.mubr.bf16.mxu0 %v5910_v54 }
 0x3b1   : > { %v3843_v51 = vpack.c.bf16 %v3715_v42, %v3707_v28 }
 0x3b2   : > { %v3844_v36 = vpack.c.bf16 %v3716_v57, %v3708_v52 }
 0x3b4   : > { %4406 = vmatprep.subr.bf16.mxu1 %v3844_v36 }
 0x3b5   : > { %4407 = vmatpush1.bf16.msra.mxu1 %v3843_v51 }
 0x3b7   : > { %4306 = vmatmul.mubr.bf16.gmra.mrb[164].mxu0 %v5911_v43 }
 0x3b8   : > { %4409 = vmatmul.mubr.bf16.vlgmr.msra.gmra.mrb[160].mxu1 %v5909_v48  ;;  %4315 = vmatprep.mubr.bf16.mxu0 %v5912_v0 }
 0x3b9   : > { %4418 = vmatprep.mubr.bf16.mxu1 %v5910_v54 }
 0x3bf   : > { %4316 = vmatmul.mubr.bf16.gmra.mrb[168].mxu0 %v8498_v47 }
 0x3c0   : > { %4419 = vmatmul.mubr.bf16.gmra.mrb[164].mxu1 %v5911_v43  ;;  %4325 = vmatprep.mubr.bf16.mxu0 %v8505_v20 }
 0x3c1   : > { %4428 = vmatprep.mubr.bf16.mxu1 %v5912_v0 }
 0x3c7   : > { %4326 = vmatmul.mubr.bf16.gmra.mrb[172].mxu0 %v8520_v5 }
 0x3c8   : > { %4429 = vmatmul.mubr.bf16.gmra.mrb[168].mxu1 %v8498_v47  ;;  %4335 = vmatprep.mubr.bf16.mxu0 %v8527_v22  ;;  %v8724_v47 = vpop.permute.xlu1 %3884 }
 0x3c9   : > { %4438 = vmatprep.mubr.bf16.mxu1 %v8505_v20  ;;  %v8726_v20 = vpop.permute.xlu0 %3879 }
 0x3cc   : > { %v8736_v61 = vpop.permute.xlu1 %3894 }
 0x3cd   : > { %v8738_v1 = vpop.permute.xlu0 %3889 }
 0x3cf   : > { %4336 = vmatmul.mubr.bf16.gmra.mrb[176].mxu0 %v8542_v37 }
 0x3d0   : > { %4439 = vmatmul.mubr.bf16.gmra.mrb[172].mxu1 %v8520_v5  ;;  %4345 = vmatprep.mubr.bf16.mxu0 %v8549_v19  ;;  %v8748_v52 = vpop.permute.xlu1 %3904 }
 0x3d1   : > { %4448 = vmatprep.mubr.bf16.mxu1 %v8527_v22  ;;  %v8750_v57 = vpop.permute.xlu0 %3899 }
 0x3d7   : > { %4346 = vmatmul.mubr.bf16.gmra.mrb[180].mxu0 %v8564_v63 }
 0x3d8   : > { %4449 = vmatmul.mubr.bf16.gmra.mrb[176].mxu1 %v8542_v37  ;;  %4355 = vmatprep.mubr.bf16.mxu0 %v8571_v18 }
 0x3d9   : > { %4458 = vmatprep.mubr.bf16.mxu1 %v8549_v19 }
 0x3df   : > { %4356 = vmatmul.mubr.bf16.gmra.mrb[184].mxu0 %v8586_v9 }
 0x3e0   : > { %4459 = vmatmul.mubr.bf16.gmra.mrb[180].mxu1 %v8564_v63  ;;  %4365 = vmatprep.mubr.bf16.mxu0 %v8593_v11 }
 0x3e1   : > { %4468 = vmatprep.mubr.bf16.mxu1 %v8571_v18 }
 0x3e7   : > { %4366 = vmatmul.mubr.bf16.gmra.mrb[188].mxu0 %v8608_v59 }
 0x3e8   : > { %4469 = vmatmul.mubr.bf16.gmra.mrb[184].mxu1 %v8586_v9  ;;  %4793 = vmatprep.mubr.bf16.mxu0 %v9155_v50 }
 0x3e9   : > { %4478 = vmatprep.mubr.bf16.mxu1 %v8593_v11 }
 0x3f0   : > { %4479 = vmatmul.mubr.bf16.gmra.mrb[188].mxu1 %v8608_v59 }
 0x3f1   : > { %4866 = vmatprep.mubr.bf16.mxu1 %v9155_v50 }
 0x402   : > { %v4071_v5 = vpop.f32.mrb[128].mxu0  ;;  %v4184_v22 = vpop.f32.mrb[128].mxu1 }
 0x403   : > { %v4072_v37 = vadd.f32 %v4071_v5, %v8726_v20  ;;  %v4185_v19 = vadd.f32 %v4184_v22, %v8726_v20  ;;  %v4073_v63 = vpop.f32.mrb[129].mxu0  ;;  %v4186_v18 = vpop.f32.mrb[129].mxu1 }
 0x404   : > { %v4074_v9 = vadd.f32 %v4073_v63, %v8726_v20  ;;  %v4187_v11 = vadd.f32 %v4186_v18, %v8726_v20  ;;  %v4075_v56 = vpop.f32.mrb[130].mxu0  ;;  %v4188_v59 = vpop.f32.mrb[130].mxu1 }
 0x405   : > { %v4076_v8 = vadd.f32 %v4075_v56, %v8724_v47  ;;  %v4189_v49 = vadd.f32 %v4188_v59, %v8724_v47  ;;  %v4077_v4 = vpop.f32.mrb[131].mxu0  ;;  %v4190_v62 = vpop.f32.mrb[131].mxu1  ;;  %v4489_v31 = vmax.f32 %v4072_v37, 0.0  ;;  %v4491_v46 = vmax.f32 %v4185_v19, 0.0 }
 0x406   : > { %v4078_v33 = vadd.f32 %v4077_v4, %v8724_v47  ;;  %v4191_v10 = vadd.f32 %v4190_v62, %v8724_v47  ;;  %v4490_v39 = vmax.f32 %v4074_v9, 0.0  ;;  %v4492_v26 = vmax.f32 %v4187_v11, 0.0 }
 0x407   : > { %v4497_v53 = vmax.f32 %v4076_v8, 0.0  ;;  %v4499_v41 = vmax.f32 %v4189_v49, 0.0 }
 0x408   : > { %v4498_v17 = vmax.f32 %v4078_v33, 0.0  ;;  %v4500_v12 = vmax.f32 %v4191_v10, 0.0 }
 0x409   : > { %v4617_v38 = vpack.c.bf16 %v4497_v53, %v4489_v31  ;;  %v4619_v13 = vpack.c.bf16 %v4499_v41, %v4491_v46 }
 0x40a   : > { %v4618_v14 = vpack.c.bf16 %v4498_v17, %v4490_v39  ;;  %v4620_v44 = vpack.c.bf16 %v4500_v12, %v4492_v26  ;;  %v4081_v24 = vpop.f32.mrb[132].mxu0  ;;  %v4194_v58 = vpop.f32.mrb[132].mxu1 }
 0x40b   : > { %v4082_v34 = vadd.f32 %v4081_v24, %v8738_v1  ;;  %v4195_v32 = vadd.f32 %v4194_v58, %v8738_v1  ;;  %v4083_v6 = vpop.f32.mrb[133].mxu0  ;;  %v4196_v2 = vpop.f32.mrb[133].mxu1 }
 0x40c   : > { %v4084_v30 = vadd.f32 %v4083_v6, %v8738_v1  ;;  %v4197_v21 = vadd.f32 %v4196_v2, %v8738_v1  ;;  %v4085_v7 = vpop.f32.mrb[134].mxu0  ;;  %v4198_v23 = vpop.f32.mrb[134].mxu1  ;;  %4761 = vmatprep.subr.bf16.mxu0 %v4618_v14  ;;  %4834 = vmatprep.subr.bf16.mxu1 %v4620_v44 }
 0x40d   : > { %v4086_v45 = vadd.f32 %v4085_v7, %v8736_v61  ;;  %v4199_v16 = vadd.f32 %v4198_v23, %v8736_v61  ;;  %v4087_v40 = vpop.f32.mrb[135].mxu0  ;;  %v4200_v15 = vpop.f32.mrb[135].mxu1  ;;  %4762 = vmatpush1.bf16.msra.mxu0 %v4617_v38  ;;  %4835 = vmatpush1.bf16.msra.mxu1 %v4619_v13  ;;  %v4505_v3 = vmax.f32 %v4082_v34, 0.0  ;;  %v4507_v25 = vmax.f32 %v4195_v32, 0.0 }
 0x40e   : > { %v4088_v27 = vadd.f32 %v4087_v40, %v8736_v61  ;;  %v4201_v29 = vadd.f32 %v4200_v15, %v8736_v61  ;;  %v4506_v35 = vmax.f32 %v4084_v30, 0.0  ;;  %v4508_v28 = vmax.f32 %v4197_v21, 0.0  ;;  %v8760_v12 = vpop.permute.xlu1 %3914  ;;  %v8762_v38 = vpop.permute.xlu0 %3909 }
 0x40f   : > { %v4513_v60 = vmax.f32 %v4086_v45, 0.0  ;;  %v4515_v55 = vmax.f32 %v4199_v16, 0.0 }
 0x410   : > { %v4514_v42 = vmax.f32 %v4088_v27, 0.0  ;;  %v4516_v48 = vmax.f32 %v4201_v29, 0.0 }
 0x411   : > { %v4625_v54 = vpack.c.bf16 %v4513_v60, %v4505_v3  ;;  %v4627_v51 = vpack.c.bf16 %v4515_v55, %v4507_v25 }
 0x412   : > { %v4626_v36 = vpack.c.bf16 %v4514_v42, %v4506_v35  ;;  %v4628_v43 = vpack.c.bf16 %v4516_v48, %v4508_v28  ;;  %v4091_v0 = vpop.f32.mrb[136].mxu0  ;;  %v4204_v5 = vpop.f32.mrb[136].mxu1 }
 0x413   : > { %v4092_v22 = vadd.f32 %v4091_v0, %v8750_v57  ;;  %v4205_v37 = vadd.f32 %v4204_v5, %v8750_v57  ;;  %v4093_v19 = vpop.f32.mrb[137].mxu0  ;;  %v4206_v63 = vpop.f32.mrb[137].mxu1 }
 0x414   : > { %v4094_v18 = vadd.f32 %v4093_v19, %v8750_v57  ;;  %v4207_v9 = vadd.f32 %v4206_v63, %v8750_v57  ;;  %v4095_v11 = vpop.f32.mrb[138].mxu0  ;;  %v4208_v56 = vpop.f32.mrb[138].mxu1  ;;  %4763 = vmatprep.subr.bf16.mxu0 %v4626_v36  ;;  %4836 = vmatprep.subr.bf16.mxu1 %v4628_v43 }
 0x415   : > { %v4096_v59 = vadd.f32 %v4095_v11, %v8748_v52  ;;  %v4209_v8 = vadd.f32 %v4208_v56, %v8748_v52  ;;  %v4097_v49 = vpop.f32.mrb[139].mxu0  ;;  %v4210_v4 = vpop.f32.mrb[139].mxu1  ;;  %4764 = vmatpush1.bf16.msra.mxu0 %v4625_v54  ;;  %4837 = vmatpush1.bf16.msra.mxu1 %v4627_v51  ;;  %v4521_v10 = vmax.f32 %v4092_v22, 0.0  ;;  %v4523_v31 = vmax.f32 %v4205_v37, 0.0 }
 0x416   : > { %v4098_v62 = vadd.f32 %v4097_v49, %v8748_v52  ;;  %v4211_v33 = vadd.f32 %v4210_v4, %v8748_v52  ;;  %v4522_v41 = vmax.f32 %v4094_v18, 0.0  ;;  %v4524_v39 = vmax.f32 %v4207_v9, 0.0  ;;  %v8772_v51 = vpop.permute.xlu1 %3924  ;;  %v8774_v36 = vpop.permute.xlu0 %3919 }
 0x417   : > { %v4529_v46 = vmax.f32 %v4096_v59, 0.0  ;;  %v4531_v53 = vmax.f32 %v4209_v8, 0.0 }
 0x418   : > { %v4530_v26 = vmax.f32 %v4098_v62, 0.0  ;;  %v4532_v17 = vmax.f32 %v4211_v33, 0.0 }
 0x419   : > { %v4633_v13 = vpack.c.bf16 %v4529_v46, %v4521_v10  ;;  %v4635_v14 = vpack.c.bf16 %v4531_v53, %v4523_v31 }
 0x41a   : > { %v4634_v44 = vpack.c.bf16 %v4530_v26, %v4522_v41  ;;  %v4636_v24 = vpack.c.bf16 %v4532_v17, %v4524_v39  ;;  %v4101_v58 = vpop.f32.mrb[140].mxu0  ;;  %v4214_v34 = vpop.f32.mrb[140].mxu1 }
 0x41b   : > { %v4102_v32 = vadd.f32 %v4101_v58, %v8762_v38  ;;  %v4215_v6 = vadd.f32 %v4214_v34, %v8762_v38  ;;  %v4103_v2 = vpop.f32.mrb[141].mxu0  ;;  %v4216_v30 = vpop.f32.mrb[141].mxu1 }
 0x41c   : > { %v4104_v21 = vadd.f32 %v4103_v2, %v8762_v38  ;;  %v4217_v7 = vadd.f32 %v4216_v30, %v8762_v38  ;;  %v4105_v23 = vpop.f32.mrb[142].mxu0  ;;  %v4218_v45 = vpop.f32.mrb[142].mxu1  ;;  %4765 = vmatprep.subr.bf16.mxu0 %v4634_v44  ;;  %4838 = vmatprep.subr.bf16.mxu1 %v4636_v24 }
 0x41d   : > { %v4106_v16 = vadd.f32 %v4105_v23, %v8760_v12  ;;  %v4219_v40 = vadd.f32 %v4218_v45, %v8760_v12  ;;  %v4107_v15 = vpop.f32.mrb[143].mxu0  ;;  %v4220_v27 = vpop.f32.mrb[143].mxu1  ;;  %4766 = vmatpush1.bf16.msra.mxu0 %v4633_v13  ;;  %4839 = vmatpush1.bf16.msra.mxu1 %v4635_v14  ;;  %v4537_v25 = vmax.f32 %v4102_v32, 0.0  ;;  %v4539_v60 = vmax.f32 %v4215_v6, 0.0 }
 0x41e   : > { %v4108_v29 = vadd.f32 %v4107_v15, %v8760_v12  ;;  %v4221_v3 = vadd.f32 %v4220_v27, %v8760_v12  ;;  %v4538_v28 = vmax.f32 %v4104_v21, 0.0  ;;  %v4540_v42 = vmax.f32 %v4217_v7, 0.0  ;;  %v8784_v24 = vpop.permute.xlu1 %3934  ;;  %v8786_v58 = vpop.permute.xlu0 %3929 }
 0x41f   : > { %v4545_v55 = vmax.f32 %v4106_v16, 0.0  ;;  %v4547_v35 = vmax.f32 %v4219_v40, 0.0 }
 0x420   : > { %v4546_v48 = vmax.f32 %v4108_v29, 0.0  ;;  %v4548_v54 = vmax.f32 %v4221_v3, 0.0 }
 0x421   : > { %v4641_v43 = vpack.c.bf16 %v4545_v55, %v4537_v25  ;;  %v4643_v0 = vpack.c.bf16 %v4547_v35, %v4539_v60 }
 0x422   : > { %v4642_v5 = vpack.c.bf16 %v4546_v48, %v4538_v28  ;;  %v4644_v22 = vpack.c.bf16 %v4548_v54, %v4540_v42  ;;  %v4111_v37 = vpop.f32.mrb[144].mxu0  ;;  %v4224_v19 = vpop.f32.mrb[144].mxu1 }
 0x423   : > { %v4112_v63 = vadd.f32 %v4111_v37, %v8774_v36  ;;  %v4225_v18 = vadd.f32 %v4224_v19, %v8774_v36  ;;  %v4113_v9 = vpop.f32.mrb[145].mxu0  ;;  %v4226_v11 = vpop.f32.mrb[145].mxu1 }
 0x424   : > { %v4114_v56 = vadd.f32 %v4113_v9, %v8774_v36  ;;  %v4227_v59 = vadd.f32 %v4226_v11, %v8774_v36  ;;  %v4115_v8 = vpop.f32.mrb[146].mxu0  ;;  %v4228_v49 = vpop.f32.mrb[146].mxu1  ;;  %4767 = vmatprep.subr.bf16.mxu0 %v4642_v5  ;;  %4840 = vmatprep.subr.bf16.mxu1 %v4644_v22 }
 0x425   : > { %v4116_v4 = vadd.f32 %v4115_v8, %v8772_v51  ;;  %v4229_v62 = vadd.f32 %v4228_v49, %v8772_v51  ;;  %v4117_v33 = vpop.f32.mrb[147].mxu0  ;;  %v4230_v10 = vpop.f32.mrb[147].mxu1  ;;  %4768 = vmatpush1.bf16.msra.mxu0 %v4641_v43  ;;  %4841 = vmatpush1.bf16.msra.mxu1 %v4643_v0  ;;  %v4553_v53 = vmax.f32 %v4112_v63, 0.0  ;;  %v4555_v41 = vmax.f32 %v4225_v18, 0.0 }
 0x426   : > { %v4118_v31 = vadd.f32 %v4117_v33, %v8772_v51  ;;  %v4231_v46 = vadd.f32 %v4230_v10, %v8772_v51  ;;  %v4554_v17 = vmax.f32 %v4114_v56, 0.0  ;;  %v4556_v13 = vmax.f32 %v4227_v59, 0.0  ;;  %v8796_v19 = vpop.permute.xlu1 %3944  ;;  %v8798_v63 = vpop.permute.xlu0 %3939 }
 0x427   : > { %v4561_v39 = vmax.f32 %v4116_v4, 0.0  ;;  %v4563_v26 = vmax.f32 %v4229_v62, 0.0 }
 0x428   : > { %v4562_v14 = vmax.f32 %v4118_v31, 0.0  ;;  %v4564_v44 = vmax.f32 %v4231_v46, 0.0 }
 0x429   : > { %v4649_v34 = vpack.c.bf16 %v4561_v39, %v4553_v53  ;;  %v4651_v32 = vpack.c.bf16 %v4563_v26, %v4555_v41 }
 0x42a   : > { %v4650_v6 = vpack.c.bf16 %v4562_v14, %v4554_v17  ;;  %v4652_v2 = vpack.c.bf16 %v4564_v44, %v4556_v13  ;;  %v4121_v30 = vpop.f32.mrb[148].mxu0  ;;  %v4234_v21 = vpop.f32.mrb[148].mxu1 }
 0x42b   : > { %v4122_v7 = vadd.f32 %v4121_v30, %v8786_v58  ;;  %v4235_v23 = vadd.f32 %v4234_v21, %v8786_v58  ;;  %v4123_v45 = vpop.f32.mrb[149].mxu0  ;;  %v4236_v16 = vpop.f32.mrb[149].mxu1 }
 0x42c   : > { %v4124_v40 = vadd.f32 %v4123_v45, %v8786_v58  ;;  %v4237_v15 = vadd.f32 %v4236_v16, %v8786_v58  ;;  %v4125_v27 = vpop.f32.mrb[150].mxu0  ;;  %v4238_v29 = vpop.f32.mrb[150].mxu1  ;;  %4769 = vmatprep.subr.bf16.mxu0 %v4650_v6  ;;  %4842 = vmatprep.subr.bf16.mxu1 %v4652_v2 }
 0x42d   : > { %v4126_v3 = vadd.f32 %v4125_v27, %v8784_v24  ;;  %v4239_v25 = vadd.f32 %v4238_v29, %v8784_v24  ;;  %v4127_v60 = vpop.f32.mrb[151].mxu0  ;;  %v4240_v55 = vpop.f32.mrb[151].mxu1  ;;  %4770 = vmatpush1.bf16.msra.mxu0 %v4649_v34  ;;  %4843 = vmatpush1.bf16.msra.mxu1 %v4651_v32  ;;  %v4569_v42 = vmax.f32 %v4122_v7, 0.0  ;;  %v4571_v48 = vmax.f32 %v4235_v23, 0.0 }
 0x42e   : > { %v4128_v35 = vadd.f32 %v4127_v60, %v8784_v24  ;;  %v4241_v28 = vadd.f32 %v4240_v55, %v8784_v24  ;;  %v4570_v0 = vmax.f32 %v4124_v40, 0.0  ;;  %v4572_v5 = vmax.f32 %v4237_v15, 0.0  ;;  %v8808_v23 = vpop.permute.xlu1 %3954  ;;  %v8810_v45 = vpop.permute.xlu0 %3949 }
 0x42f   : > { %v4577_v54 = vmax.f32 %v4126_v3, 0.0  ;;  %v4579_v43 = vmax.f32 %v4239_v25, 0.0 }
 0x430   : > { %v4578_v22 = vmax.f32 %v4128_v35, 0.0  ;;  %v4580_v37 = vmax.f32 %v4241_v28, 0.0 }
 0x431   : > { %v4657_v18 = vpack.c.bf16 %v4577_v54, %v4569_v42  ;;  %v4659_v9 = vpack.c.bf16 %v4579_v43, %v4571_v48 }
 0x432   : > { %v4658_v11 = vpack.c.bf16 %v4578_v22, %v4570_v0  ;;  %v4660_v56 = vpack.c.bf16 %v4580_v37, %v4572_v5  ;;  %v4131_v59 = vpop.f32.mrb[152].mxu0  ;;  %v4244_v8 = vpop.f32.mrb[152].mxu1 }
 0x433   : > { %v4132_v49 = vadd.f32 %v4131_v59, %v8798_v63  ;;  %v4245_v4 = vadd.f32 %v4244_v8, %v8798_v63  ;;  %v4133_v62 = vpop.f32.mrb[153].mxu0  ;;  %v4246_v33 = vpop.f32.mrb[153].mxu1 }
 0x434   : > { %v4134_v10 = vadd.f32 %v4133_v62, %v8798_v63  ;;  %v4247_v31 = vadd.f32 %v4246_v33, %v8798_v63  ;;  %v4135_v46 = vpop.f32.mrb[154].mxu0  ;;  %v4248_v53 = vpop.f32.mrb[154].mxu1  ;;  %4771 = vmatprep.subr.bf16.mxu0 %v4658_v11  ;;  %4844 = vmatprep.subr.bf16.mxu1 %v4660_v56 }
 0x435   : > { %v4136_v41 = vadd.f32 %v4135_v46, %v8796_v19  ;;  %v4249_v39 = vadd.f32 %v4248_v53, %v8796_v19  ;;  %v4137_v26 = vpop.f32.mrb[155].mxu0  ;;  %v4250_v17 = vpop.f32.mrb[155].mxu1  ;;  %4772 = vmatpush1.bf16.msra.mxu0 %v4657_v18  ;;  %4845 = vmatpush1.bf16.msra.mxu1 %v4659_v9  ;;  %v4585_v44 = vmax.f32 %v4132_v49, 0.0  ;;  %v4587_v34 = vmax.f32 %v4245_v4, 0.0  ;;  %v8823_v53 = vld [vmem:[%s9097_s8] sm:$0xff]  }
 0x436   : > { %v4138_v13 = vadd.f32 %v4137_v26, %v8796_v19  ;;  %v4251_v14 = vadd.f32 %v4250_v17, %v8796_v19  ;;  %v4586_v2 = vmax.f32 %v4134_v10, 0.0  ;;  %v4588_v30 = vmax.f32 %v4247_v31, 0.0  ;;  %v8850_v26 = vld [vmem:[%s9097_s8 + $0x18] sm:$0xff]  }
 0x437   : > { %v4593_v32 = vmax.f32 %v4136_v41, 0.0  ;;  %v4595_v6 = vmax.f32 %v4249_v39, 0.0  ;;  %v8832_v41 = vld [vmem:[%s9097_s8 + $0x8] sm:$0xff]   ;;  %v8841_v39 = vld [vmem:[%s9097_s8 + $0x10] sm:$0xff]  }
 0x438   : > { %v4594_v21 = vmax.f32 %v4138_v13, 0.0  ;;  %v4596_v7 = vmax.f32 %v4251_v14, 0.0 }
 0x439   : > { %v4665_v16 = vpack.c.bf16 %v4593_v32, %v4585_v44  ;;  %v4667_v40 = vpack.c.bf16 %v4595_v6, %v4587_v34 }
 0x43a   : > { %v4666_v15 = vpack.c.bf16 %v4594_v21, %v4586_v2  ;;  %v4668_v27 = vpack.c.bf16 %v4596_v7, %v4588_v30  ;;  %v4141_v29 = vpop.f32.mrb[156].mxu0  ;;  %v4254_v3 = vpop.f32.mrb[156].mxu1 }
 0x43b   : > { %v4142_v25 = vadd.f32 %v4141_v29, %v8810_v45  ;;  %v4255_v60 = vadd.f32 %v4254_v3, %v8810_v45  ;;  %v4143_v55 = vpop.f32.mrb[157].mxu0  ;;  %v4256_v35 = vpop.f32.mrb[157].mxu1 }
 0x43c   : > { %v4144_v28 = vadd.f32 %v4143_v55, %v8810_v45  ;;  %v4257_v42 = vadd.f32 %v4256_v35, %v8810_v45  ;;  %v4145_v48 = vpop.f32.mrb[158].mxu0  ;;  %v4258_v54 = vpop.f32.mrb[158].mxu1  ;;  %4773 = vmatprep.subr.bf16.mxu0 %v4666_v15  ;;  %4846 = vmatprep.subr.bf16.mxu1 %v4668_v27 }
 0x43d   : > { %v4146_v43 = vadd.f32 %v4145_v48, %v8808_v23  ;;  %v4259_v0 = vadd.f32 %v4258_v54, %v8808_v23  ;;  %v4147_v5 = vpop.f32.mrb[159].mxu0  ;;  %v4260_v22 = vpop.f32.mrb[159].mxu1  ;;  %4774 = vmatpush1.bf16.msra.mxu0 %v4665_v16  ;;  %4847 = vmatpush1.bf16.msra.mxu1 %v4667_v40  ;;  %v4601_v9 = vmax.f32 %v4142_v25, 0.0  ;;  %v4603_v11 = vmax.f32 %v4255_v60, 0.0 }
 0x43e   : > { %v4148_v37 = vadd.f32 %v4147_v5, %v8808_v23  ;;  %v4261_v18 = vadd.f32 %v4260_v22, %v8808_v23  ;;  %v4602_v8 = vmax.f32 %v4144_v28, 0.0  ;;  %v4604_v49 = vmax.f32 %v4257_v42, 0.0 }
 0x43f   : > { %v4609_v56 = vmax.f32 %v4146_v43, 0.0  ;;  %v4611_v59 = vmax.f32 %v4259_v0, 0.0 }
 0x440   : > { %v4610_v4 = vmax.f32 %v4148_v37, 0.0  ;;  %v4612_v62 = vmax.f32 %v4261_v18, 0.0 }
 0x441   : > { %v4673_v33 = vpack.c.bf16 %v4609_v56, %v4601_v9  ;;  %v4675_v10 = vpack.c.bf16 %v4611_v59, %v4603_v11 }
 0x442   : > { %v4674_v31 = vpack.c.bf16 %v4610_v4, %v4602_v8  ;;  %v4676_v46 = vpack.c.bf16 %v4612_v62, %v4604_v49 }
 0x444   : > { %4775 = vmatprep.subr.bf16.mxu0 %v4674_v31  ;;  %4848 = vmatprep.subr.bf16.mxu1 %v4676_v46 }
 0x445   : > { %4776 = vmatpush1.bf16.msra.mxu0 %v4673_v33  ;;  %4849 = vmatpush1.bf16.msra.mxu1 %v4675_v10 }
 0x448   : > { %4794 = vmatmul.mubr.bf16.vlgmr.msra.gmra.mrb[192].mxu0 %v8823_v53  ;;  %4867 = vmatmul.mubr.bf16.vlgmr.msra.gmra.mrb[192].mxu1 %v8823_v53 }
 0x449   : > { %4803 = vmatprep.mubr.bf16.mxu0 %v9155_v50  ;;  %4876 = vmatprep.mubr.bf16.mxu1 %v9155_v50 }
 0x450   : > { %4804 = vmatmul.mubr.bf16.gmra.mrb[196].mxu0 %v8832_v41  ;;  %4877 = vmatmul.mubr.bf16.gmra.mrb[196].mxu1 %v8832_v41 }
 0x451   : > { %4813 = vmatprep.mubr.bf16.mxu0 %v9155_v50  ;;  %4886 = vmatprep.mubr.bf16.mxu1 %v9155_v50 }
 0x458   : > { %4814 = vmatmul.mubr.bf16.gmra.mrb[200].mxu0 %v8841_v39  ;;  %4887 = vmatmul.mubr.bf16.gmra.mrb[200].mxu1 %v8841_v39 }
 0x459   : > { %4823 = vmatprep.mubr.bf16.mxu0 %v9155_v50  ;;  %4896 = vmatprep.mubr.bf16.mxu1 %v9155_v50 }
 0x460   : > { %4824 = vmatmul.mubr.bf16.gmra.mrb[204].mxu0 %v8850_v26  ;;  %4897 = vmatmul.mubr.bf16.gmra.mrb[204].mxu1 %v8850_v26 }
 0x461   : > { %4939 = vmatprep.mubr.bf16.mxu0 %v9155_v50  ;;  %5012 = vmatprep.mubr.bf16.mxu1 %v9155_v50 }
 0x482   : > { %v4297_v17 = vpop.f32.mrb[160].mxu0 }
 0x483   : > { %v4298_v13 = vadd.f32 %v4297_v17, %v8726_v20  ;;  %v4299_v14 = vpop.f32.mrb[161].mxu0 }
 0x484   : > { %v4300_v44 = vadd.f32 %v4299_v14, %v8726_v20  ;;  %v4301_v34 = vpop.f32.mrb[162].mxu0 }
 0x485   : > { %v4302_v32 = vadd.f32 %v4301_v34, %v8724_v47  ;;  %v4303_v6 = vpop.f32.mrb[163].mxu0  ;;  %v4493_v30 = vmax.f32 %v4298_v13, 0.0 }
 0x486   : > { %v4304_v2 = vadd.f32 %v4303_v6, %v8724_v47  ;;  %v4494_v7 = vmax.f32 %v4300_v44, 0.0 }
 0x487   : > { %v4501_v21 = vmax.f32 %v4302_v32, 0.0 }
 0x488   : > { %v4502_v16 = vmax.f32 %v4304_v2, 0.0 }
 0x489   : > { %v4621_v40 = vpack.c.bf16 %v4501_v21, %v4493_v30 }
 0x48a   : > { %v4622_v15 = vpack.c.bf16 %v4502_v16, %v4494_v7  ;;  %v4307_v27 = vpop.f32.mrb[164].mxu0 }
 0x48b   : > { %v4410_v29 = vpop.f32.mrb[160].mxu1  ;;  %v4308_v3 = vadd.f32 %v4307_v27, %v8738_v1  ;;  %v4309_v25 = vpop.f32.mrb[165].mxu0 }
 0x48c   : > { %v4411_v60 = vadd.f32 %v4410_v29, %v8726_v20  ;;  %v4412_v55 = vpop.f32.mrb[161].mxu1  ;;  %v4310_v35 = vadd.f32 %v4309_v25, %v8738_v1  ;;  %v4311_v28 = vpop.f32.mrb[166].mxu0  ;;  %4907 = vmatprep.subr.bf16.mxu0 %v4622_v15 }
 0x48d   : > { %v4413_v42 = vadd.f32 %v4412_v55, %v8726_v20  ;;  %v4414_v48 = vpop.f32.mrb[162].mxu1  ;;  %v4312_v54 = vadd.f32 %v4311_v28, %v8736_v61  ;;  %v4313_v43 = vpop.f32.mrb[167].mxu0  ;;  %4908 = vmatpush1.bf16.msra.mxu0 %v4621_v40  ;;  %v4509_v18 = vmax.f32 %v4308_v3, 0.0 }
 0x48e   : > { %v4415_v0 = vadd.f32 %v4414_v48, %v8724_v47  ;;  %v4416_v5 = vpop.f32.mrb[163].mxu1  ;;  %v4314_v22 = vadd.f32 %v4313_v43, %v8736_v61  ;;  %v4495_v11 = vmax.f32 %v4411_v60, 0.0  ;;  %v4510_v59 = vmax.f32 %v4310_v35, 0.0 }
 0x48f   : > { %v4417_v37 = vadd.f32 %v4416_v5, %v8724_v47  ;;  %v4517_v9 = vmax.f32 %v4312_v54, 0.0  ;;  %v4496_v49 = vmax.f32 %v4413_v42, 0.0 }
 0x490   : > { %v4503_v56 = vmax.f32 %v4415_v0, 0.0  ;;  %v4518_v8 = vmax.f32 %v4314_v22, 0.0 }
 0x491   : > { %v4504_v20 = vmax.f32 %v4417_v37, 0.0  ;;  %v4629_v4 = vpack.c.bf16 %v4517_v9, %v4509_v18 }
 0x492   : > { %v4623_v62 = vpack.c.bf16 %v4503_v56, %v4495_v11  ;;  %v4630_v33 = vpack.c.bf16 %v4518_v8, %v4510_v59  ;;  %v4317_v10 = vpop.f32.mrb[168].mxu0 }
 0x493   : > { %v4624_v31 = vpack.c.bf16 %v4504_v20, %v4496_v49  ;;  %v4420_v46 = vpop.f32.mrb[164].mxu1  ;;  %v4318_v17 = vadd.f32 %v4317_v10, %v8750_v57  ;;  %v4319_v13 = vpop.f32.mrb[169].mxu0 }
 0x494   : > { %v4421_v14 = vadd.f32 %v4420_v46, %v8738_v1  ;;  %v4422_v47 = vpop.f32.mrb[165].mxu1  ;;  %v4320_v44 = vadd.f32 %v4319_v13, %v8750_v57  ;;  %v4321_v34 = vpop.f32.mrb[170].mxu0  ;;  %4909 = vmatprep.subr.bf16.mxu0 %v4630_v33 }
 0x495   : > { %v4423_v32 = vadd.f32 %v4422_v47, %v8738_v1  ;;  %v4424_v6 = vpop.f32.mrb[166].mxu1  ;;  %4980 = vmatprep.subr.bf16.mxu1 %v4624_v31  ;;  %v4322_v2 = vadd.f32 %v4321_v34, %v8748_v52  ;;  %v4323_v30 = vpop.f32.mrb[171].mxu0  ;;  %4910 = vmatpush1.bf16.msra.mxu0 %v4629_v4  ;;  %v4525_v15 = vmax.f32 %v4318_v17, 0.0 }
 0x496   : > { %v4425_v21 = vadd.f32 %v4424_v6, %v8736_v61  ;;  %v4426_v7 = vpop.f32.mrb[167].mxu1  ;;  %4981 = vmatpush1.bf16.msra.mxu1 %v4623_v62  ;;  %v4324_v16 = vadd.f32 %v4323_v30, %v8748_v52  ;;  %v4511_v29 = vmax.f32 %v4421_v14, 0.0  ;;  %v4526_v25 = vmax.f32 %v4320_v44, 0.0 }
 0x497   : > { %v4427_v40 = vadd.f32 %v4426_v7, %v8736_v61  ;;  %v4533_v27 = vmax.f32 %v4322_v2, 0.0  ;;  %v4512_v60 = vmax.f32 %v4423_v32, 0.0 }
 0x498   : > { %v4519_v3 = vmax.f32 %v4425_v21, 0.0  ;;  %v4534_v1 = vmax.f32 %v4324_v16, 0.0 }
 0x499   : > { %v4520_v55 = vmax.f32 %v4427_v40, 0.0  ;;  %v4637_v35 = vpack.c.bf16 %v4533_v27, %v4525_v15 }
 0x49a   : > { %v4631_v28 = vpack.c.bf16 %v4519_v3, %v4511_v29  ;;  %v4638_v42 = vpack.c.bf16 %v4534_v1, %v4526_v25  ;;  %v4327_v48 = vpop.f32.mrb[172].mxu0 }
 0x49b   : > { %v4632_v54 = vpack.c.bf16 %v4520_v55, %v4512_v60  ;;  %v4430_v43 = vpop.f32.mrb[168].mxu1  ;;  %v4328_v0 = vadd.f32 %v4327_v48, %v8762_v38  ;;  %v4329_v5 = vpop.f32.mrb[173].mxu0 }
 0x49c   : > { %v4431_v22 = vadd.f32 %v4430_v43, %v8750_v57  ;;  %v4432_v61 = vpop.f32.mrb[169].mxu1  ;;  %v4330_v37 = vadd.f32 %v4329_v5, %v8762_v38  ;;  %v4331_v18 = vpop.f32.mrb[174].mxu0  ;;  %4911 = vmatprep.subr.bf16.mxu0 %v4638_v42 }
 0x49d   : > { %v4433_v9 = vadd.f32 %v4432_v61, %v8750_v57  ;;  %v4434_v11 = vpop.f32.mrb[170].mxu1  ;;  %4982 = vmatprep.subr.bf16.mxu1 %v4632_v54  ;;  %v4332_v56 = vadd.f32 %v4331_v18, %v8760_v12  ;;  %v4333_v59 = vpop.f32.mrb[175].mxu0  ;;  %4912 = vmatpush1.bf16.msra.mxu0 %v4637_v35  ;;  %v4541_v62 = vmax.f32 %v4328_v0, 0.0 }
 0x49e   : > { %v4435_v8 = vadd.f32 %v4434_v11, %v8748_v52  ;;  %v4436_v49 = vpop.f32.mrb[171].mxu1  ;;  %4983 = vmatpush1.bf16.msra.mxu1 %v4631_v28  ;;  %v4334_v20 = vadd.f32 %v4333_v59, %v8760_v12  ;;  %v4527_v10 = vmax.f32 %v4431_v22, 0.0  ;;  %v4542_v46 = vmax.f32 %v4330_v37, 0.0 }
 0x49f   : > { %v4437_v4 = vadd.f32 %v4436_v49, %v8748_v52  ;;  %v4549_v33 = vmax.f32 %v4332_v56, 0.0  ;;  %v4528_v17 = vmax.f32 %v4433_v9, 0.0 }
 0x4a0   : > { %v4535_v31 = vmax.f32 %v4435_v8, 0.0  ;;  %v4550_v57 = vmax.f32 %v4334_v20, 0.0 }
 0x4a1   : > { %v4536_v13 = vmax.f32 %v4437_v4, 0.0  ;;  %v4645_v14 = vpack.c.bf16 %v4549_v33, %v4541_v62 }
 0x4a2   : > { %v4639_v47 = vpack.c.bf16 %v4535_v31, %v4527_v10  ;;  %v4646_v44 = vpack.c.bf16 %v4550_v57, %v4542_v46  ;;  %v4337_v34 = vpop.f32.mrb[176].mxu0 }
 0x4a3   : > { %v4640_v32 = vpack.c.bf16 %v4536_v13, %v4528_v17  ;;  %v4440_v6 = vpop.f32.mrb[172].mxu1  ;;  %v4338_v2 = vadd.f32 %v4337_v34, %v8774_v36  ;;  %v4339_v30 = vpop.f32.mrb[177].mxu0 }
 0x4a4   : > { %v4441_v21 = vadd.f32 %v4440_v6, %v8762_v38  ;;  %v4442_v52 = vpop.f32.mrb[173].mxu1  ;;  %v4340_v7 = vadd.f32 %v4339_v30, %v8774_v36  ;;  %v4341_v16 = vpop.f32.mrb[178].mxu0  ;;  %4913 = vmatprep.subr.bf16.mxu0 %v4646_v44 }
 0x4a5   : > { %v4443_v40 = vadd.f32 %v4442_v52, %v8762_v38  ;;  %v4444_v15 = vpop.f32.mrb[174].mxu1  ;;  %4984 = vmatprep.subr.bf16.mxu1 %v4640_v32  ;;  %v4342_v27 = vadd.f32 %v4341_v16, %v8772_v51  ;;  %v4343_v29 = vpop.f32.mrb[179].mxu0  ;;  %4914 = vmatpush1.bf16.msra.mxu0 %v4645_v14  ;;  %v4557_v55 = vmax.f32 %v4338_v2, 0.0 }
 0x4a6   : > { %v4445_v3 = vadd.f32 %v4444_v15, %v8760_v12  ;;  %v4446_v25 = vpop.f32.mrb[175].mxu1  ;;  %4985 = vmatpush1.bf16.msra.mxu1 %v4639_v47  ;;  %v4344_v1 = vadd.f32 %v4343_v29, %v8772_v51  ;;  %v4543_v28 = vmax.f32 %v4441_v21, 0.0  ;;  %v4558_v48 = vmax.f32 %v4340_v7, 0.0 }
 0x4a7   : > { %v4447_v60 = vadd.f32 %v4446_v25, %v8760_v12  ;;  %v4565_v35 = vmax.f32 %v4342_v27, 0.0  ;;  %v4544_v54 = vmax.f32 %v4443_v40, 0.0 }
 0x4a8   : > { %v4551_v42 = vmax.f32 %v4445_v3, 0.0  ;;  %v4566_v38 = vmax.f32 %v4344_v1, 0.0 }
 0x4a9   : > { %v4552_v43 = vmax.f32 %v4447_v60, 0.0  ;;  %v4653_v0 = vpack.c.bf16 %v4565_v35, %v4557_v55 }
 0x4aa   : > { %v4647_v5 = vpack.c.bf16 %v4551_v42, %v4543_v28  ;;  %v4654_v22 = vpack.c.bf16 %v4566_v38, %v4558_v48  ;;  %v4347_v61 = vpop.f32.mrb[180].mxu0 }
 0x4ab   : > { %v4648_v37 = vpack.c.bf16 %v4552_v43, %v4544_v54  ;;  %v4450_v18 = vpop.f32.mrb[176].mxu1  ;;  %v4348_v9 = vadd.f32 %v4347_v61, %v8786_v58  ;;  %v4349_v11 = vpop.f32.mrb[181].mxu0 }
 0x4ac   : > { %v4451_v56 = vadd.f32 %v4450_v18, %v8774_v36  ;;  %v4452_v12 = vpop.f32.mrb[177].mxu1  ;;  %v4350_v59 = vadd.f32 %v4349_v11, %v8786_v58  ;;  %v4351_v8 = vpop.f32.mrb[182].mxu0  ;;  %4915 = vmatprep.subr.bf16.mxu0 %v4654_v22 }
 0x4ad   : > { %v4453_v49 = vadd.f32 %v4452_v12, %v8774_v36  ;;  %v4454_v20 = vpop.f32.mrb[178].mxu1  ;;  %4986 = vmatprep.subr.bf16.mxu1 %v4648_v37  ;;  %v4352_v4 = vadd.f32 %v4351_v8, %v8784_v24  ;;  %v4353_v62 = vpop.f32.mrb[183].mxu0  ;;  %4916 = vmatpush1.bf16.msra.mxu0 %v4653_v0  ;;  %v4573_v57 = vmax.f32 %v4348_v9, 0.0 }
 0x4ae   : > { %v4455_v33 = vadd.f32 %v4454_v20, %v8772_v51  ;;  %v4456_v10 = vpop.f32.mrb[179].mxu1  ;;  %4987 = vmatpush1.bf16.msra.mxu1 %v4647_v5  ;;  %v4354_v31 = vadd.f32 %v4353_v62, %v8784_v24  ;;  %v4559_v13 = vmax.f32 %v4451_v56, 0.0  ;;  %v4574_v47 = vmax.f32 %v4350_v59, 0.0 }
 0x4af   : > { %v4457_v46 = vadd.f32 %v4456_v10, %v8772_v51  ;;  %v4581_v17 = vmax.f32 %v4352_v4, 0.0  ;;  %v4560_v44 = vmax.f32 %v4453_v49, 0.0 }
 0x4b0   : > { %v4567_v14 = vmax.f32 %v4455_v33, 0.0  ;;  %v4582_v36 = vmax.f32 %v4354_v31, 0.0 }
 0x4b1   : > { %v4568_v34 = vmax.f32 %v4457_v46, 0.0  ;;  %v4661_v32 = vpack.c.bf16 %v4581_v17, %v4573_v57 }
 0x4b2   : > { %v4655_v6 = vpack.c.bf16 %v4567_v14, %v4559_v13  ;;  %v4662_v2 = vpack.c.bf16 %v4582_v36, %v4574_v47  ;;  %v4357_v30 = vpop.f32.mrb[184].mxu0 }
 0x4b3   : > { %v4656_v21 = vpack.c.bf16 %v4568_v34, %v4560_v44  ;;  %v4460_v52 = vpop.f32.mrb[180].mxu1  ;;  %v4358_v7 = vadd.f32 %v4357_v30, %v8798_v63  ;;  %v4359_v16 = vpop.f32.mrb[185].mxu0 }
 0x4b4   : > { %v4461_v40 = vadd.f32 %v4460_v52, %v8786_v58  ;;  %v4462_v51 = vpop.f32.mrb[181].mxu1  ;;  %v4360_v15 = vadd.f32 %v4359_v16, %v8798_v63  ;;  %v4361_v27 = vpop.f32.mrb[186].mxu0  ;;  %4917 = vmatprep.subr.bf16.mxu0 %v4662_v2 }
 0x4b5   : > { %v4463_v29 = vadd.f32 %v4462_v51, %v8786_v58  ;;  %v4464_v3 = vpop.f32.mrb[182].mxu1  ;;  %4988 = vmatprep.subr.bf16.mxu1 %v4656_v21  ;;  %v4362_v25 = vadd.f32 %v4361_v27, %v8796_v19  ;;  %v4363_v1 = vpop.f32.mrb[187].mxu0  ;;  %4918 = vmatpush1.bf16.msra.mxu0 %v4661_v32  ;;  %v4589_v42 = vmax.f32 %v4358_v7, 0.0 }
 0x4b6   : > { %v4465_v60 = vadd.f32 %v4464_v3, %v8784_v24  ;;  %v4466_v55 = vpop.f32.mrb[183].mxu1  ;;  %4989 = vmatpush1.bf16.msra.mxu1 %v4655_v6  ;;  %v4364_v35 = vadd.f32 %v4363_v1, %v8796_v19  ;;  %v4575_v38 = vmax.f32 %v4461_v40, 0.0  ;;  %v4590_v43 = vmax.f32 %v4360_v15, 0.0 }
 0x4b7   : > { %v4467_v28 = vadd.f32 %v4466_v55, %v8784_v24  ;;  %v4597_v48 = vmax.f32 %v4362_v25, 0.0  ;;  %v4576_v0 = vmax.f32 %v4463_v29, 0.0 }
 0x4b8   : > { %v4583_v54 = vmax.f32 %v4465_v60, 0.0  ;;  %v4598_v58 = vmax.f32 %v4364_v35, 0.0 }
 0x4b9   : > { %v4584_v5 = vmax.f32 %v4467_v28, 0.0  ;;  %v4669_v22 = vpack.c.bf16 %v4597_v48, %v4589_v42 }
 0x4ba   : > { %v4663_v61 = vpack.c.bf16 %v4583_v54, %v4575_v38  ;;  %v4670_v37 = vpack.c.bf16 %v4598_v58, %v4590_v43  ;;  %v4367_v18 = vpop.f32.mrb[188].mxu0 }
 0x4bb   : > { %v4664_v9 = vpack.c.bf16 %v4584_v5, %v4576_v0  ;;  %v4470_v11 = vpop.f32.mrb[184].mxu1  ;;  %v4368_v56 = vadd.f32 %v4367_v18, %v8810_v45  ;;  %v4369_v12 = vpop.f32.mrb[189].mxu0 }
 0x4bc   : > { %v4471_v59 = vadd.f32 %v4470_v11, %v8798_v63  ;;  %v4472_v24 = vpop.f32.mrb[185].mxu1  ;;  %v4370_v8 = vadd.f32 %v4369_v12, %v8810_v45  ;;  %v4371_v49 = vpop.f32.mrb[190].mxu0  ;;  %4919 = vmatprep.subr.bf16.mxu0 %v4670_v37 }
 0x4bd   : > { %v4473_v20 = vadd.f32 %v4472_v24, %v8798_v63  ;;  %v4474_v4 = vpop.f32.mrb[186].mxu1  ;;  %4990 = vmatprep.subr.bf16.mxu1 %v4664_v9  ;;  %v4372_v62 = vadd.f32 %v4371_v49, %v8808_v23  ;;  %v4373_v33 = vpop.f32.mrb[191].mxu0  ;;  %4920 = vmatpush1.bf16.msra.mxu0 %v4669_v22  ;;  %v4605_v17 = vmax.f32 %v4368_v56, 0.0 }
 0x4be   : > { %v4475_v10 = vadd.f32 %v4474_v4, %v8796_v19  ;;  %v4476_v31 = vpop.f32.mrb[187].mxu1  ;;  %4991 = vmatpush1.bf16.msra.mxu1 %v4663_v61  ;;  %v4374_v46 = vadd.f32 %v4373_v33, %v8808_v23  ;;  %v4591_v14 = vmax.f32 %v4471_v59, 0.0  ;;  %v4606_v36 = vmax.f32 %v4370_v8, 0.0 }
 0x4bf   : > { %v4477_v57 = vadd.f32 %v4476_v31, %v8796_v19  ;;  %v4613_v13 = vmax.f32 %v4372_v62, 0.0  ;;  %v4592_v44 = vmax.f32 %v4473_v20, 0.0 }
 0x4c0   : > { %v4599_v47 = vmax.f32 %v4475_v10, 0.0  ;;  %v4614_v63 = vmax.f32 %v4374_v46, 0.0 }
 0x4c1   : > { %v4600_v34 = vmax.f32 %v4477_v57, 0.0  ;;  %v4677_v32 = vpack.c.bf16 %v4613_v13, %v4605_v17 }
 0x4c2   : > { %v4671_v6 = vpack.c.bf16 %v4599_v47, %v4591_v14  ;;  %v4678_v2 = vpack.c.bf16 %v4614_v63, %v4606_v36 }
 0x4c3   : > { %v4672_v30 = vpack.c.bf16 %v4600_v34, %v4592_v44  ;;  %v4480_v21 = vpop.f32.mrb[188].mxu1 }
 0x4c4   : > { %v4481_v52 = vadd.f32 %v4480_v21, %v8810_v45  ;;  %v4482_v7 = vpop.f32.mrb[189].mxu1  ;;  %4921 = vmatprep.subr.bf16.mxu0 %v4678_v2 }
 0x4c5   : > { %v4483_v16 = vadd.f32 %v4482_v7, %v8810_v45  ;;  %v4484_v19 = vpop.f32.mrb[190].mxu1  ;;  %4992 = vmatprep.subr.bf16.mxu1 %v4672_v30  ;;  %4922 = vmatpush1.bf16.msra.mxu0 %v4677_v32  ;;  %v8938_v45 = vpop.permute.xlu0 %4699 }
 0x4c6   : > { %v4485_v40 = vadd.f32 %v4484_v19, %v8808_v23  ;;  %v4486_v51 = vpop.f32.mrb[191].mxu1  ;;  %4993 = vmatpush1.bf16.msra.mxu1 %v4671_v6  ;;  %v4607_v27 = vmax.f32 %v4481_v52, 0.0 }
 0x4c7   : > { %v4487_v15 = vadd.f32 %v4486_v51, %v8808_v23  ;;  %v4608_v3 = vmax.f32 %v4483_v16, 0.0  ;;  %v8936_v23 = vpop.permute.xlu1 %4704 }
 0x4c8   : > { %v4615_v29 = vmax.f32 %v4485_v40, 0.0  ;;  %4940 = vmatmul.mubr.bf16.vlgmr.msra.gmra.mrb[208].mxu0 %v8823_v53 }
 0x4c9   : > { %v4616_v25 = vmax.f32 %v4487_v15, 0.0  ;;  %4949 = vmatprep.mubr.bf16.mxu0 %v9155_v50  ;;  %v8950_v8 = vpop.permute.xlu0 %4709 }
 0x4ca   : > { %v4679_v1 = vpack.c.bf16 %v4615_v29, %v4607_v27 }
 0x4cb   : > { %v4680_v60 = vpack.c.bf16 %v4616_v25, %v4608_v3  ;;  %v8948_v24 = vpop.permute.xlu1 %4714 }
 0x4cd   : > { %4994 = vmatprep.subr.bf16.mxu1 %v4680_v60  ;;  %v8962_v27 = vpop.permute.xlu0 %4719 }
 0x4ce   : > { %4995 = vmatpush1.bf16.msra.mxu1 %v4679_v1 }
 0x4cf   : > { %v8960_v15 = vpop.permute.xlu1 %4724 }
 0x4d0   : > { %4950 = vmatmul.mubr.bf16.gmra.mrb[212].mxu0 %v8832_v41 }
 0x4d1   : > { %5013 = vmatmul.mubr.bf16.vlgmr.msra.gmra.mrb[208].mxu1 %v8823_v53  ;;  %4959 = vmatprep.mubr.bf16.mxu0 %v9155_v50 }
 0x4d2   : > { %5022 = vmatprep.mubr.bf16.mxu1 %v9155_v50 }
 0x4d8   : > { %4960 = vmatmul.mubr.bf16.gmra.mrb[216].mxu0 %v8841_v39 }
 0x4d9   : > { %5023 = vmatmul.mubr.bf16.gmra.mrb[212].mxu1 %v8832_v41  ;;  %4969 = vmatprep.mubr.bf16.mxu0 %v9155_v50 }
 0x4da   : > { %5032 = vmatprep.mubr.bf16.mxu1 %v9155_v50 }
 0x4e0   : > { %4970 = vmatmul.mubr.bf16.gmra.mrb[220].mxu0 %v8850_v26 }
 0x4e1   : > { %5033 = vmatmul.mubr.bf16.gmra.mrb[216].mxu1 %v8841_v39  ;;  %5192 = vmatprep.mubr.bf16.mxu0 %v9155_v50 }
 0x4e2   : > { %5042 = vmatprep.mubr.bf16.mxu1 %v9155_v50 }
 0x4e9   : > { %5043 = vmatmul.mubr.bf16.gmra.mrb[220].mxu1 %v8850_v26 }
 0x4ea   : > { %5233 = vmatprep.mubr.bf16.mxu1 %v9155_v50 }
 0x51b   : > { %v4795_v53 = vpop.f32.mrb[192].mxu0  ;;  %v4868_v41 = vpop.f32.mrb[192].mxu1 }
 0x51c   : > { %v4796_v55 = vadd.f32 %v4795_v53, %v8938_v45  ;;  %v4869_v35 = vadd.f32 %v4868_v41, %v8938_v45  ;;  %v4797_v28 = vpop.f32.mrb[193].mxu0  ;;  %v4870_v39 = vpop.f32.mrb[193].mxu1 }
 0x51d   : > { %v4798_v42 = vadd.f32 %v4797_v28, %v8938_v45  ;;  %v4871_v48 = vadd.f32 %v4870_v39, %v8938_v45  ;;  %v4799_v38 = vpop.f32.mrb[194].mxu0  ;;  %v4872_v26 = vpop.f32.mrb[194].mxu1 }
 0x51e   : > { %v4800_v54 = vadd.f32 %v4799_v38, %v8936_v23  ;;  %v4873_v43 = vadd.f32 %v4872_v26, %v8936_v23  ;;  %v4801_v58 = vpop.f32.mrb[195].mxu0  ;;  %v4874_v0 = vpop.f32.mrb[195].mxu1  ;;  %v5053_v61 = vmax.f32 %v4796_v55, 0.0  ;;  %v5055_v37 = vmax.f32 %v4869_v35, 0.0 }
 0x51f   : > { %v4802_v5 = vadd.f32 %v4801_v58, %v8936_v23  ;;  %v4875_v22 = vadd.f32 %v4874_v0, %v8936_v23  ;;  %v5054_v11 = vmax.f32 %v4798_v42, 0.0  ;;  %v5056_v56 = vmax.f32 %v4871_v48, 0.0 }
 0x520   : > { %v5061_v18 = vmax.f32 %v4800_v54, 0.0  ;;  %v5063_v9 = vmax.f32 %v4873_v43, 0.0 }
 0x521   : > { %v5062_v12 = vmax.f32 %v4802_v5, 0.0  ;;  %v5064_v59 = vmax.f32 %v4875_v22, 0.0 }
 0x522   : > { %v5117_v49 = vpack.c.bf16 %v5061_v18, %v5053_v61  ;;  %v5119_v20 = vpack.c.bf16 %v5063_v9, %v5055_v37 }
 0x523   : > { %v5118_v4 = vpack.c.bf16 %v5062_v12, %v5054_v11  ;;  %v5120_v62 = vpack.c.bf16 %v5064_v59, %v5056_v56  ;;  %v4805_v33 = vpop.f32.mrb[196].mxu0  ;;  %v4878_v10 = vpop.f32.mrb[196].mxu1 }
 0x524   : > { %v4806_v31 = vadd.f32 %v4805_v33, %v8950_v8  ;;  %v4879_v46 = vadd.f32 %v4878_v10, %v8950_v8  ;;  %v4807_v57 = vpop.f32.mrb[197].mxu0  ;;  %v4880_v17 = vpop.f32.mrb[197].mxu1 }
 0x525   : > { %v4808_v13 = vadd.f32 %v4807_v57, %v8950_v8  ;;  %v4881_v14 = vadd.f32 %v4880_v17, %v8950_v8  ;;  %v4809_v47 = vpop.f32.mrb[198].mxu0  ;;  %v4882_v36 = vpop.f32.mrb[198].mxu1  ;;  %5160 = vmatprep.subr.bf16.mxu0 %v5118_v4  ;;  %5201 = vmatprep.subr.bf16.mxu1 %v5120_v62 }
 0x526   : > { %v4810_v63 = vadd.f32 %v4809_v47, %v8948_v24  ;;  %v4883_v44 = vadd.f32 %v4882_v36, %v8948_v24  ;;  %v4811_v34 = vpop.f32.mrb[199].mxu0  ;;  %v4884_v32 = vpop.f32.mrb[199].mxu1  ;;  %5161 = vmatpush1.bf16.msra.mxu0 %v5117_v49  ;;  %5202 = vmatpush1.bf16.msra.mxu1 %v5119_v20  ;;  %v5069_v30 = vmax.f32 %v4806_v31, 0.0  ;;  %v5071_v21 = vmax.f32 %v4879_v46, 0.0 }
 0x527   : > { %v4812_v6 = vadd.f32 %v4811_v34, %v8948_v24  ;;  %v4885_v2 = vadd.f32 %v4884_v32, %v8948_v24  ;;  %v5070_v16 = vmax.f32 %v4808_v13, 0.0  ;;  %v5072_v19 = vmax.f32 %v4881_v14, 0.0  ;;  %v8972_v59 = vpop.permute.xlu1 %4734  ;;  %v8974_v49 = vpop.permute.xlu0 %4729 }
 0x528   : > { %v5077_v52 = vmax.f32 %v4810_v63, 0.0  ;;  %v5079_v7 = vmax.f32 %v4883_v44, 0.0 }
 0x529   : > { %v5078_v40 = vmax.f32 %v4812_v6, 0.0  ;;  %v5080_v51 = vmax.f32 %v4885_v2, 0.0 }
 0x52a   : > { %v5125_v29 = vpack.c.bf16 %v5077_v52, %v5069_v30  ;;  %v5127_v3 = vpack.c.bf16 %v5079_v7, %v5071_v21 }
 0x52b   : > { %v5126_v25 = vpack.c.bf16 %v5078_v40, %v5070_v16  ;;  %v5128_v1 = vpack.c.bf16 %v5080_v51, %v5072_v19  ;;  %v4815_v60 = vpop.f32.mrb[200].mxu0  ;;  %v4888_v53 = vpop.f32.mrb[200].mxu1 }
 0x52c   : > { %v4816_v41 = vadd.f32 %v4815_v60, %v8962_v27  ;;  %v4889_v55 = vadd.f32 %v4888_v53, %v8962_v27  ;;  %v4817_v35 = vpop.f32.mrb[201].mxu0  ;;  %v4890_v28 = vpop.f32.mrb[201].mxu1  ;;  %v8987_v53 = vld [vmem:[%s9099_s10] sm:$0x3] }
 0x52d   : > { %v4818_v39 = vadd.f32 %v4817_v35, %v8962_v27  ;;  %v4891_v42 = vadd.f32 %v4890_v28, %v8962_v27  ;;  %v4819_v48 = vpop.f32.mrb[202].mxu0  ;;  %v4892_v38 = vpop.f32.mrb[202].mxu1  ;;  %5162 = vmatprep.subr.bf16.mxu0 %v5126_v25  ;;  %5203 = vmatprep.subr.bf16.mxu1 %v5128_v1 }
 0x52e   : > { %v4820_v26 = vadd.f32 %v4819_v48, %v8960_v15  ;;  %v4893_v54 = vadd.f32 %v4892_v38, %v8960_v15  ;;  %v4821_v43 = vpop.f32.mrb[203].mxu0  ;;  %v4894_v58 = vpop.f32.mrb[203].mxu1  ;;  %5163 = vmatpush1.bf16.msra.mxu0 %v5125_v29  ;;  %5204 = vmatpush1.bf16.msra.mxu1 %v5127_v3  ;;  %v5085_v22 = vmax.f32 %v4816_v41, 0.0  ;;  %v5087_v61 = vmax.f32 %v4889_v55, 0.0 }
 0x52f   : > { %v4822_v0 = vadd.f32 %v4821_v43, %v8960_v15  ;;  %v4895_v5 = vadd.f32 %v4894_v58, %v8960_v15  ;;  %v5086_v9 = vmax.f32 %v4818_v39, 0.0  ;;  %v5088_v11 = vmax.f32 %v4891_v42, 0.0 }
 0x530   : > { %v5093_v37 = vmax.f32 %v4820_v26, 0.0  ;;  %v5095_v18 = vmax.f32 %v4893_v54, 0.0 }
 0x531   : > { %v5094_v56 = vmax.f32 %v4822_v0, 0.0  ;;  %v5096_v12 = vmax.f32 %v4895_v5, 0.0 }
 0x532   : > { %v5133_v20 = vpack.c.bf16 %v5093_v37, %v5085_v22  ;;  %v5135_v4 = vpack.c.bf16 %v5095_v18, %v5087_v61 }
 0x533   : > { %v5134_v62 = vpack.c.bf16 %v5094_v56, %v5086_v9  ;;  %v5136_v33 = vpack.c.bf16 %v5096_v12, %v5088_v11  ;;  %v4825_v10 = vpop.f32.mrb[204].mxu0  ;;  %v4898_v31 = vpop.f32.mrb[204].mxu1 }
 0x534   : > { %v4826_v46 = vadd.f32 %v4825_v10, %v8974_v49  ;;  %v4899_v57 = vadd.f32 %v4898_v31, %v8974_v49  ;;  %v4827_v17 = vpop.f32.mrb[205].mxu0  ;;  %v4900_v13 = vpop.f32.mrb[205].mxu1 }
 0x535   : > { %v4828_v14 = vadd.f32 %v4827_v17, %v8974_v49  ;;  %v4901_v47 = vadd.f32 %v4900_v13, %v8974_v49  ;;  %v4829_v36 = vpop.f32.mrb[206].mxu0  ;;  %v4902_v63 = vpop.f32.mrb[206].mxu1  ;;  %5164 = vmatprep.subr.bf16.mxu0 %v5134_v62  ;;  %5205 = vmatprep.subr.bf16.mxu1 %v5136_v33 }
 0x536   : > { %v4830_v44 = vadd.f32 %v4829_v36, %v8972_v59  ;;  %v4903_v34 = vadd.f32 %v4902_v63, %v8972_v59  ;;  %v4831_v32 = vpop.f32.mrb[207].mxu0  ;;  %v4904_v6 = vpop.f32.mrb[207].mxu1  ;;  %5165 = vmatpush1.bf16.msra.mxu0 %v5133_v20  ;;  %5206 = vmatpush1.bf16.msra.mxu1 %v5135_v4  ;;  %v5101_v21 = vmax.f32 %v4826_v46, 0.0  ;;  %v5103_v52 = vmax.f32 %v4899_v57, 0.0 }
 0x537   : > { %v4832_v2 = vadd.f32 %v4831_v32, %v8972_v59  ;;  %v4905_v30 = vadd.f32 %v4904_v6, %v8972_v59  ;;  %v5102_v19 = vmax.f32 %v4828_v14, 0.0  ;;  %v5104_v40 = vmax.f32 %v4901_v47, 0.0 }
 0x538   : > { %v5109_v7 = vmax.f32 %v4830_v44, 0.0  ;;  %v5111_v16 = vmax.f32 %v4903_v34, 0.0 }
 0x539   : > { %v5110_v51 = vmax.f32 %v4832_v2, 0.0  ;;  %v5112_v29 = vmax.f32 %v4905_v30, 0.0 }
 0x53a   : > { %v5141_v3 = vpack.c.bf16 %v5109_v7, %v5101_v21  ;;  %v5143_v25 = vpack.c.bf16 %v5111_v16, %v5103_v52 }
 0x53b   : > { %v5142_v1 = vpack.c.bf16 %v5110_v51, %v5102_v19  ;;  %v5144_v60 = vpack.c.bf16 %v5112_v29, %v5104_v40 }
 0x53d   : > { %5166 = vmatprep.subr.bf16.mxu0 %v5142_v1  ;;  %5207 = vmatprep.subr.bf16.mxu1 %v5144_v60 }
 0x53e   : > { %5167 = vmatpush1.bf16.msra.mxu0 %v5141_v3  ;;  %5208 = vmatpush1.bf16.msra.mxu1 %v5143_v25 }
 0x541   : > { %5637 = vmatmul.mubr.msk.bf16.vlgmr.msra.gmra.mrb[224].mxu0 %vm5156_vm11, %v8987_v53  ;;  %5638 = vmatmul.mubr.msk.bf16.vlgmr.msra.gmra.mrb[224].mxu1 %vm5156_vm11, %v8987_v53 }
 0x542   : > { %5274 = vmatprep.mubr.bf16.mxu0 %v9155_v50  ;;  %5315 = vmatprep.mubr.bf16.mxu1 %v9155_v50 }
 0x59b   : > { %v4941_v41 = vpop.f32.mrb[208].mxu0 }
 0x59c   : > { %v4942_v55 = vadd.f32 %v4941_v41, %v8938_v45  ;;  %v4943_v35 = vpop.f32.mrb[209].mxu0 }
 0x59d   : > { %v4944_v28 = vadd.f32 %v4943_v35, %v8938_v45  ;;  %v4945_v39 = vpop.f32.mrb[210].mxu0 }
 0x59e   : > { %v4946_v42 = vadd.f32 %v4945_v39, %v8936_v23  ;;  %v4947_v48 = vpop.f32.mrb[211].mxu0  ;;  %v5057_v26 = vmax.f32 %v4942_v55, 0.0 }
 0x59f   : > { %v4948_v38 = vadd.f32 %v4947_v48, %v8936_v23  ;;  %v5058_v43 = vmax.f32 %v4944_v28, 0.0 }
 0x5a0   : > { %v5065_v54 = vmax.f32 %v4946_v42, 0.0 }
 0x5a1   : > { %v5066_v58 = vmax.f32 %v4948_v38, 0.0 }
 0x5a2   : > { %v5121_v0 = vpack.c.bf16 %v5065_v54, %v5057_v26 }
 0x5a3   : > { %v5122_v5 = vpack.c.bf16 %v5066_v58, %v5058_v43  ;;  %v4951_v22 = vpop.f32.mrb[212].mxu0 }
 0x5a4   : > { %v5014_v50 = vpop.f32.mrb[208].mxu1  ;;  %v4952_v61 = vadd.f32 %v4951_v22, %v8950_v8  ;;  %v4953_v37 = vpop.f32.mrb[213].mxu0 }
 0x5a5   : > { %v5015_v18 = vadd.f32 %v5014_v50, %v8938_v45  ;;  %v5016_v9 = vpop.f32.mrb[209].mxu1  ;;  %v4954_v11 = vadd.f32 %v4953_v37, %v8950_v8  ;;  %v4955_v56 = vpop.f32.mrb[214].mxu0  ;;  %5242 = vmatprep.subr.bf16.mxu0 %v5122_v5 }
 0x5a6   : > { %v5017_v12 = vadd.f32 %v5016_v9, %v8938_v45  ;;  %v5018_v20 = vpop.f32.mrb[210].mxu1  ;;  %v4956_v4 = vadd.f32 %v4955_v56, %v8948_v24  ;;  %v4957_v62 = vpop.f32.mrb[215].mxu0  ;;  %5243 = vmatpush1.bf16.msra.mxu0 %v5121_v0  ;;  %v5073_v57 = vmax.f32 %v4952_v61, 0.0 }
 0x5a7   : > { %v5019_v33 = vadd.f32 %v5018_v20, %v8936_v23  ;;  %v5020_v10 = vpop.f32.mrb[211].mxu1  ;;  %v4958_v31 = vadd.f32 %v4957_v62, %v8948_v24  ;;  %v5059_v13 = vmax.f32 %v5015_v18, 0.0  ;;  %v5074_v47 = vmax.f32 %v4954_v11, 0.0 }
 0x5a8   : > { %v5021_v46 = vadd.f32 %v5020_v10, %v8936_v23  ;;  %v5081_v17 = vmax.f32 %v4956_v4, 0.0  ;;  %v5060_v63 = vmax.f32 %v5017_v12, 0.0 }
 0x5a9   : > { %v5067_v14 = vmax.f32 %v5019_v33, 0.0  ;;  %v5082_v36 = vmax.f32 %v4958_v31, 0.0 }
 0x5aa   : > { %v5068_v45 = vmax.f32 %v5021_v46, 0.0  ;;  %v5129_v44 = vpack.c.bf16 %v5081_v17, %v5073_v57 }
 0x5ab   : > { %v5123_v34 = vpack.c.bf16 %v5067_v14, %v5059_v13  ;;  %v5130_v32 = vpack.c.bf16 %v5082_v36, %v5074_v47  ;;  %v4961_v6 = vpop.f32.mrb[216].mxu0 }
 0x5ac   : > { %v5124_v2 = vpack.c.bf16 %v5068_v45, %v5060_v63  ;;  %v5024_v30 = vpop.f32.mrb[212].mxu1  ;;  %v4962_v21 = vadd.f32 %v4961_v6, %v8962_v27  ;;  %v4963_v52 = vpop.f32.mrb[217].mxu0 }
 0x5ad   : > { %v5025_v7 = vadd.f32 %v5024_v30, %v8950_v8  ;;  %v5026_v23 = vpop.f32.mrb[213].mxu1  ;;  %v4964_v16 = vadd.f32 %v4963_v52, %v8962_v27  ;;  %v4965_v19 = vpop.f32.mrb[218].mxu0  ;;  %5244 = vmatprep.subr.bf16.mxu0 %v5130_v32 }
 0x5ae   : > { %v5027_v40 = vadd.f32 %v5026_v23, %v8950_v8  ;;  %v5028_v51 = vpop.f32.mrb[214].mxu1  ;;  %5283 = vmatprep.subr.bf16.mxu1 %v5124_v2  ;;  %v4966_v29 = vadd.f32 %v4965_v19, %v8960_v15  ;;  %v4967_v3 = vpop.f32.mrb[219].mxu0  ;;  %5245 = vmatpush1.bf16.msra.mxu0 %v5129_v44  ;;  %v5089_v55 = vmax.f32 %v4962_v21, 0.0 }
 0x5af   : > { %v5029_v25 = vadd.f32 %v5028_v51, %v8948_v24  ;;  %v5030_v1 = vpop.f32.mrb[215].mxu1  ;;  %5284 = vmatpush1.bf16.msra.mxu1 %v5123_v34  ;;  %v4968_v60 = vadd.f32 %v4967_v3, %v8960_v15  ;;  %v5075_v28 = vmax.f32 %v5025_v7, 0.0  ;;  %v5090_v42 = vmax.f32 %v4964_v16, 0.0 }
 0x5b0   : > { %v5031_v41 = vadd.f32 %v5030_v1, %v8948_v24  ;;  %v5097_v35 = vmax.f32 %v4966_v29, 0.0  ;;  %v5076_v48 = vmax.f32 %v5027_v40, 0.0 }
 0x5b1   : > { %v5083_v39 = vmax.f32 %v5029_v25, 0.0  ;;  %v5098_v8 = vmax.f32 %v4968_v60, 0.0 }
 0x5b2   : > { %v5084_v38 = vmax.f32 %v5031_v41, 0.0  ;;  %v5137_v26 = vpack.c.bf16 %v5097_v35, %v5089_v55 }
 0x5b3   : > { %v5131_v54 = vpack.c.bf16 %v5083_v39, %v5075_v28  ;;  %v5138_v43 = vpack.c.bf16 %v5098_v8, %v5090_v42  ;;  %v4971_v58 = vpop.f32.mrb[220].mxu0 }
 0x5b4   : > { %v5132_v0 = vpack.c.bf16 %v5084_v38, %v5076_v48  ;;  %v5034_v5 = vpop.f32.mrb[216].mxu1  ;;  %v4972_v22 = vadd.f32 %v4971_v58, %v8974_v49  ;;  %v4973_v50 = vpop.f32.mrb[221].mxu0 }
 0x5b5   : > { %v5035_v61 = vadd.f32 %v5034_v5, %v8962_v27  ;;  %v5036_v24 = vpop.f32.mrb[217].mxu1  ;;  %v4974_v37 = vadd.f32 %v4973_v50, %v8974_v49  ;;  %v4975_v18 = vpop.f32.mrb[222].mxu0  ;;  %5246 = vmatprep.subr.bf16.mxu0 %v5138_v43 }
 0x5b6   : > { %v5037_v9 = vadd.f32 %v5036_v24, %v8962_v27  ;;  %v5038_v11 = vpop.f32.mrb[218].mxu1  ;;  %5285 = vmatprep.subr.bf16.mxu1 %v5132_v0  ;;  %v4976_v56 = vadd.f32 %v4975_v18, %v8972_v59  ;;  %v4977_v12 = vpop.f32.mrb[223].mxu0  ;;  %5247 = vmatpush1.bf16.msra.mxu0 %v5137_v26  ;;  %v5105_v10 = vmax.f32 %v4972_v22, 0.0 }
 0x5b7   : > { %v5039_v20 = vadd.f32 %v5038_v11, %v8960_v15  ;;  %v5040_v4 = vpop.f32.mrb[219].mxu1  ;;  %5286 = vmatpush1.bf16.msra.mxu1 %v5131_v54  ;;  %v4978_v62 = vadd.f32 %v4977_v12, %v8972_v59  ;;  %v5091_v46 = vmax.f32 %v5035_v61, 0.0  ;;  %v5106_v17 = vmax.f32 %v4974_v37, 0.0 }
 0x5b8   : > { %v5041_v33 = vadd.f32 %v5040_v4, %v8960_v15  ;;  %v5113_v31 = vmax.f32 %v4976_v56, 0.0  ;;  %v5092_v13 = vmax.f32 %v5037_v9, 0.0 }
 0x5b9   : > { %v5099_v57 = vmax.f32 %v5039_v20, 0.0  ;;  %v5114_v27 = vmax.f32 %v4978_v62, 0.0 }
 0x5ba   : > { %v5100_v14 = vmax.f32 %v5041_v33, 0.0  ;;  %v5145_v47 = vpack.c.bf16 %v5113_v31, %v5105_v10 }
 0x5bb   : > { %v5139_v36 = vpack.c.bf16 %v5099_v57, %v5091_v46  ;;  %v5146_v63 = vpack.c.bf16 %v5114_v27, %v5106_v17 }
 0x5bc   : > { %v5140_v45 = vpack.c.bf16 %v5100_v14, %v5092_v13  ;;  %v5044_v44 = vpop.f32.mrb[220].mxu1 }
 0x5bd   : > { %v5045_v34 = vadd.f32 %v5044_v44, %v8974_v49  ;;  %v5046_v32 = vpop.f32.mrb[221].mxu1  ;;  %5248 = vmatprep.subr.bf16.mxu0 %v5146_v63 }
 0x5be   : > { %v5047_v6 = vadd.f32 %v5046_v32, %v8974_v49  ;;  %v5048_v15 = vpop.f32.mrb[222].mxu1  ;;  %5287 = vmatprep.subr.bf16.mxu1 %v5140_v45  ;;  %5249 = vmatpush1.bf16.msra.mxu0 %v5145_v47  ;;  %v5154_v49 = vpop.permute.xlu0 %5153 }
 0x5bf   : > { %v5049_v2 = vadd.f32 %v5048_v15, %v8972_v59  ;;  %v5050_v30 = vpop.f32.mrb[223].mxu1  ;;  %5288 = vmatpush1.bf16.msra.mxu1 %v5139_v36  ;;  %v5107_v52 = vmax.f32 %v5045_v34, 0.0 }
 0x5c0   : > { %v5051_v21 = vadd.f32 %v5050_v30, %v8972_v59  ;;  %v5108_v23 = vmax.f32 %v5047_v6, 0.0 }
 0x5c1   : > { %v5115_v7 = vmax.f32 %v5049_v2, 0.0  ;;  %5639 = vmatmul.mubr.msk.bf16.vlgmr.msra.gmra.mrb[228].mxu0 %vm5156_vm11, %v8987_v53 }
 0x5c2   : > { %v5116_v16 = vmax.f32 %v5051_v21, 0.0 }
 0x5c3   : > { %v5147_v19 = vpack.c.bf16 %v5115_v7, %v5107_v52 }
 0x5c4   : > { %v5148_v40 = vpack.c.bf16 %v5116_v16, %v5108_v23 }
 0x5c6   : > { %5289 = vmatprep.subr.bf16.mxu1 %v5148_v40 }
 0x5c7   : > { %5290 = vmatpush1.bf16.msra.mxu1 %v5147_v19 }
 0x5ca   : > { %5640 = vmatmul.mubr.msk.bf16.vlgmr.msra.gmra.mrb[228].mxu1 %vm5156_vm11, %v8987_v53 }
 0x614   : > { %v5194_v51 = vpop.f32.mrb[224].mxu0  ;;  %v5235_v29 = vpop.f32.mrb[224].mxu1 }
 0x615   : > { %v5195_v3 = vadd.f32 %v5194_v51, %v5154_v49  ;;  %v5236_v25 = vadd.f32 %v5235_v29, %v5154_v49  ;;  %v5196_v59 = vpop.f32.mrb[225].mxu0  ;;  %v5237_v1 = vpop.f32.mrb[225].mxu1 }
 0x616   : > { %v5197_v60 = vadd.f32 %v5196_v59, %v5154_v49  ;;  %v5238_v41 = vadd.f32 %v5237_v1, %v5154_v49  ;;  %v5198_v55 = vpop.f32.mrb[226].mxu0  ;;  %v5239_v35 = vpop.f32.mrb[226].mxu1 }
 0x617   : > { %v5641_v28 = vmul.f32 -1.442695, %v5195_v3  ;;  %v5643_v39 = vmul.f32 -1.442695, %v5236_v25  ;;  %v5199_v42 = vpop.f32.mrb[227].mxu0  ;;  %v5240_v8 = vpop.f32.mrb[227].mxu1 }
 0x618   : > { %v5642_v48 = vmul.f32 -1.442695, %v5197_v60  ;;  %v5644_v38 = vmul.f32 -1.442695, %v5238_v41 }
 0x619   : > { %5875 = vpow2.f32 %v5641_v28 }
 0x61a   : > { %5877 = vpow2.f32 %v5643_v39 }
 0x61b   : > { %5879 = vpow2.f32 %v5642_v48 }
 0x61c   : > { %5881 = vpow2.f32 %v5644_v38 }
 0x623   : > { %v5876_v53 = vpop.eup %5875 }
 0x624   : > { %v5878_v26 = vpop.eup %5877  ;;  %v5348_v54 = vadd.f32 1.0, %v5876_v53 }
 0x625   : > { %v5880_v43 = vpop.eup %5879  ;;  %v5350_v58 = vadd.f32 1.0, %v5878_v26 }
 0x626   : > { %v5882_v0 = vpop.eup %5881  ;;  %5883 = vrcp.f32 %v5348_v54  ;;  %v5349_v5 = vadd.f32 1.0, %v5880_v43 }
 0x627   : > { %5885 = vrcp.f32 %v5350_v58  ;;  %v5351_v22 = vadd.f32 1.0, %v5882_v0 }
 0x628   : > { %5887 = vrcp.f32 %v5349_v5 }
 0x629   : > { %5889 = vrcp.f32 %v5351_v22 }
 0x630   : > { %v5884_v50 = vpop.eup %5883 }
 0x631   : > { %v5886_v61 = vpop.eup %5885 }
 0x632   : > { %v5888_v24 = vpop.eup %5887 }
 0x633   : > { %v5890_v37 = vpop.eup %5889  ;;  %v5380_v18 = vcombine.low %v5884_v50, %v5888_v24 }
 0x634   : > { %v5381_v9 = vcombine.low %v5886_v61, %v5890_v37 }
 0x635   : > { %5388 = vst [vmem:[%s9034_s2] sm:$0x77] %v5380_v18 }
 0x636   : > { %5389 = vst [vmem:[%s9034_s2 + $0x8] sm:$0x77] %v5381_v9 }
 0x694   : > { %v5276_v11 = vpop.f32.mrb[228].mxu0 }
 0x695   : > { %v5277_v56 = vadd.f32 %v5276_v11, %v5154_v49  ;;  %v5278_v12 = vpop.f32.mrb[229].mxu0 }
 0x696   : > { %v5279_v20 = vadd.f32 %v5278_v12, %v5154_v49  ;;  %v5280_v4 = vpop.f32.mrb[230].mxu0 }
 0x697   : > { %v5645_v62 = vmul.f32 -1.442695, %v5277_v56  ;;  %v5281_v33 = vpop.f32.mrb[231].mxu0 }
 0x698   : > { %v5646_v10 = vmul.f32 -1.442695, %v5279_v20 }
 0x699   : > { %5891 = vpow2.f32 %v5645_v62 }
 0x69a   : > { %5893 = vpow2.f32 %v5646_v10 }
 0x69d   : > { %v5317_v31 = vpop.f32.mrb[228].mxu1 }
 0x69e   : > { %v5318_v46 = vadd.f32 %v5317_v31, %v5154_v49  ;;  %v5319_v57 = vpop.f32.mrb[229].mxu1 }
 0x69f   : > { %v5320_v17 = vadd.f32 %v5319_v57, %v5154_v49  ;;  %v5321_v27 = vpop.f32.mrb[230].mxu1 }
 0x6a0   : > { %v5647_v13 = vmul.f32 -1.442695, %v5318_v46  ;;  %v5322_v14 = vpop.f32.mrb[231].mxu1 }
 0x6a1   : > { %v5648_v47 = vmul.f32 -1.442695, %v5320_v17 }
 0x6a2   : > { %5895 = vpow2.f32 %v5647_v13 }
 0x6a3   : > { %v5892_v36 = vpop.eup %5891  ;;  %5897 = vpow2.f32 %v5648_v47 }
 0x6a4   : > { %v5894_v63 = vpop.eup %5893  ;;  %v5352_v45 = vadd.f32 1.0, %v5892_v36 }
 0x6a5   : > { %v5353_v44 = vadd.f32 1.0, %v5894_v63 }
 0x6a6   : > { %5899 = vrcp.f32 %v5352_v45 }
 0x6a7   : > { %5901 = vrcp.f32 %v5353_v44 }
 0x6ac   : > { %v5896_v34 = vpop.eup %5895 }
 0x6ad   : > { %v5898_v32 = vpop.eup %5897  ;;  %v5354_v6 = vadd.f32 1.0, %v5896_v34 }
 0x6ae   : > { %v5355_v15 = vadd.f32 1.0, %v5898_v32 }
 0x6af   : > { %5903 = vrcp.f32 %v5354_v6 }
 0x6b0   : > { %v5900_v2 = vpop.eup %5899  ;;  %5905 = vrcp.f32 %v5355_v15 }
 0x6b1   : > { %v5902_v30 = vpop.eup %5901 }
 0x6b2   : > { %v5382_v21 = vcombine.low %v5900_v2, %v5902_v30 }
 0x6b4   : > { %5390 = vst [vmem:[%s9034_s2 + $0x10] sm:$0x77] %v5382_v21 }
 0x6b9   : > { %v5904_v52 = vpop.eup %5903 }
 0x6ba   : > { %v5906_v7 = vpop.eup %5905 }
 0x6bb   : > { %v5383_v23 = vcombine.low %v5904_v52, %v5906_v7 }
 0x6bd   : > { %5391 = vst [vmem:[%s9034_s2 + $0x18] sm:$0x77] %v5383_v23 }
 0x6be   : > { %5926 = shalt.err (!%p5923_p3)
}
 0x6bf   : > { %s5927_s17 = scalar_lea.hbm %s9044_s28, 512  ;;  %s5931_s20 = scalar_lea.hbm %s9101_s12, 1024 }
 0x6c0   : > { %p5928_p4 = scmp.ne.s32.totalorder %s9044_s28, %s5927_s17  ;;  %p5932_p9 = scmp.lt.u32.totalorder %s9044_s28, %s9101_s12 }
 0x6c1   : > { %p5933_p10 = scmp.lt.u32.totalorder %s5931_s20, %s5927_s17  ;;  %p5935_p12 = scmp.lt.u32.totalorder %s5927_s17, %s9044_s28 }
 0x6c2   : > { %p5929_p7 = pnand %p5928_p4, %p6088_p5 }
 0x6c3   : > { %p5934_p11 = por %p5933_p10, %p5932_p9 }
 0x6c4   : > { %p5930_p8 = pneg %p5929_p7 }
 0x6c5   : > { %p5936_p13 = por %p5935_p12, %p5934_p11 }
 0x6c7   : > { %p5937_p0 = pnand %p5936_p13, %p5930_p8 }
 0x6c9   : > { %5940 = shalt.err (!%p5937_p0)
}
 0x6ca   : > { %5719 = dma.vmem_to_hbm [thread:$0]  (%p6088_p5), %s9046_s19, 512, %s9044_s28, %s5393_s15  }
 0x6cb PF: > { %p5725_p1 = scmp.ge.s32.totalorder %s5975_s24, 2  ;;  %s5419_s16 = sand.u32 1, %s5963_s21  }
 0x6cc   : > { %s5420_s29 = scalar_lea.sflag [#allocation3], %s5419_s16 }
 0x6cd   : > { %p5722_p2 = pnand %p5725_p1, %p6092_p6 }
 0x6cf   : > { %5958 = dma.done.wait (!%p5722_p2), %s5420_s29, 512  }
 0x6d0   : > { %5960 = vsyncadd (!%p5722_p2), %s5420_s29, 4294966784  ;;  %p22_p3 = scmp.ge.s32.totalorder %s6075_s27, 4   ;;  %s9168_s21 = smov %s5967_s22 }
 0x6d1   : > { %s9169_s22 = smov %s5971_s23  ;;  %s9170_s23 = smov %s6086_s30 }
 0x6d2   : > { %s9171_s24 = smov %s6075_s27  ;;  %24 = sbr.rel (!%p22_p3) target bundleno = 6 (0x6), region = 103 }
 0x6d9   :  { %5425 = vsyncpa [#allocation3], 1 }
 0x6da   :  { %5427 = vsyncpa [#allocation3 + $0x1], 1 }

</bundles_post_ra>
